<compile_context>
chip_gen: v5e
topology: v5e:2x2
jax: 0.10.0
libtpu: 0.0.40
codegen_flags: <defaults>
</compile_context>

<pallas_src>
import functools

import jax
import jax.numpy as jnp
from jax.experimental import pallas as pl
from jax.experimental.pallas import tpu as pltpu


def _pick_strip_height(H, W):
    """Strip height: multiple of 8 dividing H, targeting TH*W in ~[256, 512]."""
    if H % 8 != 0 or H < 8:
        return H
    target = max(8, min(H, (512 // max(W, 1)) // 8 * 8))
    th = target
    while H % th != 0:
        th -= 8
    return th


def _dsconv_kernel(H, W, C, O, TH, PADL, SW,
                   x_ref, wdw_ref, wpw_ref, b1_ref, b2_ref,
                   out_ref, xpad_scr):
    # x_ref   : (1, H, W, C)   f32  input tile (one batch elem) == shortcut
    # wdw_ref : (3, 3, C)      f32  depthwise weights, BN1 scale pre-folded
    # wpw_ref : (C, O)         bf16 pointwise weights, BN2 scale pre-folded
    # b1_ref  : (1, C)         f32  folded BN1 bias (includes conv_dw bias)
    # b2_ref  : (1, O)         f32  folded BN2 bias (includes conv_pw bias)
    # out_ref : (1, H, W, O)
    # xpad_scr: (H + 2, SW, C) f32  VMEM halo buffer, image interior at col PADL

    # --- zero only the halo the 3x3 taps read (no full-scratch memset) ---
    xpad_scr[:, 0:PADL, :] = jnp.zeros((H + 2, PADL, C), jnp.float32)
    xpad_scr[:, PADL + W:, :] = jnp.zeros((H + 2, SW - PADL - W, C), jnp.float32)
    xpad_scr[0, PADL:PADL + W, :] = jnp.zeros((W, C), jnp.float32)
    xpad_scr[H + 1, PADL:PADL + W, :] = jnp.zeros((W, C), jnp.float32)
    # Aligned interior copy (PADL is a multiple of 8).
    xpad_scr[1:H + 1, PADL:PADL + W, :] = x_ref[0].astype(jnp.float32)

    # --- loop-invariant hoists (broadcasts / weight loads done once) ---
    wdw = wdw_ref[...]                                        # (3,3,C) f32
    w_taps = [[wdw[i, j] for j in range(3)] for i in range(3)]
    wpw = wpw_ref[...]                                        # (C,O) bf16
    b1_b = jnp.broadcast_to(b1_ref[0], (TH, W, C))            # (TH,W,C) f32
    b2_b = jnp.broadcast_to(b2_ref[0], (TH * W, O))           # (TH*W,O) f32

    n_strips = H // TH

    def strip(s, carry):
        r0 = pl.multiple_of(s * TH, TH)
        # Padded rows [r0, r0+TH+2) cover the 3x3 halo of output rows [r0, r0+TH).
        xslab = xpad_scr[pl.ds(r0, TH + 2), :, :]             # (TH+2, SW, C)

        # Materialize the three column-shifted slabs once per strip (only two
        # misaligned sublane slices); row shifts below are cheap axis-0 cuts.
        xcols = [xslab[:, PADL - 1 + j:PADL - 1 + j + W, :] for j in range(3)]

        # Depthwise 3x3, stride 1: 9 shifted multiply-accumulates (VPU, f32).
        acc = xcols[0][0:TH] * w_taps[0][0]
        for i in range(3):
            for j in range(3):
                if i == 0 and j == 0:
                    continue
                acc = acc + xcols[j][i:i + TH] * w_taps[i][j]

        # Folded BN1 bias + ReLU (BN1 scale already inside wdw).
        y = jnp.maximum(acc + b1_b, 0.0)

        # Pointwise 1x1 conv == channel matmul: bf16 operands on the MXU with
        # f32 accumulation; BN2 scale already folded into the wpw columns.
        y2 = jnp.dot(y.astype(jnp.bfloat16).reshape(TH * W, C), wpw,
                     preferred_element_type=jnp.float32)      # (TH*W, O)
        y2 = (y2 + b2_b).reshape(TH, W, O)

        # Residual skip from the interior of the padded slab (no 2nd HBM stream).
        sc = xcols[1][1:1 + TH]                               # (TH, W, C)
        out_ref[0, pl.ds(r0, TH), :, :] = (y2 + sc).astype(out_ref.dtype)
        return carry

    jax.lax.fori_loop(0, n_strips, strip, 0,
                      unroll=(n_strips if n_strips <= 2 else 2))


def depthwise_separable_conv(x_nchw, params, *, eps=1e-5):
    """x_nchw: (B, C, H, W) float32. Returns (B, C_out, H, W), PyTorch layout."""
    B, C, H, W = x_nchw.shape
    O = params["w_pw"].shape[1]
    assert C == O, "has_skip requires in_chs == out_chs"

    # glue: NCHW -> NHWC so channels sit on the TPU lane axis.
    # TODO(synk): for deployments with C << 128 this layout wastes lanes; keep the
    # surrounding graph NHWC (channel-padded to 128) end-to-end to drop these transposes.
    x_nhwc = jnp.transpose(x_nchw, (0, 2, 3, 1))                 # (B,H,W,C)

    # Fold eval-mode BN (and the conv biases) into the conv weights / biases (exact).
    s1 = params["gamma1"] / jnp.sqrt(params["var1"] + eps)
    b1 = params["beta1"] + s1 * (params["b_dw"] - params["mean1"])
    s2 = params["gamma2"] / jnp.sqrt(params["var2"] + eps)
    b2 = params["beta2"] + s2 * (params["b_pw"] - params["mean2"])
    w_dw = (params["w_dw"] * s1).astype(jnp.float32)             # (3,3,C) f32
    w_pw = (params["w_pw"] * s2[None, :]).astype(jnp.bfloat16)   # (C,O)  bf16 (MXU)
    b1 = b1.reshape(1, C).astype(jnp.float32)
    b2 = b2.reshape(1, O).astype(jnp.float32)

    TH = _pick_strip_height(H, W)              # row-strip height (M = TH*W ~ 256-512)
    PADL = 8                                   # 8-aligned left halo offset
    SW = PADL + W + 8                          # scratch width (>= W + 9)

    kernel = functools.partial(_dsconv_kernel, H, W, C, O, TH, PADL, SW)

    # Generation-aware VMEM budget: double-buffered in/out blocks + halo scratch
    # + weights + strip-local intermediates, capped below v7x's 64 MiB per core.
    bytes_in = H * W * C * 4
    bytes_out = H * W * O * 4
    bytes_scr = (H + 2) * SW * C * 4
    bytes_wts = 9 * C * 4 + C * O * 2 + (C + O) * 4
    bytes_strip = (3 * (TH + 2) * W * C + TH * W * (2 * C + 2 * O)) * 4
    vmem_need = 2 * (bytes_in + bytes_out) + bytes_scr + 2 * bytes_wts + bytes_strip
    vmem_limit = min(max(vmem_need + (4 << 20), 16 << 20), 48 << 20)

    out_nhwc = pl.pallas_call(
        kernel,
        out_shape=jax.ShapeDtypeStruct((B, H, W, O), x_nchw.dtype),
        grid_spec=pltpu.PrefetchScalarGridSpec(
            num_scalar_prefetch=0,
            grid=(B,),
            in_specs=[
                pl.BlockSpec((1, H, W, C), lambda b: (b, 0, 0, 0)),
                pl.BlockSpec((3, 3, C), lambda b: (0, 0, 0)),
                pl.BlockSpec((C, O), lambda b: (0, 0)),
                pl.BlockSpec((1, C), lambda b: (0, 0)),
                pl.BlockSpec((1, O), lambda b: (0, 0)),
            ],
            out_specs=pl.BlockSpec((1, H, W, O), lambda b: (b, 0, 0, 0)),
            scratch_shapes=[pltpu.VMEM((H + 2, SW, C), jnp.float32)],
        ),
        compiler_params=pltpu.CompilerParams(
            dimension_semantics=("parallel",),
            vmem_limit_bytes=vmem_limit),
    )(x_nhwc, w_dw, w_pw, b1, b2)
    # TODO(synk): on v7x with B < 2*num_chips, add a second parallel grid axis over
    # row blocks (overlapping halo rows) so both TensorCores stay busy.

    # glue: NHWC -> NCHW to match the PyTorch convention.
    return jnp.transpose(out_nhwc, (0, 3, 1, 2))


def _reference(x_nchw, params):
    """Pure-JAX f32 reference (lax conv) in NHWC, eval-mode BN, for verification."""
    eps = 1e-5
    x = jnp.transpose(x_nchw, (0, 2, 3, 1))                      # NHWC
    C = x.shape[-1]
    O = params["w_pw"].shape[1]
    k_dw = params["w_dw"].reshape(3, 3, 1, C)
    y = jax.lax.conv_general_dilated(
        x, k_dw, window_strides=(1, 1), padding="SAME",
        dimension_numbers=("NHWC", "HWIO", "NHWC"),
        feature_group_count=C) + params["b_dw"]
    y = (y - params["mean1"]) / jnp.sqrt(params["var1"] + eps)
    y = y * params["gamma1"] + params["beta1"]
    y = jnp.maximum(y, 0.0)
    k_pw = params["w_pw"].reshape(1, 1, C, O)
    z = jax.lax.conv_general_dilated(
        y, k_pw, window_strides=(1, 1), padding="SAME",
        dimension_numbers=("NHWC", "HWIO", "NHWC")) + params["b_pw"]
    z = (z - params["mean2"]) / jnp.sqrt(params["var2"] + eps)
    z = z * params["gamma2"] + params["beta2"]
    z = z + x
    return jnp.transpose(z, (0, 3, 1, 2))


if __name__ == "__main__":
    B, C, H, W = 2, 4, 16, 16
    O = C  # in_chs == out_chs so the skip connection is active

    key = jax.random.PRNGKey(0)
    ks = jax.random.split(key, 11)
    params = {
        # conv_dw: PyTorch weight (C,1,3,3) stored here as (3,3,C)
        "w_dw": jax.random.normal(ks[0], (3, 3, C), jnp.float32) * 0.2,
        "b_dw": jax.random.normal(ks[1], (C,), jnp.float32) * 0.1,
        # conv_pw: PyTorch weight (O,C,1,1) stored here as (C,O)
        "w_pw": jax.random.normal(ks[2], (C, O), jnp.float32) * 0.2,
        "b_pw": jax.random.normal(ks[3], (O,), jnp.float32) * 0.1,
        # BN1 (eval-mode running stats)
        "gamma1": 1.0 + 0.1 * jax.random.normal(ks[4], (C,), jnp.float32),
        "beta1": 0.1 * jax.random.normal(ks[5], (C,), jnp.float32),
        "mean1": 0.1 * jax.random.normal(ks[6], (C,), jnp.float32),
        "var1": jnp.abs(jax.random.normal(ks[7], (C,), jnp.float32)) + 0.5,
        # BN2
        "gamma2": 1.0 + 0.1 * jax.random.normal(ks[8], (O,), jnp.float32),
        "beta2": 0.1 * jax.random.normal(ks[9], (O,), jnp.float32),
        "mean2": 0.1 * jax.random.normal(ks[10], (O,), jnp.float32),
        "var2": jnp.abs(jax.random.normal(ks[4], (O,), jnp.float32)) + 0.5,
    }

    x = jax.random.normal(jax.random.PRNGKey(42), (B, C, H, W), jnp.float32)

    out = depthwise_separable_conv(x, params)
    out = jax.block_until_ready(out)

    ref = _reference(x, params)
    assert out.shape == (B, O, H, W), out.shape
    # Tolerance accounts for bf16 MXU operands (f32 accumulation) in the 1x1 conv.
    max_err = float(jnp.max(jnp.abs(out - ref)))
    assert jnp.allclose(out, ref, atol=2e-2, rtol=2e-2), max_err
    print("KERNEL_OK")
</pallas_src>

<mosaic_0001>
module attributes {stable_mosaic.version = 11 : i64} {
  func.func @_dsconv_kernel(%arg0: i32, %arg1: memref<1x16x16x4xf32, #tpu.memory_space<vmem>>, %arg2: memref<3x3x4xf32, #tpu.memory_space<vmem>>, %arg3: memref<4x4xbf16, #tpu.memory_space<vmem>>, %arg4: memref<1x4xf32, #tpu.memory_space<vmem>>, %arg5: memref<1x4xf32, #tpu.memory_space<vmem>>, %arg6: memref<1x16x16x4xf32, #tpu.memory_space<vmem>>, %arg7: memref<18x32x4xf32, #tpu.memory_space<vmem>>) attributes {dimension_semantics = [#tpu.dimension_semantics<parallel>], iteration_bounds = array<i64: 2>, scalar_prefetch = 0 : i64, scratch_operands = 1 : i64, tpu.core_type = #tpu.core_type<tc>, window_params = [{transform_indices = @transform_0, window_bounds = array<i64: 1, 16, 16, 4>}, {pipeline_mode = #tpu.pipeline_mode<synchronous>, transform_indices = @transform_1, window_bounds = array<i64: 3, 3, 4>}, {pipeline_mode = #tpu.pipeline_mode<synchronous>, transform_indices = @transform_2, window_bounds = array<i64: 4, 4>}, {pipeline_mode = #tpu.pipeline_mode<synchronous>, transform_indices = @transform_3, window_bounds = array<i64: 1, 4>}, {pipeline_mode = #tpu.pipeline_mode<synchronous>, transform_indices = @transform_4, window_bounds = array<i64: 1, 4>}, {transform_indices = @transform_5, window_bounds = array<i64: 1, 16, 16, 4>}]} {
    %cst = arith.constant 0.000000e+00 : f32
    %0 = vector.broadcast %cst : f32 to vector<18x8x4xf32>
    %c0 = arith.constant 0 : index
    %c0_0 = arith.constant 0 : index
    %c0_1 = arith.constant 0 : index
    %1 = vector.load %arg7[%c0, %c0_0, %c0_1] : memref<18x32x4xf32, #tpu.memory_space<vmem>>, vector<18x8x4xf32>
    tpu.vector_store %arg7[%c0, %c0_0, %c0_1], %0 {strides = array<i32>} : memref<18x32x4xf32, #tpu.memory_space<vmem>>, vector<18x8x4xf32>,
    %cst_2 = arith.constant 0.000000e+00 : f32
    %2 = vector.broadcast %cst_2 : f32 to vector<18x8x4xf32>
    %c0_3 = arith.constant 0 : index
    %c24 = arith.constant 24 : index
    %c0_4 = arith.constant 0 : index
    %3 = vector.load %arg7[%c0_3, %c24, %c0_4] : memref<18x32x4xf32, #tpu.memory_space<vmem>>, vector<18x8x4xf32>
    tpu.vector_store %arg7[%c0_3, %c24, %c0_4], %2 {strides = array<i32>} : memref<18x32x4xf32, #tpu.memory_space<vmem>>, vector<18x8x4xf32>,
    %cst_5 = arith.constant 0.000000e+00 : f32
    %4 = vector.broadcast %cst_5 : f32 to vector<16x4xf32>
    %c0_6 = arith.constant 0 : index
    %c8 = arith.constant 8 : index
    %c0_7 = arith.constant 0 : index
    %5 = vector.load %arg7[%c0_6, %c8, %c0_7] : memref<18x32x4xf32, #tpu.memory_space<vmem>>, vector<1x16x4xf32>
    %6 = vector.shape_cast %5 : vector<1x16x4xf32> to vector<16x4xf32>
    %7 = vector.shape_cast %4 : vector<16x4xf32> to vector<1x16x4xf32>
    tpu.vector_store %arg7[%c0_6, %c8, %c0_7], %7 {strides = array<i32>} : memref<18x32x4xf32, #tpu.memory_space<vmem>>, vector<1x16x4xf32>,
    %cst_8 = arith.constant 0.000000e+00 : f32
    %8 = vector.broadcast %cst_8 : f32 to vector<16x4xf32>
    %c17 = arith.constant 17 : index
    %c8_9 = arith.constant 8 : index
    %c0_10 = arith.constant 0 : index
    %9 = vector.load %arg7[%c17, %c8_9, %c0_10] : memref<18x32x4xf32, #tpu.memory_space<vmem>>, vector<1x16x4xf32>
    %10 = vector.shape_cast %9 : vector<1x16x4xf32> to vector<16x4xf32>
    %11 = vector.shape_cast %8 : vector<16x4xf32> to vector<1x16x4xf32>
    tpu.vector_store %arg7[%c17, %c8_9, %c0_10], %11 {strides = array<i32>} : memref<18x32x4xf32, #tpu.memory_space<vmem>>, vector<1x16x4xf32>,
    %c0_11 = arith.constant 0 : index
    %c0_12 = arith.constant 0 : index
    %c0_13 = arith.constant 0 : index
    %c0_14 = arith.constant 0 : index
    %12 = vector.load %arg1[%c0_11, %c0_12, %c0_13, %c0_14] : memref<1x16x16x4xf32, #tpu.memory_space<vmem>>, vector<1x16x16x4xf32>
    %13 = vector.shape_cast %12 : vector<1x16x16x4xf32> to vector<16x16x4xf32>
    %c1 = arith.constant 1 : index
    %c8_15 = arith.constant 8 : index
    %c0_16 = arith.constant 0 : index
    %14 = vector.load %arg7[%c1, %c8_15, %c0_16] : memref<18x32x4xf32, #tpu.memory_space<vmem>>, vector<16x16x4xf32>
    tpu.vector_store %arg7[%c1, %c8_15, %c0_16], %13 {strides = array<i32>} : memref<18x32x4xf32, #tpu.memory_space<vmem>>, vector<16x16x4xf32>,
    %c0_17 = arith.constant 0 : index
    %c0_18 = arith.constant 0 : index
    %c0_19 = arith.constant 0 : index
    %15 = vector.load %arg2[%c0_17, %c0_18, %c0_19] : memref<3x3x4xf32, #tpu.memory_space<vmem>>, vector<3x3x4xf32>
    %16 = vector.extract_strided_slice %15 {offsets = [0, 0, 0], sizes = [1, 1, 4], strides = [1, 1, 1]} : vector<3x3x4xf32> to vector<1x1x4xf32>
    %17 = vector.shape_cast %16 : vector<1x1x4xf32> to vector<4xf32>
    %18 = vector.extract_strided_slice %15 {offsets = [0, 1, 0], sizes = [1, 1, 4], strides = [1, 1, 1]} : vector<3x3x4xf32> to vector<1x1x4xf32>
    %19 = vector.shape_cast %18 : vector<1x1x4xf32> to vector<4xf32>
    %20 = vector.extract_strided_slice %15 {offsets = [0, 2, 0], sizes = [1, 1, 4], strides = [1, 1, 1]} : vector<3x3x4xf32> to vector<1x1x4xf32>
    %21 = vector.shape_cast %20 : vector<1x1x4xf32> to vector<4xf32>
    %22 = vector.extract_strided_slice %15 {offsets = [1, 0, 0], sizes = [1, 1, 4], strides = [1, 1, 1]} : vector<3x3x4xf32> to vector<1x1x4xf32>
    %23 = vector.shape_cast %22 : vector<1x1x4xf32> to vector<4xf32>
    %24 = vector.extract_strided_slice %15 {offsets = [1, 1, 0], sizes = [1, 1, 4], strides = [1, 1, 1]} : vector<3x3x4xf32> to vector<1x1x4xf32>
    %25 = vector.shape_cast %24 : vector<1x1x4xf32> to vector<4xf32>
    %26 = vector.extract_strided_slice %15 {offsets = [1, 2, 0], sizes = [1, 1, 4], strides = [1, 1, 1]} : vector<3x3x4xf32> to vector<1x1x4xf32>
    %27 = vector.shape_cast %26 : vector<1x1x4xf32> to vector<4xf32>
    %28 = vector.extract_strided_slice %15 {offsets = [2, 0, 0], sizes = [1, 1, 4], strides = [1, 1, 1]} : vector<3x3x4xf32> to vector<1x1x4xf32>
    %29 = vector.shape_cast %28 : vector<1x1x4xf32> to vector<4xf32>
    %30 = vector.extract_strided_slice %15 {offsets = [2, 1, 0], sizes = [1, 1, 4], strides = [1, 1, 1]} : vector<3x3x4xf32> to vector<1x1x4xf32>
    %31 = vector.shape_cast %30 : vector<1x1x4xf32> to vector<4xf32>
    %32 = vector.extract_strided_slice %15 {offsets = [2, 2, 0], sizes = [1, 1, 4], strides = [1, 1, 1]} : vector<3x3x4xf32> to vector<1x1x4xf32>
    %33 = vector.shape_cast %32 : vector<1x1x4xf32> to vector<4xf32>
    %c0_20 = arith.constant 0 : index
    %c0_21 = arith.constant 0 : index
    %34 = vector.load %arg3[%c0_20, %c0_21] : memref<4x4xbf16, #tpu.memory_space<vmem>>, vector<4x4xbf16>
    %c0_22 = arith.constant 0 : index
    %c0_23 = arith.constant 0 : index
    %35 = vector.load %arg4[%c0_22, %c0_23] : memref<1x4xf32, #tpu.memory_space<vmem>>, vector<1x4xf32>
    %36 = vector.shape_cast %35 : vector<1x4xf32> to vector<4xf32>
    %37 = vector.shape_cast %36 : vector<4xf32> to vector<1x1x4xf32>
    %38 = vector.broadcast %37 : vector<1x1x4xf32> to vector<16x16x4xf32>
    %c0_24 = arith.constant 0 : index
    %c0_25 = arith.constant 0 : index
    %39 = vector.load %arg5[%c0_24, %c0_25] : memref<1x4xf32, #tpu.memory_space<vmem>>, vector<1x4xf32>
    %40 = vector.shape_cast %39 : vector<1x4xf32> to vector<4xf32>
    %41 = vector.shape_cast %40 : vector<4xf32> to vector<1x4xf32>
    %42 = vector.broadcast %41 : vector<1x4xf32> to vector<256x4xf32>
    %c0_i32 = arith.constant 0 : i32
    %c16_i32 = arith.constant 16 : i32
    %43 = arith.muli %c0_i32, %c16_i32 : i32
    %44 = tpu.assume_multiple %43, 16 : i32
    %45 = arith.index_cast %44 : i32 to index
    %c0_26 = arith.constant 0 : index
    %c0_27 = arith.constant 0 : index
    %46 = vector.load %arg7[%45, %c0_26, %c0_27] : memref<18x32x4xf32, #tpu.memory_space<vmem>>, vector<18x32x4xf32>
    %47 = vector.extract_strided_slice %46 {offsets = [0, 7, 0], sizes = [18, 16, 4], strides = [1, 1, 1]} : vector<18x32x4xf32> to vector<18x16x4xf32>
    %48 = vector.extract_strided_slice %46 {offsets = [0, 8, 0], sizes = [18, 16, 4], strides = [1, 1, 1]} : vector<18x32x4xf32> to vector<18x16x4xf32>
    %49 = vector.extract_strided_slice %46 {offsets = [0, 9, 0], sizes = [18, 16, 4], strides = [1, 1, 1]} : vector<18x32x4xf32> to vector<18x16x4xf32>
    %50 = vector.extract_strided_slice %47 {offsets = [0, 0, 0], sizes = [16, 16, 4], strides = [1, 1, 1]} : vector<18x16x4xf32> to vector<16x16x4xf32>
    %51 = vector.shape_cast %17 : vector<4xf32> to vector<1x1x4xf32>
    %52 = vector.broadcast %51 : vector<1x1x4xf32> to vector<16x16x4xf32>
    %53 = arith.mulf %50, %52 : vector<16x16x4xf32>
    %54 = vector.extract_strided_slice %48 {offsets = [0, 0, 0], sizes = [16, 16, 4], strides = [1, 1, 1]} : vector<18x16x4xf32> to vector<16x16x4xf32>
    %55 = vector.shape_cast %19 : vector<4xf32> to vector<1x1x4xf32>
    %56 = vector.broadcast %55 : vector<1x1x4xf32> to vector<16x16x4xf32>
    %57 = arith.mulf %54, %56 : vector<16x16x4xf32>
    %58 = arith.addf %53, %57 : vector<16x16x4xf32>
    %59 = vector.extract_strided_slice %49 {offsets = [0, 0, 0], sizes = [16, 16, 4], strides = [1, 1, 1]} : vector<18x16x4xf32> to vector<16x16x4xf32>
    %60 = vector.shape_cast %21 : vector<4xf32> to vector<1x1x4xf32>
    %61 = vector.broadcast %60 : vector<1x1x4xf32> to vector<16x16x4xf32>
    %62 = arith.mulf %59, %61 : vector<16x16x4xf32>
    %63 = arith.addf %58, %62 : vector<16x16x4xf32>
    %64 = vector.extract_strided_slice %47 {offsets = [1, 0, 0], sizes = [16, 16, 4], strides = [1, 1, 1]} : vector<18x16x4xf32> to vector<16x16x4xf32>
    %65 = vector.shape_cast %23 : vector<4xf32> to vector<1x1x4xf32>
    %66 = vector.broadcast %65 : vector<1x1x4xf32> to vector<16x16x4xf32>
    %67 = arith.mulf %64, %66 : vector<16x16x4xf32>
    %68 = arith.addf %63, %67 : vector<16x16x4xf32>
    %69 = vector.extract_strided_slice %48 {offsets = [1, 0, 0], sizes = [16, 16, 4], strides = [1, 1, 1]} : vector<18x16x4xf32> to vector<16x16x4xf32>
    %70 = vector.shape_cast %25 : vector<4xf32> to vector<1x1x4xf32>
    %71 = vector.broadcast %70 : vector<1x1x4xf32> to vector<16x16x4xf32>
    %72 = arith.mulf %69, %71 : vector<16x16x4xf32>
    %73 = arith.addf %68, %72 : vector<16x16x4xf32>
    %74 = vector.extract_strided_slice %49 {offsets = [1, 0, 0], sizes = [16, 16, 4], strides = [1, 1, 1]} : vector<18x16x4xf32> to vector<16x16x4xf32>
    %75 = vector.shape_cast %27 : vector<4xf32> to vector<1x1x4xf32>
    %76 = vector.broadcast %75 : vector<1x1x4xf32> to vector<16x16x4xf32>
    %77 = arith.mulf %74, %76 : vector<16x16x4xf32>
    %78 = arith.addf %73, %77 : vector<16x16x4xf32>
    %79 = vector.extract_strided_slice %47 {offsets = [2, 0, 0], sizes = [16, 16, 4], strides = [1, 1, 1]} : vector<18x16x4xf32> to vector<16x16x4xf32>
    %80 = vector.shape_cast %29 : vector<4xf32> to vector<1x1x4xf32>
    %81 = vector.broadcast %80 : vector<1x1x4xf32> to vector<16x16x4xf32>
    %82 = arith.mulf %79, %81 : vector<16x16x4xf32>
    %83 = arith.addf %78, %82 : vector<16x16x4xf32>
    %84 = vector.extract_strided_slice %48 {offsets = [2, 0, 0], sizes = [16, 16, 4], strides = [1, 1, 1]} : vector<18x16x4xf32> to vector<16x16x4xf32>
    %85 = vector.shape_cast %31 : vector<4xf32> to vector<1x1x4xf32>
    %86 = vector.broadcast %85 : vector<1x1x4xf32> to vector<16x16x4xf32>
    %87 = arith.mulf %84, %86 : vector<16x16x4xf32>
    %88 = arith.addf %83, %87 : vector<16x16x4xf32>
    %89 = vector.extract_strided_slice %49 {offsets = [2, 0, 0], sizes = [16, 16, 4], strides = [1, 1, 1]} : vector<18x16x4xf32> to vector<16x16x4xf32>
    %90 = vector.shape_cast %33 : vector<4xf32> to vector<1x1x4xf32>
    %91 = vector.broadcast %90 : vector<1x1x4xf32> to vector<16x16x4xf32>
    %92 = arith.mulf %89, %91 : vector<16x16x4xf32>
    %93 = arith.addf %88, %92 : vector<16x16x4xf32>
    %94 = arith.addf %93, %38 : vector<16x16x4xf32>
    %cst_28 = arith.constant 0.000000e+00 : f32
    %95 = vector.broadcast %cst_28 : f32 to vector<16x16x4xf32>
    %96 = arith.maximumf %94, %95 : vector<16x16x4xf32>
    %97 = arith.truncf %96 : vector<16x16x4xf32> to vector<16x16x4xbf16>
    %98 = vector.shape_cast %97 : vector<16x16x4xbf16> to vector<256x4xbf16>
    %cst_29 = arith.constant dense<0.000000e+00> : vector<256x4xf32>
    %99 = tpu.matmul %98, %34, %cst_29 {dimension_numbers = #tpu.dot_dimension_numbers<[1], [0], [0], [1], [0, 0, 1, 1], [], []>} : vector<256x4xbf16>, vector<4x4xbf16>, vector<256x4xf32> -> vector<256x4xf32>
    %100 = arith.addf %99, %42 : vector<256x4xf32>
    %101 = vector.shape_cast %100 : vector<256x4xf32> to vector<16x16x4xf32>
    %102 = vector.extract_strided_slice %48 {offsets = [1, 0, 0], sizes = [16, 16, 4], strides = [1, 1, 1]} : vector<18x16x4xf32> to vector<16x16x4xf32>
    %103 = arith.addf %101, %102 : vector<16x16x4xf32>
    %c0_30 = arith.constant 0 : index
    %104 = arith.index_cast %44 : i32 to index
    %c0_31 = arith.constant 0 : index
    %c0_32 = arith.constant 0 : index
    %105 = vector.load %arg6[%c0_30, %104, %c0_31, %c0_32] : memref<1x16x16x4xf32, #tpu.memory_space<vmem>>, vector<1x16x16x4xf32>
    %106 = vector.shape_cast %105 : vector<1x16x16x4xf32> to vector<16x16x4xf32>
    %107 = vector.shape_cast %103 : vector<16x16x4xf32> to vector<1x16x16x4xf32>
    tpu.vector_store %arg6[%c0_30, %104, %c0_31, %c0_32], %107 {strides = array<i32>} : memref<1x16x16x4xf32, #tpu.memory_space<vmem>>, vector<1x16x16x4xf32>,
    %c1_i32 = arith.constant 1 : i32
    return
  }
  func.func @transform_0(%arg0: i32) -> (i32, i32, i32, i32) {
    %c0_i32 = arith.constant 0 : i32
    %c0_i32_0 = arith.constant 0 : i32
    %c0_i32_1 = arith.constant 0 : i32
    %c0_i32_2 = arith.constant 0 : i32
    return %arg0, %c0_i32, %c0_i32_0, %c0_i32_1 : i32, i32, i32, i32
  }
  func.func @transform_1(%arg0: i32) -> (i32, i32, i32) {
    %c0_i32 = arith.constant 0 : i32
    %c0_i32_0 = arith.constant 0 : i32
    %c0_i32_1 = arith.constant 0 : i32
    %c0_i32_2 = arith.constant 0 : i32
    return %c0_i32, %c0_i32_0, %c0_i32_1 : i32, i32, i32
  }
  func.func @transform_2(%arg0: i32) -> (i32, i32) {
    %c0_i32 = arith.constant 0 : i32
    %c0_i32_0 = arith.constant 0 : i32
    %c0_i32_1 = arith.constant 0 : i32
    return %c0_i32, %c0_i32_0 : i32, i32
  }
  func.func @transform_3(%arg0: i32) -> (i32, i32) {
    %c0_i32 = arith.constant 0 : i32
    %c0_i32_0 = arith.constant 0 : i32
    %c0_i32_1 = arith.constant 0 : i32
    return %c0_i32, %c0_i32_0 : i32, i32
  }
  func.func @transform_4(%arg0: i32) -> (i32, i32) {
    %c0_i32 = arith.constant 0 : i32
    %c0_i32_0 = arith.constant 0 : i32
    %c0_i32_1 = arith.constant 0 : i32
    return %c0_i32, %c0_i32_0 : i32, i32
  }
  func.func @transform_5(%arg0: i32) -> (i32, i32, i32, i32) {
    %c0_i32 = arith.constant 0 : i32
    %c0_i32_0 = arith.constant 0 : i32
    %c0_i32_1 = arith.constant 0 : i32
    %c0_i32_2 = arith.constant 0 : i32
    return %arg0, %c0_i32, %c0_i32_0, %c0_i32_1 : i32, i32, i32, i32
  }
}

</mosaic_0001>

<bundles_post_ra>
// kernel: tpu_custom_call.1
= control target key start
LH: loop header
LB: loop body
LE: loop exit
PB: predicated region body
PF: predicated region fallthrough
CT: control target
= control target key end

     0   :  { %s3080_s18 = smov 0   ;;  %s4760_s0 = inlined_call_operand.vmem [shape: f32[2,16,16,4], index: 0, kind: input, shape index: {}]   ;;  %s4761_s1 = inlined_call_operand.vmem [shape: f32[3,3,4], index: 1, kind: input, shape index: {}]   ;;  %s4762_s2 = inlined_call_operand.vmem [shape: bf16[4,4], index: 2, kind: input, shape index: {}]   ;;  %s4763_s3 = inlined_call_operand.vmem [shape: f32[1,4], index: 3, kind: input, shape index: {}]   ;;  %s4764_s4 = inlined_call_operand.vmem [shape: f32[1,4], index: 4, kind: input, shape index: {}]   ;;  %s4765_s5 = inlined_call_operand.vmem [shape: f32[2,16,16,4], index: 5, kind: output, shape index: {}]  }
   0x1 LB: > { %s2919_s19 = sadd.s32 4294967295, %s3047_s18   ;;  %p2923_p0 = scmp.ge.s32.totalorder %s3047_s18, 1  ;;  %s3047_s18 = sphi %s3080_s18, %s15_s18  }
   0x2   : > { %p187_p1 = scmp.lt.s32.totalorder %s3047_s18, 3 }
   0x4   : > { %p188_p2 = pnand %p2923_p0, %p187_p1 }
   0x6   : > { %191 = sbr.rel (%p188_p2) target bundleno = 586 (0x24a), region = 40 }
   0xb   : > { %v336_v0 = vld [vmem:[%s4762_s2] sm:$0x3]  ;;  %vm2705_vm0 = vcmask 1041408   ;;  %p215_p3 = scmp.lt.s32.totalorder %s2919_s19, 1  ;;  %vm226_vm1 = vcmask 31744   ;;  %v3049_v2 = vmov 0.0  }
   0xc   : > { %v2707_v1 = vsel %vm2705_vm0, %v336_v0, 0  ;;  %227 = vst.msk [vmem:[#allocation2] sm:$0xff] %vm226_vm1, %v3049_v2  ;;  %v333_v5 = vld [vmem:[%s4761_s1] sm:$0x7]  ;;  %v334_v9 = vld [vmem:[%s4761_s1 + $0x4] sm:$0x7] }
   0xd   : > { %2716 = vmatpush.bf16.msra.mxu0 %v2707_v1  ;;  %2964 = vmatpush.bf16.msra.mxu1 %v2707_v1  ;;  %s4864_s19 = smov (!%p215_p3, %s2919_s19), 1  ;;  %228 = vst.msk [vmem:[#allocation2 + $0x20] sm:$0xff] %vm226_vm1, %v3049_v2  ;;  %v3123_v7 = vperm.slane %v333_v5, 2  ;;  %v335_v10 = vld [vmem:[%s4761_s1 + $0x8] sm:$0x7]  ;;  %v3135_v12 = vperm.slane %v333_v5, 1 }
   0xe   : > { %2965 = vmatpush.bf16.msra.mxu2 %v2707_v1  ;;  %2966 = vmatpush.bf16.msra.mxu3 %v2707_v1  ;;  %229 = vst.msk [vmem:[#allocation2 + $0x40] sm:$0xff] %vm226_vm1, %v3049_v2  ;;  %s2962_s22 = sshll.u32 %s4864_s19, 8  ;;  %v3140_v15 = vperm.slane %v333_v5, 0  ;;  %vm533_vm2 = vcmask 1046528   ;;  %vm775_vm3 = vcmask 1045504   ;;  %v3143_v17 = vperm.slane %v334_v9, 0 }
   0xf   : > { %245 = vst.msk [vmem:[#allocation2 + $0x18] sm:$0xff] %vm226_vm1, %v3049_v2  ;;  %s3107_s25 = scalar_lea.vmem %s4760_s0, %s2962_s22  ;;  %v3145_v18 = vperm.slane %v334_v9, 1  ;;  %v3149_v20 = vperm.slane %v334_v9, 2  ;;  %v3151_v21 = vperm.slane %v335_v10, 0  ;;  %v3153_v22 = vperm.slane %v335_v10, 1  ;;  %s4636_s17 = scalar_lea.vmem %s4765_s5, %s2962_s22 }
  0x10   : > { %246 = vst.msk [vmem:[#allocation2 + $0x38] sm:$0xff] %vm226_vm1, %v3049_v2  ;;  %v268_v3 = vld [vmem:[%s3107_s25] sm:$0xff]  ;;  %v269_v4 = vld [vmem:[%s3107_s25 + $0x8] sm:$0xff]  ;;  %v270_v6 = vld [vmem:[%s3107_s25 + $0x10] sm:$0xff]  ;;  %v3155_v23 = vperm.slane %v335_v10, 2 }
  0x11   : > { %247 = vst.msk [vmem:[#allocation2 + $0x58] sm:$0xff] %vm226_vm1, %v3049_v2  ;;  %v271_v8 = vld [vmem:[%s3107_s25 + $0x18] sm:$0xff]  ;;  %vm2254_vm4 = vsmask.f32 256  ;;  %vm2255_vm5 = vsmask.f32 4368 }
  0x12   : > { %263 = vst.msk [vmem:[#allocation2 + $0x8] sm:$0xff] %vm226_vm1, %v3049_v2  ;;  %vm3314_vm6 = vmor %vm2254_vm4, %vm2255_vm5 }
  0x13   : > { %264 = vst.msk [vmem:[#allocation2 + $0x10] sm:$0xff] %vm226_vm1, %v3049_v2  ;;  %v347_v13 = vld [vmem:[#allocation2] sm:$0xff] }
  0x14   : > { %301 = vst.msk [vmem:[#allocation2 + $0x28] sm:$0xff] %vm226_vm1, %v268_v3  ;;  %v3138_v14 = vld [vmem:[#allocation2 + $0x20] sm:$0xff]  ;;  %v420_v26 = vmul.f32 %v3140_v15, %v347_v13 }
  0x15   : > { %302 = vst.msk [vmem:[#allocation2 + $0x30] sm:$0xff] %vm226_vm1, %v269_v4  ;;  %v953_v29 = vmul.f32 %v3143_v17, %v3138_v14  ;;  %v3186_v48 = vld [vmem:[#allocation2 + $0x40] sm:$0xff] }
  0x16   : > { %303 = vst.msk [vmem:[#allocation2 + $0x48] sm:$0xff] %vm226_vm1, %v270_v6  ;;  %v350_v11 = vld [vmem:[#allocation2 + $0x18] sm:$0xff]  ;;  %v1532_v3 = vmul.f32 %v3151_v21, %v3186_v48 }
  0x17   : > { %304 = vst.msk [vmem:[#allocation2 + $0x50] sm:$0xff] %vm226_vm1, %v271_v8  ;;  %v681_v16 = vmul.f32 %v3123_v7, %v350_v11  ;;  %v3159_v25 = vld [vmem:[#allocation2 + $0x38] sm:$0xff] }
  0x18   : > { %230 = vst.msk [vmem:[#allocation2 + $0x60] sm:$0xff] %vm226_vm1, %v3049_v2  ;;  %v1261_v43 = vmul.f32 %v3149_v20, %v3159_v25  ;;  %v3188_v49 = vld [vmem:[#allocation2 + $0x58] sm:$0xff] }
  0x19   : > { %v348_v19 = vld [vmem:[#allocation2 + $0x8] sm:$0xff]  ;;  %231 = vst.msk [vmem:[#allocation2 + $0x80] sm:$0xff] %vm226_vm1, %v3049_v2  ;;  %v779_v34 = vrot.slane %v681_v16, 2  ;;  %v1840_v4 = vmul.f32 %v3155_v23, %v3188_v49 }
  0x1a   : > { %v349_v24 = vld [vmem:[#allocation2 + $0x10] sm:$0xff]  ;;  %v469_v27 = vmul.f32 %v3135_v12, %v348_v19  ;;  %v679_v28 = vmul.f32 %v3123_v7, %v348_v19  ;;  %232 = vst.msk [vmem:[#allocation2 + $0xa0] sm:$0xff] %vm226_vm1, %v3049_v2  ;;  %v421_v36 = vmul.f32 %v3140_v15, %v348_v19  ;;  %v1358_v63 = vrot.slane %v1261_v43, 2 }
  0x1b   : > { %v352_v30 = vld [vmem:[#allocation2 + $0x28] sm:$0xff]  ;;  %v422_v31 = vmul.f32 %v3140_v15, %v349_v24  ;;  %v470_v32 = vmul.f32 %v3135_v12, %v349_v24  ;;  %v680_v33 = vmul.f32 %v3123_v7, %v349_v24  ;;  %233 = vst.msk [vmem:[#allocation2 + $0xc0] sm:$0xff] %vm226_vm1, %v3049_v2 }
  0x1c   : > { %v353_v35 = vld [vmem:[#allocation2 + $0x30] sm:$0xff]  ;;  %v534_v37 = vrot.slane %v469_v27, 1  ;;  %v776_v38 = vrot.slane %v679_v28, 2  ;;  %v1050_v39 = vmul.f32 %v3145_v18, %v352_v30  ;;  %234 = vst.msk [vmem:[#allocation2 + $0xe0] sm:$0xff] %vm226_vm1, %v3049_v2  ;;  %v1259_v47 = vmul.f32 %v3149_v20, %v352_v30 }
  0x1d   : > { %v535_v40 = vrot.slane %v470_v32, 1  ;;  %v777_v41 = vrot.slane %v680_v33, 2  ;;  %v1051_v42 = vmul.f32 %v3145_v18, %v353_v35  ;;  %235 = vst.msk [vmem:[#allocation2 + $0x100] sm:$0xff] %vm226_vm1, %v3049_v2  ;;  %v955_v45 = vmul.f32 %v3143_v17, %v353_v35  ;;  %v3195_v54 = vld [vmem:[#allocation2 + $0x48] sm:$0xff] }
  0x1e   : > { %v630_v44 = vadd.f32 %v534_v37, %v420_v26  ;;  %v1114_v46 = vrot.slane %v1050_v39, 1  ;;  %236 = vst.msk [vmem:[#allocation2 + $0x120] sm:$0xff] %vm226_vm1, %v3049_v2  ;;  %v954_v57 = vmul.f32 %v3143_v17, %v352_v30  ;;  %v357_v59 = vld [vmem:[#allocation2 + $0x50] sm:$0xff]  ;;  %v1260_v61 = vmul.f32 %v3149_v20, %v353_v35 }
  0x1f   : > { %v536_v50 = vsel %vm533_vm2, %v534_v37, %v535_v40  ;;  %v632_v51 = vadd.f32 %v535_v40, %v422_v31  ;;  %v778_v52 = vsel %vm775_vm3, %v776_v38, %v777_v41  ;;  %v780_v53 = vsel %vm775_vm3, %v777_v41, %v779_v34  ;;  %237 = vst.msk [vmem:[#allocation2 + $0x140] sm:$0xff] %vm226_vm1, %v3049_v2 }
  0x20   : > { %v631_v55 = vadd.f32 %v536_v50, %v421_v36  ;;  %v904_v56 = vadd.f32 %v776_v38, %v630_v44  ;;  %v1115_v58 = vrot.slane %v1051_v42, 1  ;;  %238 = vst.msk [vmem:[#allocation2 + $0x160] sm:$0xff] %vm226_vm1, %v3049_v2  ;;  %v1355_v62 = vrot.slane %v1259_v47, 2  ;;  %v3241_v44 = vld [vmem:[%s4763_s3] ss:$0 sm:$0xff] }
  0x21   : > { %v906_v60 = vadd.f32 %v780_v53, %v632_v51  ;;  %239 = vst.msk [vmem:[#allocation2 + $0x180] sm:$0xff] %vm226_vm1, %v3049_v2  ;;  %v1356_v8 = vrot.slane %v1260_v61, 2  ;;  %v1533_v9 = vmul.f32 %v3151_v21, %v3195_v54  ;;  %v1534_v13 = vmul.f32 %v3151_v21, %v357_v59 }
  0x22   : > { %v905_v0 = vadd.f32 %v778_v52, %v631_v55  ;;  %v1001_v1 = vadd.f32 %v953_v29, %v904_v56  ;;  %240 = vst.msk [vmem:[#allocation2 + $0x1a0] sm:$0xff] %vm226_vm1, %v3049_v2  ;;  %v1116_v6 = vsel %vm533_vm2, %v1114_v46, %v1115_v58  ;;  %v1629_v16 = vmul.f32 %v3153_v22, %v3195_v54 }
  0x23   : > { %v1003_v5 = vadd.f32 %v955_v45, %v906_v60  ;;  %241 = vst.msk [vmem:[#allocation2 + $0x1c0] sm:$0xff] %vm226_vm1, %v3049_v2  ;;  %v1357_v24 = vsel %vm775_vm3, %v1355_v62, %v1356_v8  ;;  %v1359_v26 = vsel %vm775_vm3, %v1356_v8, %v1358_v63  ;;  %v1630_v27 = vmul.f32 %v3153_v22, %v357_v59 }
  0x24   : > { %v1002_v10 = vadd.f32 %v954_v57, %v905_v0  ;;  %v1210_v11 = vadd.f32 %v1114_v46, %v1001_v1  ;;  %242 = vst.msk [vmem:[#allocation2 + $0x1e0] sm:$0xff] %vm226_vm1, %v3049_v2  ;;  %v1693_v30 = vrot.slane %v1629_v16, 1  ;;  %v1838_v31 = vmul.f32 %v3155_v23, %v3195_v54 }
  0x25   : > { %v1212_v19 = vadd.f32 %v1115_v58, %v1003_v5  ;;  %243 = vst.msk [vmem:[#allocation2 + $0x200] sm:$0xff] %vm226_vm1, %v3049_v2  ;;  %v1694_v33 = vrot.slane %v1630_v27, 1  ;;  %v1839_v34 = vmul.f32 %v3155_v23, %v357_v59  ;;  %v1937_v35 = vrot.slane %v1840_v4, 2 }
  0x26   : > { %v1211_v28 = vadd.f32 %v1116_v6, %v1002_v10  ;;  %v1483_v29 = vadd.f32 %v1355_v62, %v1210_v11  ;;  %244 = vst.msk [vmem:[#allocation2 + $0x220] sm:$0xff] %vm226_vm1, %v3049_v2  ;;  %v1934_v38 = vrot.slane %v1838_v31, 2  ;;  %v3262_v59 = vmul.f32 %v3135_v12, %v3195_v54  ;;  %v275_v6 = vld [vmem:[%s3107_s25 + $0x38] sm:$0xff]  ;;  %v363_v11 = vld [vmem:[#allocation2 + $0x80] sm:$0xff] }
  0x27   : > { %v1485_v32 = vadd.f32 %v1359_v26, %v1212_v19  ;;  %248 = vst.msk [vmem:[#allocation2 + $0x78] sm:$0xff] %vm226_vm1, %v3049_v2  ;;  %v1695_v40 = vsel %vm533_vm2, %v1693_v30, %v1694_v33  ;;  %v1935_v41 = vrot.slane %v1839_v34, 2  ;;  %v3268_v61 = vmul.f32 %v3123_v7, %v3159_v25  ;;  %v274_v25 = vld [vmem:[%s3107_s25 + $0x30] sm:$0xff] }
  0x28   : > { %v1484_v36 = vadd.f32 %v1357_v24, %v1211_v28  ;;  %v1580_v37 = vadd.f32 %v1532_v3, %v1483_v29  ;;  %249 = vst.msk [vmem:[#allocation2 + $0x98] sm:$0xff] %vm226_vm1, %v3049_v2  ;;  %v426_v0 = vmul.f32 %v3140_v15, %v3186_v48  ;;  %v3276_v54 = vmul.f32 %v3123_v7, %v3188_v49 }
  0x29   : > { %v1582_v39 = vadd.f32 %v1534_v13, %v1485_v32  ;;  %250 = vst.msk [vmem:[#allocation2 + $0xb8] sm:$0xff] %vm226_vm1, %v3049_v2  ;;  %v1936_v46 = vsel %vm775_vm3, %v1934_v38, %v1935_v41  ;;  %v1938_v47 = vsel %vm775_vm3, %v1935_v41, %v1937_v35  ;;  %v3280_v1 = vmul.f32 %v3149_v20, %v3188_v49  ;;  %v371_v41 = vld [vmem:[#allocation2 + $0xc0] sm:$0xff] }
  0x2a   : > { %v1581_v42 = vadd.f32 %v1533_v9, %v1484_v36  ;;  %v1789_v43 = vadd.f32 %v1693_v30, %v1580_v37  ;;  %251 = vst.msk [vmem:[#allocation2 + $0xd8] sm:$0xff] %vm226_vm1, %v3049_v2  ;;  %v3290_v8 = vmul.f32 %v3140_v15, %v3138_v14  ;;  %v4766_v49 = vrot.slane %v3262_v59, 1  ;;  %v276_v14 = vld [vmem:[%s3107_s25 + $0x40] sm:$0xff] }
  0x2b   : > { %v1791_v45 = vadd.f32 %v1694_v33, %v1582_v39  ;;  %252 = vst.msk [vmem:[#allocation2 + $0xf8] sm:$0xff] %vm226_vm1, %v3049_v2  ;;  %v3298_v19 = vmul.f32 %v3143_v17, %v3186_v48  ;;  %v277_v48 = vld [vmem:[%s3107_s25 + $0x48] sm:$0xff]  ;;  %v3319_v36 = vld [vmem:[#allocation2 + $0xa0] sm:$0xff]  ;;  %v3322_v37 = vmul.f32 %v3140_v15, %v363_v11 }
  0x2c   : > { %v1790_v50 = vadd.f32 %v1695_v40, %v1581_v42  ;;  %v2062_v51 = vadd.f32 %v1934_v38, %v1789_v43  ;;  %253 = vst.msk [vmem:[#allocation2 + $0x118] sm:$0xff] %vm226_vm1, %v3049_v2  ;;  %v3305_v28 = vadd.f32 %v4766_v49, %v426_v0  ;;  %v278_v40 = vld [vmem:[%s3107_s25 + $0x50] sm:$0xff]  ;;  %v3367_v0 = vmul.f32 %v3151_v21, %v371_v41 }
  0x2d   : > { %v2064_v52 = vadd.f32 %v1938_v47, %v1791_v45  ;;  %254 = vst.msk [vmem:[#allocation2 + $0x138] sm:$0xff] %vm226_vm1, %v3049_v2 }
  0x2e   : > { %v2063_v53 = vadd.f32 %v1936_v46, %v1790_v50  ;;  %v2110_v55 = vadd.f32 %v3241_v44, %v2062_v51  ;;  %255 = vst.msk [vmem:[#allocation2 + $0x158] sm:$0xff] %vm226_vm1, %v3049_v2  ;;  %v379_v46 = vld [vmem:[#allocation2 + $0x100] sm:$0xff]  ;;  %v279_v51 = vld [vmem:[%s3107_s25 + $0x58] sm:$0xff] }
  0x2f   : > { %v2112_v56 = vadd.f32 %v3241_v44, %v2064_v52  ;;  %256 = vst.msk [vmem:[#allocation2 + $0x178] sm:$0xff] %vm226_vm1, %v3049_v2  ;;  %v366_v13 = vld [vmem:[#allocation2 + $0x98] sm:$0xff] }
  0x30   : > { %v2111_v57 = vadd.f32 %v3241_v44, %v2063_v53  ;;  %v2158_v58 = vmax.f32 %v2110_v55, 0.0  ;;  %257 = vst.msk [vmem:[#allocation2 + $0x198] sm:$0xff] %vm226_vm1, %v3049_v2  ;;  %v370_v27 = vld [vmem:[#allocation2 + $0xb8] sm:$0xff]  ;;  %v3348_v55 = vmul.f32 %v3140_v15, %v371_v41 }
  0x31   : > { %4788 = vst [vmem:[#allocation3_spill] sm:$0xff] %v3262_v59  ;;  %v2160_v60 = vmax.f32 %v2112_v56, 0.0  ;;  %v374_v32 = vld [vmem:[#allocation2 + $0xd8] sm:$0xff]  ;;  %v3330_v42 = vmul.f32 %v3123_v7, %v370_v27  ;;  %v3336_v45 = vmul.f32 %v3149_v20, %v370_v27  ;;  %v3352_v56 = vmul.f32 %v3143_v17, %v3319_v36 }
  0x32   : > { %258 = vst.msk [vmem:[#allocation2 + $0x1b8] sm:$0xff] %vm226_vm1, %v3049_v2  ;;  %v2159_v62 = vmax.f32 %v2111_v57, 0.0  ;;  %v2206_v63 = vpack.c.bf16 %v2158_v58, %v2158_v58  ;;  %v3333_v43 = vmul.f32 %v3123_v7, %v374_v32  ;;  %v3341_v52 = vmul.f32 %v3149_v20, %v374_v32  ;;  %v282_v58 = vld [vmem:[%s3107_s25 + $0x70] sm:$0xff] }
  0x33   : > { %259 = vst.msk [vmem:[#allocation2 + $0x1d8] sm:$0xff] %vm226_vm1, %v3049_v2  ;;  %v2208_v3 = vpack.c.bf16 %v2160_v60, %v2160_v60  ;;  %v382_v38 = vld [vmem:[#allocation2 + $0x118] sm:$0xff]  ;;  %v3344_v53 = vmul.f32 %v3155_v23, %v374_v32  ;;  %v3355_v57 = vmul.f32 %v3143_v17, %v371_v41 }
  0x34   : > { %4789 = vst [vmem:[#allocation4_spill] sm:$0xff] %v3276_v54  ;;  %v2207_v4 = vpack.c.bf16 %v2159_v62, %v2159_v62  ;;  %v2258_v5 = vshrl.u32 %v2206_v63, 16  ;;  %v3359_v60 = vmul.f32 %v3123_v7, %v382_v38 }
  0x35   : > { %260 = vst.msk [vmem:[#allocation2 + $0x1f8] sm:$0xff] %vm226_vm1, %v3049_v2  ;;  %v2272_v9 = vshrl.u32 %v2208_v3, 16  ;;  %v2275_v10 = vshll.u32 %v2208_v3, 16  ;;  %v283_v3 = vld [vmem:[%s3107_s25 + $0x78] sm:$0xff] }
  0x36   : > { %261 = vst.msk [vmem:[#allocation2 + $0x218] sm:$0xff] %vm226_vm1, %v3049_v2  ;;  %v2263_v24 = vshrl.u32 %v2207_v4, 16  ;;  %v2266_v26 = vshll.u32 %v2207_v4, 16  ;;  %v2928_v34 = vrot.slane %v2258_v5, 11  ;;  %v3370_v4 = vld [vmem:[#allocation2 + $0x138] sm:$0xff]  ;;  %v3373_v5 = vmul.f32 %v3140_v15, %v379_v46 }
  0x37   : > { %262 = vst.msk [vmem:[#allocation2 + $0x238] sm:$0xff] %vm226_vm1, %v3049_v2  ;;  %v2274_v31 = vrot.slane %v2272_v9, 7 }
  0x38   : > { %266 = vst.msk [vmem:[#allocation2 + $0x228] sm:$0xff] %vm226_vm1, %v3049_v2  ;;  %v2265_v35 = vrot.slane %v2263_v24, 7  ;;  %v395_v24 = vld [vmem:[#allocation2 + $0x180] sm:$0xff] }
  0x39   : > { %4790 = vst [vmem:[#allocation5_spill] sm:$0xff] %v3305_v28  ;;  %v2277_v39 = vor.u32 %v2275_v10, %v2274_v31  ;;  %v295_v28 = vld [vmem:[%s3107_s25 + $0xd8] sm:$0xff] }
  0x3a   : > { %267 = vst.msk [vmem:[#allocation2 + $0x230] sm:$0xff] %vm226_vm1, %v3049_v2  ;;  %v3325_v2 = vmul.f32 %v3123_v7, %v366_v13  ;;  %v2268_v47 = vor.u32 %v2266_v26, %v2265_v35  ;;  %v2270_v50 = vrot.slane %v2265_v35, 4  ;;  %v284_v13 = vld [vmem:[%s3107_s25 + $0x80] sm:$0xff]  ;;  %v286_v35 = vld [vmem:[%s3107_s25 + $0x90] sm:$0xff] }
  0x3b   : > { %307 = vst.msk [vmem:[#allocation2 + $0x88] sm:$0xff] %vm226_vm1, %v274_v25  ;;  %v383_v25 = vld [vmem:[#allocation2 + $0x120] sm:$0xff] }
  0x3c   : > { %308 = vst.msk [vmem:[#allocation2 + $0x90] sm:$0xff] %vm226_vm1, %v275_v6  ;;  %v2269_v62 = vsel %vm3314_vm6, %v2928_v34, %v2268_v47  ;;  %v2278_v63 = vsel %vm3314_vm6, %v2270_v50, %v2277_v39  ;;  %v799_v10 = vrot.slane %v3325_v2, 2  ;;  %v3389_v38 = vmul.f32 %v3143_v17, %v383_v25  ;;  %v287_v50 = vld [vmem:[%s3107_s25 + $0x98] sm:$0xff]  ;;  %v294_v2 = vld [vmem:[%s3107_s25 + $0xd0] sm:$0xff] }
  0x3d   : > { %4793 = vst [vmem:[#allocation6_spill] sm:$0xff] %v3333_v43  ;;  %v2609_v6 = vunpack.c.l.b16 %v2269_v62  ;;  %v2610_v9 = vunpack.c.l.b16 %v2278_v63  ;;  %v3393_v39 = vmul.f32 %v3149_v20, %v3370_v4 }
  0x3e   : > { %309 = vst.msk [vmem:[#allocation2 + $0xa8] sm:$0xff] %vm226_vm1, %v276_v14 }
  0x3f   : > { %310 = vst.msk [vmem:[#allocation2 + $0xb0] sm:$0xff] %vm226_vm1, %v277_v48  ;;  %v285_v48 = vld [vmem:[%s3107_s25 + $0x88] sm:$0xff]  ;;  %v2641_v32 = vpack.c.b16 %v2610_v9, %v2609_v6  ;;  %v290_v6 = vld [vmem:[%s3107_s25 + $0xb0] sm:$0xff] }
  0x40   : > { %311 = vst.msk [vmem:[#allocation2 + $0xc8] sm:$0xff] %vm226_vm1, %v278_v40 }
  0x41   : > { %312 = vst.msk [vmem:[#allocation2 + $0xd0] sm:$0xff] %vm226_vm1, %v279_v51  ;;  %v3401_v51 = vmul.f32 %v3140_v15, %v395_v24  ;;  %2944 = vmatmul.msk.bf16.vlgmr.msra.gmra.mxu0 %vm226_vm1, %v2641_v32 }
  0x42   : > { %315 = vst.msk [vmem:[#allocation2 + $0x108] sm:$0xff] %vm226_vm1, %v282_v58  ;;  %v364_v34 = vld [vmem:[#allocation2 + $0x88] sm:$0xff] }
  0x43   : > { %316 = vst.msk [vmem:[#allocation2 + $0x110] sm:$0xff] %vm226_vm1, %v283_v3  ;;  %v365_v40 = vld [vmem:[#allocation2 + $0x90] sm:$0xff]  ;;  %v433_v41 = vmul.f32 %v3140_v15, %v364_v34  ;;  %v477_v46 = vmul.f32 %v3135_v12, %v364_v34  ;;  %v691_v47 = vmul.f32 %v3123_v7, %v364_v34 }
  0x44   : > { %317 = vst.msk [vmem:[#allocation2 + $0x128] sm:$0xff] %vm226_vm1, %v284_v13  ;;  %v434_v62 = vmul.f32 %v3140_v15, %v365_v40  ;;  %v478_v63 = vmul.f32 %v3135_v12, %v365_v40  ;;  %v692_v3 = vmul.f32 %v3123_v7, %v365_v40  ;;  %v291_v40 = vld [vmem:[%s3107_s25 + $0xb8] sm:$0xff] }
  0x45   : > { %v3404_v58 = vld [vmem:[#allocation2 + $0xa8] sm:$0xff]  ;;  %318 = vst.msk [vmem:[#allocation2 + $0x130] sm:$0xff] %vm226_vm1, %v285_v48  ;;  %v546_v13 = vrot.slane %v477_v46, 1  ;;  %v796_v24 = vrot.slane %v691_v47, 2  ;;  %v292_v47 = vld [vmem:[%s3107_s25 + $0xc0] sm:$0xff] }
  0x46   : > { %v3412_v9 = vld [vmem:[#allocation2 + $0xb0] sm:$0xff]  ;;  %v966_v32 = vmul.f32 %v3143_v17, %v3404_v58  ;;  %v1058_v34 = vmul.f32 %v3145_v18, %v3404_v58  ;;  %319 = vst.msk [vmem:[#allocation2 + $0x148] sm:$0xff] %vm226_vm1, %v286_v35  ;;  %v547_v48 = vrot.slane %v478_v63, 1  ;;  %v797_v29 = vrot.slane %v692_v3, 2  ;;  %v293_v3 = vld [vmem:[%s3107_s25 + $0xc8] sm:$0xff] }
  0x47   : > { %v3420_v26 = vld [vmem:[#allocation2 + $0xc8] sm:$0xff]  ;;  %v967_v49 = vmul.f32 %v3143_v17, %v3412_v9  ;;  %v1059_v46 = vmul.f32 %v3145_v18, %v3412_v9  ;;  %320 = vst.msk [vmem:[#allocation2 + $0x150] sm:$0xff] %vm226_vm1, %v287_v50  ;;  %v642_v35 = vadd.f32 %v546_v13, %v3322_v37  ;;  %v1271_v63 = vmul.f32 %v3149_v20, %v3404_v58 }
  0x48   : > { %v3430_v27 = vmul.f32 %v3135_v12, %v3420_v26  ;;  %v1126_v11 = vrot.slane %v1058_v34, 1  ;;  %323 = vst.msk [vmem:[#allocation2 + $0x188] sm:$0xff] %vm226_vm1, %v290_v6  ;;  %v548_v30 = vsel %vm533_vm2, %v546_v13, %v547_v48  ;;  %v644_v16 = vadd.f32 %v547_v48, %v434_v62  ;;  %v3442_v31 = vld [vmem:[#allocation2 + $0xd0] sm:$0xff] }
  0x49   : > { %v798_v50 = vsel %vm775_vm3, %v796_v24, %v797_v29  ;;  %v800_v25 = vsel %vm775_vm3, %v797_v29, %v799_v10  ;;  %324 = vst.msk [vmem:[#allocation2 + $0x190] sm:$0xff] %vm226_vm1, %v291_v40  ;;  %v643_v34 = vadd.f32 %v548_v30, %v433_v41  ;;  %v916_v14 = vadd.f32 %v796_v24, %v642_v35 }
  0x4a   : > { %4794 = vst [vmem:[#allocation7_spill] sm:$0xff] %v3430_v27  ;;  %v4769_v37 = vrot.slane %v3430_v27, 1  ;;  %v1127_v43 = vrot.slane %v1059_v46, 1  ;;  %v918_v6 = vadd.f32 %v800_v25, %v644_v16  ;;  %v1272_v62 = vmul.f32 %v3149_v20, %v3412_v9 }
  0x4b   : > { %325 = vst.msk [vmem:[#allocation2 + $0x1a8] sm:$0xff] %vm226_vm1, %v292_v47  ;;  %v1375_v13 = vrot.slane %v1271_v63, 2  ;;  %v1545_v29 = vmul.f32 %v3151_v21, %v3420_v26  ;;  %v917_v30 = vadd.f32 %v798_v50, %v643_v34  ;;  %v1013_v41 = vadd.f32 %v3352_v56, %v916_v14 }
  0x4c   : > { %326 = vst.msk [vmem:[#allocation2 + $0x1b0] sm:$0xff] %vm226_vm1, %v293_v3  ;;  %v3455_v10 = vadd.f32 %v4769_v37, %v3348_v55  ;;  %v1128_v24 = vsel %vm533_vm2, %v1126_v11, %v1127_v43  ;;  %v1015_v16 = vadd.f32 %v967_v49, %v918_v6  ;;  %v1376_v25 = vrot.slane %v1272_v62, 2 }
  0x4d   : > { %327 = vst.msk [vmem:[#allocation2 + $0x1c8] sm:$0xff] %vm226_vm1, %v294_v2  ;;  %v1546_v40 = vmul.f32 %v3151_v21, %v3442_v31  ;;  %v1637_v48 = vmul.f32 %v3153_v22, %v3420_v26  ;;  %v1014_v46 = vadd.f32 %v966_v32, %v917_v30  ;;  %v1222_v55 = vadd.f32 %v1126_v11, %v1013_v41  ;;  %v380_v11 = vld [vmem:[#allocation2 + $0x108] sm:$0xff]  ;;  %v381_v32 = vld [vmem:[#allocation2 + $0x110] sm:$0xff] }
  0x4e   : > { %4795 = vst [vmem:[#allocation8_spill] sm:$0xff] %v3455_v10  ;;  %v1638_v47 = vmul.f32 %v3153_v22, %v3442_v31  ;;  %v1850_v56 = vmul.f32 %v3155_v23, %v3420_v26  ;;  %v1224_v14 = vadd.f32 %v1127_v43, %v1015_v16  ;;  %v1377_v49 = vsel %vm775_vm3, %v1375_v13, %v1376_v25 }
  0x4f   : > { %328 = vst.msk [vmem:[#allocation2 + $0x1d0] sm:$0xff] %vm226_vm1, %v295_v28  ;;  %v4796_v2 = vrot.slane %v3336_v45, 2  ;;  %v1705_v63 = vrot.slane %v1637_v48, 1  ;;  %v1223_v3 = vadd.f32 %v1128_v24, %v1014_v46  ;;  %v1495_v50 = vadd.f32 %v1375_v13, %v1222_v55  ;;  %v3479_v24 = vld [vmem:[#allocation2 + $0x140] sm:$0xff] }
  0x50   : > { %v1706_v34 = vrot.slane %v1638_v47, 1  ;;  %v1851_v28 = vmul.f32 %v3155_v23, %v3442_v31  ;;  %v1954_v62 = vrot.slane %v1850_v56, 2  ;;  %v445_v30 = vmul.f32 %v3140_v15, %v380_v11 }
  0x51   : > { %v1379_v35 = vsel %vm775_vm3, %v1376_v25, %v4796_v2  ;;  %v446_v43 = vmul.f32 %v3140_v15, %v381_v32  ;;  %v1496_v41 = vadd.f32 %v1377_v49, %v1223_v3  ;;  %v1592_v45 = vadd.f32 %v3367_v0, %v1495_v50  ;;  %v3489_v2 = vld [vmem:[#allocation2 + $0x148] sm:$0xff] }
  0x52   : > { %v1497_v6 = vadd.f32 %v1379_v35, %v1224_v14  ;;  %v1707_v16 = vsel %vm533_vm2, %v1705_v63, %v1706_v34  ;;  %v1955_v25 = vrot.slane %v1851_v28, 2  ;;  %v450_v48 = vmul.f32 %v3140_v15, %v3479_v24 }
  0x53   : > { %v485_v46 = vmul.f32 %v3135_v12, %v380_v11  ;;  %v486_v55 = vmul.f32 %v3135_v12, %v381_v32  ;;  %v1593_v47 = vadd.f32 %v1545_v29, %v1496_v41  ;;  %v1801_v56 = vadd.f32 %v1705_v63, %v1592_v45 }
  0x54   : > { %v1594_v13 = vadd.f32 %v1546_v40, %v1497_v6  ;;  %v1956_v14 = vsel %vm775_vm3, %v1954_v62, %v1955_v25  ;;  %v4797_v49 = vrot.slane %v3344_v53, 2  ;;  %v3493_v40 = vmul.f32 %v3135_v12, %v3489_v2 }
  0x55   : > { %v558_v3 = vrot.slane %v485_v46, 1  ;;  %v559_v50 = vrot.slane %v486_v55, 1  ;;  %v1802_v28 = vadd.f32 %v1707_v16, %v1593_v47  ;;  %v2074_v6 = vadd.f32 %v1954_v62, %v1801_v56  ;;  %v3503_v46 = vld [vmem:[#allocation2 + $0x158] sm:$0xff] }
  0x56   : > { %v1958_v0 = vsel %vm775_vm3, %v1955_v25, %v4797_v49  ;;  %v1803_v35 = vadd.f32 %v1706_v34, %v1594_v13  ;;  %4798 = vst [vmem:[#allocation9_spill] sm:$0xff] %v3493_v40  ;;  %v703_v29 = vmul.f32 %v3123_v7, %v380_v11  ;;  %v704_v63 = vmul.f32 %v3123_v7, %v381_v32  ;;  %v3501_v49 = vld [vmem:[#allocation2 + $0x128] sm:$0xff] }
  0x57   : > { %v560_v53 = vsel %vm533_vm2, %v558_v3, %v559_v50  ;;  %v4768_v45 = vrot.slane %v3493_v40, 1  ;;  %v654_v25 = vadd.f32 %v558_v3, %v3373_v5  ;;  %v2075_v34 = vadd.f32 %v1956_v14, %v1802_v28  ;;  %v402_v40 = vld [vmem:[#allocation2 + $0x1b8] sm:$0xff] }
  0x58   : > { %v2076_v41 = vadd.f32 %v1958_v0, %v1803_v35  ;;  %v2122_v13 = vadd.f32 %v3241_v44, %v2074_v6  ;;  %v655_v16 = vadd.f32 %v560_v53, %v445_v30  ;;  %v656_v62 = vadd.f32 %v559_v50, %v446_v43  ;;  %v3519_v0 = vld [vmem:[#allocation2 + $0x130] sm:$0xff] }
  0x59   : > { %v3508_v32 = vadd.f32 %v4768_v45, %v450_v48  ;;  %v3512_v55 = vmul.f32 %v3123_v7, %v3370_v4  ;;  %v3516_v5 = vmul.f32 %v3123_v7, %v3503_v46  ;;  %v2123_v47 = vadd.f32 %v3241_v44, %v2075_v34 }
  0x5a   : > { %v2124_v11 = vadd.f32 %v3241_v44, %v2076_v41  ;;  %v2170_v56 = vmax.f32 %v2122_v13, 0.0  ;;  %v816_v14 = vrot.slane %v703_v29, 2  ;;  %v817_v30 = vrot.slane %v704_v63, 2 }
  0x5b   : > { %4799 = vst [vmem:[#allocation10_spill] sm:$0xff] %v3508_v32  ;;  %v978_v4 = vmul.f32 %v3143_v17, %v3501_v49  ;;  %v2171_v3 = vmax.f32 %v2123_v47, 0.0  ;;  %v4801_v6 = vrot.slane %v3359_v60, 2  ;;  %v979_v48 = vmul.f32 %v3143_v17, %v3519_v0 }
  0x5c   : > { %4800 = vst [vmem:[#allocation11_spill] sm:$0xff] %v3516_v5  ;;  %v2172_v43 = vmax.f32 %v2124_v11, 0.0  ;;  %v2218_v50 = vpack.c.bf16 %v2170_v56, %v2170_v56  ;;  %v818_v28 = vsel %vm775_vm3, %v816_v14, %v817_v30  ;;  %v928_v63 = vadd.f32 %v816_v14, %v654_v25 }
  0x5d   : > { %v820_v41 = vsel %vm775_vm3, %v817_v30, %v4801_v6  ;;  %v929_v53 = vadd.f32 %v818_v28, %v655_v16  ;;  %v2219_v13 = vpack.c.bf16 %v2171_v3, %v2171_v3  ;;  %v3533_v45 = vmul.f32 %v3143_v17, %v3479_v24 }
  0x5e   : > { %v2220_v29 = vpack.c.bf16 %v2172_v43, %v2172_v43  ;;  %v930_v34 = vadd.f32 %v820_v41, %v656_v62  ;;  %v2346_v11 = vshrl.u32 %v2218_v50, 16  ;;  %v1025_v37 = vadd.f32 %v3389_v38, %v928_v63 }
  0x5f   : > { %v1026_v60 = vadd.f32 %v978_v4, %v929_v53  ;;  %v2351_v30 = vshrl.u32 %v2219_v13, 16  ;;  %v2354_v43 = vshll.u32 %v2219_v13, 16  ;;  %v1066_v62 = vmul.f32 %v3145_v18, %v3501_v49 }
  0x60   : > { %v2360_v47 = vshrl.u32 %v2220_v29, 16  ;;  %v2363_v56 = vshll.u32 %v2220_v29, 16  ;;  %v2932_v35 = vrot.slane %v2346_v11, 11  ;;  %v1027_v25 = vadd.f32 %v979_v48, %v930_v34  ;;  %v3551_v11 = vld [vmem:[#allocation2 + $0x150] sm:$0xff] }
  0x61   : > { %v1067_v14 = vmul.f32 %v3145_v18, %v3519_v0  ;;  %v1283_v3 = vmul.f32 %v3149_v20, %v3501_v49  ;;  %v2353_v50 = vrot.slane %v2351_v30, 7  ;;  %v1284_v28 = vmul.f32 %v3149_v20, %v3519_v0 }
  0x62   : > { %v2362_v16 = vrot.slane %v2360_v47, 7  ;;  %v3546_v38 = vmul.f32 %v3149_v20, %v3503_v46  ;;  %v1556_v48 = vmul.f32 %v3151_v21, %v3479_v24  ;;  %v1138_v6 = vrot.slane %v1066_v62, 1 }
  0x63   : > { %v1139_v41 = vrot.slane %v1067_v14, 1  ;;  %v1395_v29 = vrot.slane %v1283_v3, 2  ;;  %v2356_v63 = vor.u32 %v2354_v43, %v2353_v50  ;;  %v2358_v53 = vrot.slane %v2353_v50, 4 }
  0x64   : > { %v2365_v4 = vor.u32 %v2363_v56, %v2362_v16  ;;  %v1396_v34 = vrot.slane %v1284_v28, 2  ;;  %v1234_v30 = vadd.f32 %v1138_v6, %v1025_v37  ;;  %v1557_v24 = vmul.f32 %v3151_v21, %v3489_v2 }
  0x65   : > { %v1140_v47 = vsel %vm533_vm2, %v1138_v6, %v1139_v41  ;;  %v1236_v32 = vadd.f32 %v1139_v41, %v1027_v25  ;;  %v2357_v56 = vsel %vm3314_vm6, %v2932_v35, %v2356_v63  ;;  %v4802_v50 = vrot.slane %v3393_v39, 2  ;;  %v272_v63 = vld [vmem:[%s3107_s25 + $0x20] sm:$0xff] }
  0x66   : > { %v2366_v43 = vsel %vm3314_vm6, %v2358_v53, %v2365_v4  ;;  %v1235_v16 = vadd.f32 %v1140_v47, %v1026_v60  ;;  %v1397_v62 = vsel %vm775_vm3, %v1395_v29, %v1396_v34  ;;  %v2617_v14 = vunpack.c.l.b16 %v2357_v56  ;;  %v273_v4 = vld [vmem:[%s3107_s25 + $0x28] sm:$0xff]  ;;  %305 = vst.msk [vmem:[#allocation2 + $0x68] sm:$0xff] %vm226_vm1, %v272_v63 }
  0x67   : > { %v2618_v3 = vunpack.c.l.b16 %v2366_v43  ;;  %v1399_v37 = vsel %vm775_vm3, %v1396_v34, %v4802_v50  ;;  %v1507_v28 = vadd.f32 %v1395_v29, %v1234_v30  ;;  %v1558_v41 = vmul.f32 %v3151_v21, %v3551_v11  ;;  %v396_v56 = vld [vmem:[#allocation2 + $0x188] sm:$0xff]  ;;  %306 = vst.msk [vmem:[#allocation2 + $0x70] sm:$0xff] %vm226_vm1, %v273_v4 }
  0x68   : > { %v1508_v25 = vadd.f32 %v1397_v62, %v1235_v16  ;;  %v1509_v6 = vadd.f32 %v1399_v37, %v1236_v32  ;;  %v1645_v35 = vmul.f32 %v3153_v22, %v3489_v2  ;;  %v1646_v47 = vmul.f32 %v3153_v22, %v3551_v11  ;;  %v397_v62 = vld [vmem:[#allocation2 + $0x190] sm:$0xff] }
  0x69   : > { %v2645_v60 = vpack.c.b16 %v2618_v3, %v2617_v14  ;;  %v1604_v53 = vadd.f32 %v1556_v48, %v1507_v28  ;;  %v1862_v39 = vmul.f32 %v3155_v23, %v3489_v2  ;;  %v1863_v30 = vmul.f32 %v3155_v23, %v3551_v11  ;;  %v3581_v14 = vld [vmem:[#allocation2 + $0x1c0] sm:$0xff] }
  0x6a   : > { %v1605_v29 = vadd.f32 %v1557_v24, %v1508_v25  ;;  %v1606_v32 = vadd.f32 %v1558_v41, %v1509_v6  ;;  %v1717_v34 = vrot.slane %v1645_v35, 1  ;;  %v1718_v48 = vrot.slane %v1646_v47, 1  ;;  %v3590_v47 = vld [vmem:[#allocation2 + $0x1c8] sm:$0xff] }
  0x6b   : > { %2948 = vmatmul.msk.bf16.vlgmr.msra.gmra.mxu1 %vm226_vm1, %v2645_v60  ;;  %v1864_v43 = vmul.f32 %v3155_v23, %v3503_v46  ;;  %v1974_v16 = vrot.slane %v1862_v39, 2  ;;  %v457_v24 = vmul.f32 %v3140_v15, %v396_v56  ;;  %v1975_v50 = vrot.slane %v1863_v30, 2  ;;  %v398_v60 = vld [vmem:[#allocation2 + $0x198] sm:$0xff] }
  0x6c   : > { %v1813_v3 = vadd.f32 %v1717_v34, %v1604_v53  ;;  %v458_v37 = vmul.f32 %v3140_v15, %v397_v62  ;;  %v462_v28 = vmul.f32 %v3140_v15, %v3581_v14  ;;  %v1719_v25 = vsel %vm533_vm2, %v1717_v34, %v1718_v48 }
  0x6d   : > { %v1815_v6 = vadd.f32 %v1718_v48, %v1606_v32  ;;  %v1977_v41 = vrot.slane %v1864_v43, 2  ;;  %v493_v35 = vmul.f32 %v3135_v12, %v396_v56  ;;  %v1814_v46 = vadd.f32 %v1719_v25, %v1605_v29 }
  0x6e   : > { %v1976_v63 = vsel %vm775_vm3, %v1974_v16, %v1975_v50  ;;  %v2086_v4 = vadd.f32 %v1974_v16, %v1813_v3  ;;  %v494_v53 = vmul.f32 %v3135_v12, %v397_v62  ;;  %v3596_v30 = vmul.f32 %v3135_v12, %v3590_v47 }
  0x6f   : > { %v1978_v39 = vsel %vm775_vm3, %v1975_v50, %v1977_v41  ;;  %v570_v34 = vrot.slane %v493_v35, 1  ;;  %v715_v32 = vmul.f32 %v3123_v7, %v396_v56  ;;  %v2087_v48 = vadd.f32 %v1976_v63, %v1814_v46 }
  0x70   : > { %4803 = vst [vmem:[#allocation12_spill] sm:$0xff] %v3596_v30  ;;  %v2088_v43 = vadd.f32 %v1978_v39, %v1815_v6  ;;  %v2134_v29 = vadd.f32 %v3241_v44, %v2086_v4  ;;  %v571_v25 = vrot.slane %v494_v53, 1  ;;  %v4772_v16 = vrot.slane %v3596_v30, 1  ;;  %v3607_v6 = vld [vmem:[#allocation2 + $0x1d8] sm:$0xff]  ;;  %v3616_v39 = vld [vmem:[#allocation2 + $0x1a0] sm:$0xff] }
  0x71   : > { %v666_v3 = vadd.f32 %v570_v34, %v3401_v51  ;;  %v716_v13 = vmul.f32 %v3123_v7, %v397_v62  ;;  %v717_v50 = vmul.f32 %v3123_v7, %v398_v60  ;;  %v2135_v41 = vadd.f32 %v3241_v44, %v2087_v48 }
  0x72   : > { %v2136_v5 = vadd.f32 %v3241_v44, %v2088_v43  ;;  %v2182_v35 = vmax.f32 %v2134_v29, 0.0  ;;  %v572_v56 = vsel %vm533_vm2, %v570_v34, %v571_v25  ;;  %v668_v63 = vadd.f32 %v571_v25, %v458_v37  ;;  %v280_v29 = vld [vmem:[%s3107_s25 + $0x60] sm:$0xff] }
  0x73   : > { %v667_v46 = vadd.f32 %v572_v56, %v457_v24  ;;  %v3611_v51 = vadd.f32 %v4772_v16, %v462_v28  ;;  %v3614_v62 = vmul.f32 %v3123_v7, %v402_v40  ;;  %v2183_v4 = vmax.f32 %v2135_v41, 0.0  ;;  %v281_v28 = vld [vmem:[%s3107_s25 + $0x68] sm:$0xff]  ;;  %313 = vst.msk [vmem:[#allocation2 + $0xe8] sm:$0xff] %vm226_vm1, %v280_v29  ;;  %v3629_v41 = vld [vmem:[#allocation2 + $0x1b0] sm:$0xff] }
  0x74   : > { %v2184_v60 = vmax.f32 %v2136_v5, 0.0  ;;  %v2230_v53 = vpack.c.bf16 %v2182_v35, %v2182_v35  ;;  %v3620_v34 = vmul.f32 %v3123_v7, %v3607_v6  ;;  %v836_v48 = vrot.slane %v715_v32, 2  ;;  %314 = vst.msk [vmem:[#allocation2 + $0xf0] sm:$0xff] %vm226_vm1, %v281_v28 }
  0x75   : > { %4804 = vst [vmem:[#allocation13_spill] sm:$0xff] %v3611_v51  ;;  %v837_v43 = vrot.slane %v716_v13, 2  ;;  %v839_v24 = vrot.slane %v717_v50, 2  ;;  %v2231_v25 = vpack.c.bf16 %v2183_v4, %v2183_v4  ;;  %v3625_v51 = vld [vmem:[#allocation2 + $0x1a8] sm:$0xff]  ;;  %v989_v50 = vmul.f32 %v3143_v17, %v3616_v39 }
  0x76   : > { %4805 = vst [vmem:[#allocation14_spill] sm:$0xff] %v3614_v62  ;;  %v2232_v56 = vpack.c.bf16 %v2184_v60, %v2184_v60  ;;  %v2434_v16 = vshrl.u32 %v2230_v53, 16  ;;  %v940_v32 = vadd.f32 %v836_v48, %v666_v3  ;;  %v990_v29 = vmul.f32 %v3143_v17, %v3625_v51 }
  0x77   : > { %4806 = vst [vmem:[#allocation15_spill] sm:$0xff] %v3620_v34  ;;  %v838_v35 = vsel %vm775_vm3, %v836_v48, %v837_v43  ;;  %v840_v13 = vsel %vm775_vm3, %v837_v43, %v839_v24  ;;  %v2439_v60 = vshrl.u32 %v2231_v25, 16  ;;  %v2442_v53 = vshll.u32 %v2231_v25, 16 }
  0x78   : > { %v2936_v4 = vrot.slane %v2434_v16, 11  ;;  %v2448_v37 = vshrl.u32 %v2232_v56, 16  ;;  %v2451_v30 = vshll.u32 %v2232_v56, 16  ;;  %v941_v5 = vadd.f32 %v838_v35, %v667_v46 }
  0x79   : > { %v942_v34 = vadd.f32 %v840_v13, %v668_v63  ;;  %v2441_v10 = vrot.slane %v2439_v60, 7  ;;  %v991_v3 = vmul.f32 %v3143_v17, %v3629_v41  ;;  %v3642_v48 = vmul.f32 %v3143_v17, %v3581_v14 }
  0x7a   : > { %v2450_v27 = vrot.slane %v2448_v37, 7  ;;  %v1037_v43 = vadd.f32 %v989_v50, %v940_v32  ;;  %v1038_v16 = vadd.f32 %v990_v29, %v941_v5  ;;  %v1074_v24 = vmul.f32 %v3145_v18, %v3625_v51 }
  0x7b   : > { %4807 = vst [vmem:[#allocation16_spill] sm:$0xff] %v3642_v48  ;;  %v1075_v46 = vmul.f32 %v3145_v18, %v3629_v41  ;;  %v2444_v63 = vor.u32 %v2442_v53, %v2441_v10  ;;  %v2446_v28 = vrot.slane %v2441_v10, 4  ;;  %v1039_v56 = vadd.f32 %v991_v3, %v942_v34  ;;  %v3661_v34 = vld [vmem:[#allocation2 + $0x1d0] sm:$0xff] }
  0x7c   : > { %v2453_v25 = vor.u32 %v2451_v30, %v2450_v27  ;;  %v1150_v37 = vrot.slane %v1074_v24, 1  ;;  %v1295_v13 = vmul.f32 %v3149_v20, %v3625_v51  ;;  %v1296_v60 = vmul.f32 %v3149_v20, %v3629_v41  ;;  %4809 = vst [vmem:[#allocation18_spill] sm:$0xff] %v3661_v34 }
  0x7d   : > { %v1151_v35 = vrot.slane %v1075_v46, 1  ;;  %v2445_v5 = vsel %vm3314_vm6, %v2936_v4, %v2444_v63  ;;  %v1297_v50 = vmul.f32 %v3149_v20, %v402_v40  ;;  %v3659_v27 = vmul.f32 %v3149_v20, %v3607_v6 }
  0x7e   : > { %v2454_v32 = vsel %vm3314_vm6, %v2446_v28, %v2453_v25  ;;  %v2625_v10 = vunpack.c.l.b16 %v2445_v5  ;;  %v1246_v29 = vadd.f32 %v1150_v37, %v1037_v43  ;;  %v1415_v46 = vrot.slane %v1295_v13, 2 }
  0x7f   : > { %4808 = vst [vmem:[#allocation17_spill] sm:$0xff] %v3659_v27  ;;  %v2626_v30 = vunpack.c.l.b16 %v2454_v32  ;;  %v1152_v53 = vsel %vm533_vm2, %v1150_v37, %v1151_v35  ;;  %v1248_v24 = vadd.f32 %v1151_v35, %v1039_v56  ;;  %v1416_v4 = vrot.slane %v1296_v60, 2 }
  0x80   : > { %v1247_v3 = vadd.f32 %v1152_v53, %v1038_v16  ;;  %v1418_v54 = vrot.slane %v1297_v50, 2  ;;  %v1568_v40 = vmul.f32 %v3151_v21, %v3581_v14  ;;  %v1519_v5 = vadd.f32 %v1415_v46, %v1246_v29 }
  0x81   : > { %v2649_v63 = vpack.c.b16 %v2626_v30, %v2625_v10  ;;  %v1417_v25 = vsel %vm775_vm3, %v1415_v46, %v1416_v4  ;;  %v1569_v32 = vmul.f32 %v3151_v21, %v3590_v47  ;;  %v1570_v43 = vmul.f32 %v3151_v21, %v3661_v34 }
  0x82   : > { %v1419_v16 = vsel %vm775_vm3, %v1416_v4, %v1418_v54  ;;  %v1520_v56 = vadd.f32 %v1417_v25, %v1247_v3  ;;  %v1653_v37 = vmul.f32 %v3153_v22, %v3590_v47  ;;  %v1654_v14 = vmul.f32 %v3153_v22, %v3661_v34  ;;  %v2978_v4 = vld [vmem:[#allocation2 + $0x28] sm:$0xff] }
  0x83   : > { %2952 = vmatmul.msk.bf16.vlgmr.msra.gmra.mxu2 %vm226_vm1, %v2649_v63  ;;  %v1521_v35 = vadd.f32 %v1419_v16, %v1248_v24  ;;  %v1616_v13 = vadd.f32 %v1568_v40, %v1519_v5  ;;  %v1874_v60 = vmul.f32 %v3155_v23, %v3590_v47  ;;  %v1875_v50 = vmul.f32 %v3155_v23, %v3661_v34  ;;  %v3686_v5 = vld [vmem:[#allocation2 + $0x60] sm:$0xff]  ;;  %v2979_v16 = vld [vmem:[#allocation2 + $0x30] sm:$0xff] }
  0x84   : > { %v1617_v10 = vadd.f32 %v1569_v32, %v1520_v56  ;;  %v1729_v30 = vrot.slane %v1653_v37, 1  ;;  %v1730_v53 = vrot.slane %v1654_v14, 1  ;;  %v1876_v54 = vmul.f32 %v3155_v23, %v3607_v6 }
  0x85   : > { %v1618_v29 = vadd.f32 %v1570_v43, %v1521_v35  ;;  %v1994_v3 = vrot.slane %v1874_v60, 2  ;;  %v1995_v46 = vrot.slane %v1875_v50, 2  ;;  %v424_v63 = vmul.f32 %v2978_v4, %v3140_v15  ;;  %v3693_v60 = vld [vmem:[#allocation2 + $0x68] sm:$0xff] }
  0x86   : > { %v1731_v24 = vsel %vm533_vm2, %v1729_v30, %v1730_v53  ;;  %v1825_v40 = vadd.f32 %v1729_v30, %v1616_v13  ;;  %v1997_v25 = vrot.slane %v1876_v54, 2  ;;  %v425_v32 = vmul.f32 %v2979_v16, %v3140_v15 }
  0x87   : > { %v1826_v56 = vadd.f32 %v1731_v24, %v1617_v10  ;;  %v1827_v37 = vadd.f32 %v1730_v53, %v1618_v29  ;;  %v1996_v14 = vsel %vm775_vm3, %v1994_v3, %v1995_v46  ;;  %v429_v6 = vmul.f32 %v3140_v15, %v3686_v5 }
  0x88   : > { %v1998_v43 = vsel %vm775_vm3, %v1995_v46, %v1997_v25  ;;  %v2098_v35 = vadd.f32 %v1994_v3, %v1825_v40  ;;  %v471_v13 = vmul.f32 %v2978_v4, %v3135_v12  ;;  %v472_v50 = vmul.f32 %v2979_v16, %v3135_v12  ;;  %v3703_v46 = vld [vmem:[#allocation2 + $0x78] sm:$0xff] }
  0x89   : > { %v2099_v30 = vadd.f32 %v1996_v14, %v1826_v56  ;;  %v2100_v54 = vadd.f32 %v1998_v43, %v1827_v37  ;;  %v3699_v10 = vmul.f32 %v3135_v12, %v3693_v60  ;;  %v682_v53 = vmul.f32 %v2978_v4, %v3123_v7  ;;  %v288_v14 = vld [vmem:[%s3107_s25 + $0xa0] sm:$0xff]  ;;  %v289_v4 = vld [vmem:[%s3107_s25 + $0xa8] sm:$0xff] }
  0x8a   : > { %v2146_v29 = vadd.f32 %v3241_v44, %v2098_v35  ;;  %v537_v3 = vrot.slane %v471_v13, 1  ;;  %v538_v24 = vrot.slane %v472_v50, 1  ;;  %v683_v40 = vmul.f32 %v2979_v16, %v3123_v7  ;;  %321 = vst.msk [vmem:[#allocation2 + $0x168] sm:$0xff] %vm226_vm1, %v288_v14 }
  0x8b   : > { %v2147_v25 = vadd.f32 %v3241_v44, %v2099_v30  ;;  %v2148_v28 = vadd.f32 %v3241_v44, %v2100_v54  ;;  %v4782_v56 = vrot.slane %v3699_v10, 1  ;;  %v3711_v37 = vmul.f32 %v3123_v7, %v3703_v46  ;;  %322 = vst.msk [vmem:[#allocation2 + $0x170] sm:$0xff] %vm226_vm1, %v289_v4 }
  0x8c   : > { %v2194_v43 = vmax.f32 %v2146_v29, 0.0  ;;  %v539_v35 = vsel %vm533_vm2, %v537_v3, %v538_v24  ;;  %v633_v13 = vadd.f32 %v537_v3, %v3290_v8  ;;  %v635_v50 = vadd.f32 %v538_v24, %v425_v32  ;;  %v3724_v8 = vld [vmem:[#allocation2 + $0x48] sm:$0xff] }
  0x8d   : > { %4810 = vst [vmem:[#allocation19_spill] sm:$0xff] %v3711_v37  ;;  %v2195_v16 = vmax.f32 %v2147_v25, 0.0  ;;  %v2196_v30 = vmax.f32 %v2148_v28, 0.0  ;;  %v634_v59 = vadd.f32 %v539_v35, %v424_v63  ;;  %v3720_v44 = vadd.f32 %v4782_v56, %v429_v6  ;;  %v3728_v28 = vld [vmem:[#allocation2 + $0x50] sm:$0xff] }
  0x8e   : > { %v2242_v54 = vpack.c.bf16 %v2194_v43, %v2194_v43  ;;  %v781_v27 = vrot.slane %v682_v53, 2  ;;  %v782_v48 = vrot.slane %v683_v40, 2  ;;  %v957_v32 = vmul.f32 %v3724_v8, %v3143_v17 }
  0x8f   : > { %4811 = vst [vmem:[#allocation20_spill] sm:$0xff] %v3720_v44  ;;  %v2243_v62 = vpack.c.bf16 %v2195_v16, %v2195_v16  ;;  %v2244_v34 = vpack.c.bf16 %v2196_v30, %v2196_v30  ;;  %v958_v63 = vmul.f32 %v3728_v28, %v3143_v17  ;;  %v4812_v53 = vrot.slane %v3268_v61, 2 }
  0x90   : > { %v2522_v6 = vshrl.u32 %v2242_v54, 16  ;;  %v783_v3 = vsel %vm775_vm3, %v781_v27, %v782_v48  ;;  %v907_v40 = vadd.f32 %v781_v27, %v633_v13  ;;  %v3738_v29 = vmul.f32 %v3143_v17, %v3686_v5 }
  0x91   : > { %v785_v24 = vsel %vm775_vm3, %v782_v48, %v4812_v53  ;;  %v2527_v25 = vshrl.u32 %v2243_v62, 16  ;;  %v2530_v14 = vshll.u32 %v2243_v62, 16  ;;  %v2536_v4 = vshrl.u32 %v2244_v34, 16 }
  0x92   : > { %v2539_v43 = vshll.u32 %v2244_v34, 16  ;;  %v2940_v35 = vrot.slane %v2522_v6, 11  ;;  %v908_v16 = vadd.f32 %v783_v3, %v634_v59  ;;  %v909_v30 = vadd.f32 %v785_v24, %v635_v50 }
  0x93   : > { %v2529_v56 = vrot.slane %v2527_v25, 7  ;;  %v2538_v54 = vrot.slane %v2536_v4, 7  ;;  %v1004_v44 = vadd.f32 %v3298_v19, %v907_v40  ;;  %v1052_v61 = vmul.f32 %v3724_v8, %v3145_v18  ;;  %v3757_v40 = vld [vmem:[#allocation2 + $0x70] sm:$0xff] }
  0x94   : > { %v1005_v48 = vadd.f32 %v957_v32, %v908_v16  ;;  %v1006_v27 = vadd.f32 %v958_v63, %v909_v30  ;;  %v1053_v62 = vmul.f32 %v3728_v28, %v3145_v18  ;;  %v1262_v59 = vmul.f32 %v3724_v8, %v3149_v20 }
  0x95   : > { %v2532_v34 = vor.u32 %v2530_v14, %v2529_v56  ;;  %v2534_v13 = vrot.slane %v2529_v56, 4  ;;  %v2541_v50 = vor.u32 %v2539_v43, %v2538_v54  ;;  %v1117_v6 = vrot.slane %v1052_v61, 1 }
  0x96   : > { %v1118_v3 = vrot.slane %v1053_v62, 1  ;;  %v1263_v53 = vmul.f32 %v3728_v28, %v3149_v20  ;;  %v3751_v19 = vmul.f32 %v3149_v20, %v3703_v46  ;;  %v1360_v32 = vrot.slane %v1262_v59, 2 }
  0x97   : > { %v2533_v63 = vsel %vm3314_vm6, %v2940_v35, %v2532_v34  ;;  %v2542_v24 = vsel %vm3314_vm6, %v2534_v13, %v2541_v50  ;;  %v1213_v56 = vadd.f32 %v1117_v6, %v1004_v44  ;;  %v1535_v25 = vmul.f32 %v3151_v21, %v3686_v5 }
  0x98   : > { %v2633_v14 = vunpack.c.l.b16 %v2533_v63  ;;  %v2634_v4 = vunpack.c.l.b16 %v2542_v24  ;;  %v1119_v43 = vsel %vm533_vm2, %v1117_v6, %v1118_v3  ;;  %v1215_v16 = vadd.f32 %v1118_v3, %v1006_v27 }
  0x99   : > { %v1214_v30 = vadd.f32 %v1119_v43, %v1005_v48  ;;  %v1361_v54 = vrot.slane %v1263_v53, 2  ;;  %v1486_v62 = vadd.f32 %v1360_v32, %v1213_v56  ;;  %v1536_v59 = vmul.f32 %v3151_v21, %v3693_v60 }
  0x9a   : > { %v2653_v35 = vpack.c.b16 %v2634_v4, %v2633_v14  ;;  %v1537_v44 = vmul.f32 %v3151_v21, %v3757_v40  ;;  %v1631_v5 = vmul.f32 %v3153_v22, %v3693_v60  ;;  %v4813_v13 = vrot.slane %v3280_v1, 2 }
  0x9b   : > { %v1362_v34 = vsel %vm775_vm3, %v1360_v32, %v1361_v54  ;;  %v1583_v27 = vadd.f32 %v1535_v25, %v1486_v62  ;;  %v1632_v50 = vmul.f32 %v3153_v22, %v3757_v40  ;;  %v1841_v63 = vmul.f32 %v3155_v23, %v3693_v60 }
  0x9c   : > { %v1364_v48 = vsel %vm775_vm3, %v1361_v54, %v4813_v13  ;;  %2956 = vmatmul.msk.bf16.vlgmr.msra.gmra.mxu3 %vm226_vm1, %v2653_v35  ;;  %v1487_v6 = vadd.f32 %v1362_v34, %v1214_v30  ;;  %v1696_v53 = vrot.slane %v1631_v5, 1  ;;  %v1842_v32 = vmul.f32 %v3155_v23, %v3757_v40  ;;  %v3787_v13 = vld [vmem:[#allocation2 + $0xe0] sm:$0xff] }
  0x9d   : > { %v1488_v3 = vadd.f32 %v1364_v48, %v1215_v16  ;;  %v1697_v24 = vrot.slane %v1632_v50, 1  ;;  %v1843_v1 = vmul.f32 %v3155_v23, %v3703_v46  ;;  %v435_v56 = vmul.f32 %v3140_v15, %v3319_v36 }
  0x9e   : > { %v1584_v25 = vadd.f32 %v1536_v59, %v1487_v6  ;;  %v1792_v4 = vadd.f32 %v1696_v53, %v1583_v27  ;;  %v1939_v43 = vrot.slane %v1841_v63, 2  ;;  %v1940_v30 = vrot.slane %v1842_v32, 2  ;;  %v3800_v6 = vld [vmem:[%s4763_s3] ss:$0 sm:$0xff] }
  0x9f   : > { %v1585_v14 = vadd.f32 %v1537_v44, %v1488_v3  ;;  %v1698_v16 = vsel %vm533_vm2, %v1696_v53, %v1697_v24  ;;  %v1942_v54 = vrot.slane %v1843_v1, 2  ;;  %v436_v62 = vmul.f32 %v3140_v15, %v3404_v58  ;;  %v3803_v53 = vld [vmem:[#allocation2 + $0xe8] sm:$0xff] }
  0xa0   : > { %v1793_v35 = vadd.f32 %v1698_v16, %v1584_v25  ;;  %v2065_v34 = vadd.f32 %v1939_v43, %v1792_v4  ;;  %v437_v46 = vmul.f32 %v3140_v15, %v3412_v9  ;;  %v1941_v36 = vsel %vm775_vm3, %v1939_v43, %v1940_v30  ;;  %v3817_v16 = vld [vmem:[#allocation2 + $0xf8] sm:$0xff] }
  0xa1   : > { %v1794_v5 = vadd.f32 %v1697_v24, %v1585_v14  ;;  %v1943_v59 = vsel %vm775_vm3, %v1940_v30, %v1942_v54  ;;  %v441_v44 = vmul.f32 %v3140_v15, %v3787_v13  ;;  %v479_v48 = vmul.f32 %v3135_v12, %v3404_v58 }
  0xa2   : > { %v2066_v27 = vadd.f32 %v1941_v36, %v1793_v35  ;;  %v2113_v3 = vadd.f32 %v3800_v6, %v2065_v34  ;;  %v480_v63 = vmul.f32 %v3135_v12, %v3412_v9  ;;  %v3809_v24 = vmul.f32 %v3135_v12, %v3803_v53  ;;  %v297_v36 = vld [vmem:[%s3107_s25 + $0xe8] sm:$0xff] }
  0xa3   : > { %v2067_v50 = vadd.f32 %v1943_v59, %v1794_v5  ;;  %v549_v32 = vrot.slane %v479_v48, 1  ;;  %v694_v1 = vmul.f32 %v3123_v7, %v3404_v58  ;;  %v695_v25 = vmul.f32 %v3123_v7, %v3412_v9  ;;  %v296_v58 = vld [vmem:[%s3107_s25 + $0xe0] sm:$0xff]  ;;  %330 = vst.msk [vmem:[#allocation2 + $0x1f0] sm:$0xff] %vm226_vm1, %v297_v36 }
  0xa4   : > { %v2114_v14 = vadd.f32 %v3800_v6, %v2066_v27  ;;  %v2161_v43 = vmax.f32 %v2113_v3, 0.0  ;;  %v550_v30 = vrot.slane %v480_v63, 1  ;;  %v4784_v54 = vrot.slane %v3809_v24, 1  ;;  %329 = vst.msk [vmem:[#allocation2 + $0x1e8] sm:$0xff] %vm226_vm1, %v296_v58 }
  0xa5   : > { %v2115_v4 = vadd.f32 %v3800_v6, %v2067_v50  ;;  %v645_v35 = vadd.f32 %v549_v32, %v435_v56  ;;  %v3822_v5 = vmul.f32 %v3123_v7, %v3817_v16  ;;  %v801_v34 = vrot.slane %v694_v1, 2 }
  0xa6   : > { %v2162_v59 = vmax.f32 %v2114_v14, 0.0  ;;  %v2209_v48 = vpack.c.bf16 %v2161_v43, %v2161_v43  ;;  %v551_v27 = vsel %vm533_vm2, %v549_v32, %v550_v30  ;;  %v647_v3 = vadd.f32 %v550_v30, %v437_v46 }
  0xa7   : > { %4814 = vst [vmem:[#allocation21_spill] sm:$0xff] %v3822_v5  ;;  %v2163_v9 = vmax.f32 %v2115_v4, 0.0  ;;  %v646_v50 = vadd.f32 %v551_v27, %v436_v62  ;;  %v3830_v63 = vadd.f32 %v4784_v54, %v441_v44  ;;  %v802_v56 = vrot.slane %v695_v25, 2 }
  0xa8   : > { %v2210_v61 = vpack.c.bf16 %v2162_v59, %v2162_v59  ;;  %v2280_v37 = vshrl.u32 %v2209_v48, 16  ;;  %v4816_v32 = vrot.slane %v3330_v42, 2  ;;  %v919_v62 = vadd.f32 %v801_v34, %v645_v35 }
  0xa9   : > { %4815 = vst [vmem:[#allocation22_spill] sm:$0xff] %v3830_v63  ;;  %v2211_v1 = vpack.c.bf16 %v2163_v9, %v2163_v9  ;;  %v803_v4 = vsel %vm775_vm3, %v801_v34, %v802_v56  ;;  %v969_v46 = vmul.f32 %v3143_v17, %v3420_v26  ;;  %v970_v48 = vmul.f32 %v3143_v17, %v3442_v31 }
  0xaa   : > { %v805_v43 = vsel %vm775_vm3, %v802_v56, %v4816_v32  ;;  %v2929_v44 = vrot.slane %v2280_v37, 11  ;;  %v2285_v30 = vshrl.u32 %v2210_v61, 16  ;;  %v2288_v25 = vshll.u32 %v2210_v61, 16 }
  0xab   : > { %v2294_v58 = vshrl.u32 %v2211_v1, 16  ;;  %v2297_v36 = vshll.u32 %v2211_v1, 16  ;;  %v920_v59 = vadd.f32 %v803_v4, %v646_v50  ;;  %v921_v9 = vadd.f32 %v805_v43, %v647_v3 }
  0xac   : > { %v2287_v27 = vrot.slane %v2285_v30, 7  ;;  %v3844_v42 = vmul.f32 %v3143_v17, %v3787_v13  ;;  %v1016_v35 = vadd.f32 %v3355_v57, %v919_v62  ;;  %v1060_v37 = vmul.f32 %v3145_v18, %v3420_v26 }
  0xad   : > { %v2296_v14 = vrot.slane %v2294_v58, 7  ;;  %v1017_v34 = vadd.f32 %v969_v46, %v920_v59  ;;  %v1018_v56 = vadd.f32 %v970_v48, %v921_v9  ;;  %v1061_v61 = vmul.f32 %v3145_v18, %v3442_v31 }
  0xae   : > { %v2290_v50 = vor.u32 %v2288_v25, %v2287_v27  ;;  %v2292_v3 = vrot.slane %v2287_v27, 4  ;;  %v1274_v4 = vmul.f32 %v3149_v20, %v3420_v26  ;;  %v1129_v32 = vrot.slane %v1060_v37, 1  ;;  %v3863_v25 = vld [vmem:[#allocation2 + $0xf0] sm:$0xff] }
  0xaf   : > { %v2299_v1 = vor.u32 %v2297_v36, %v2296_v14  ;;  %v1130_v43 = vrot.slane %v1061_v61, 1  ;;  %v1275_v30 = vmul.f32 %v3149_v20, %v3442_v31  ;;  %v3857_v57 = vmul.f32 %v3149_v20, %v3817_v16 }
  0xb0   : > { %v2291_v62 = vsel %vm3314_vm6, %v2929_v44, %v2290_v50  ;;  %v1380_v14 = vrot.slane %v1274_v4, 2  ;;  %v1547_v26 = vmul.f32 %v3151_v21, %v3787_v13  ;;  %v1225_v59 = vadd.f32 %v1129_v32, %v1016_v35 }
  0xb1   : > { %v2300_v46 = vsel %vm3314_vm6, %v2292_v3, %v2299_v1  ;;  %v2611_v58 = vunpack.c.l.b16 %v2291_v62  ;;  %v1131_v31 = vsel %vm533_vm2, %v1129_v32, %v1130_v43  ;;  %v1227_v48 = vadd.f32 %v1130_v43, %v1018_v56 }
  0xb2   : > { %v2612_v36 = vunpack.c.l.b16 %v2300_v46  ;;  %v1226_v9 = vadd.f32 %v1131_v31, %v1017_v34  ;;  %v1381_v27 = vrot.slane %v1275_v30, 2  ;;  %v1498_v61 = vadd.f32 %v1380_v14, %v1225_v59  ;;  %v2983_v59 = vld [vmem:[#allocation2 + $0x120] sm:$0xff] }
  0xb3   : > { %v1548_v50 = vmul.f32 %v3151_v21, %v3803_v53  ;;  %v1549_v3 = vmul.f32 %v3151_v21, %v3863_v25  ;;  %v4817_v1 = vrot.slane %v3341_v52, 2  ;;  %v1639_v35 = vmul.f32 %v3153_v22, %v3803_v53 }
  0xb4   : > { %v2642_v44 = vpack.c.b16 %v2612_v36, %v2611_v58  ;;  %v1382_v13 = vsel %vm775_vm3, %v1380_v14, %v1381_v27  ;;  %v1640_v34 = vmul.f32 %v3153_v22, %v3863_v25  ;;  %v1595_v43 = vadd.f32 %v1547_v26, %v1498_v61 }
  0xb5   : > { %v1384_v4 = vsel %vm775_vm3, %v1381_v27, %v4817_v1  ;;  %v1499_v56 = vadd.f32 %v1382_v13, %v1226_v9  ;;  %v1853_v30 = vmul.f32 %v3155_v23, %v3803_v53  ;;  %v1708_v62 = vrot.slane %v1639_v35, 1  ;;  %v3890_v1 = vld [vmem:[#allocation2 + $0x160] sm:$0xff] }
  0xb6   : > { %2945 = vmatmul.msk.bf16.gmra.mxu0 %vm226_vm1, %v2642_v44  ;;  %v1500_v32 = vadd.f32 %v1384_v4, %v1227_v48  ;;  %v1709_v46 = vrot.slane %v1640_v34, 1  ;;  %v1854_v52 = vmul.f32 %v3155_v23, %v3863_v25  ;;  %v1855_v14 = vmul.f32 %v3155_v23, %v3817_v16 }
  0xb7   : > { %v1596_v58 = vadd.f32 %v1548_v50, %v1499_v56  ;;  %v1959_v31 = vrot.slane %v1853_v30, 2  ;;  %v447_v27 = vmul.f32 %v2983_v59, %v3140_v15  ;;  %v1804_v26 = vadd.f32 %v1708_v62, %v1595_v43  ;;  %v3900_v43 = vld [vmem:[#allocation2 + $0x168] sm:$0xff]  ;;  %v3917_v59 = vld [vmem:[#allocation2 + $0x178] sm:$0xff] }
  0xb8   : > { %v1597_v36 = vadd.f32 %v1549_v3, %v1500_v32  ;;  %v1710_v9 = vsel %vm533_vm2, %v1708_v62, %v1709_v46  ;;  %v1960_v48 = vrot.slane %v1854_v52, 2  ;;  %v1962_v44 = vrot.slane %v1855_v14, 2 }
  0xb9   : > { %v1805_v61 = vadd.f32 %v1710_v9, %v1596_v58  ;;  %v448_v4 = vmul.f32 %v3140_v15, %v3501_v49  ;;  %v449_v16 = vmul.f32 %v3140_v15, %v3519_v0  ;;  %v2077_v35 = vadd.f32 %v1959_v31, %v1804_v26 }
  0xba   : > { %v1806_v13 = vadd.f32 %v1709_v46, %v1597_v36  ;;  %v1961_v50 = vsel %vm775_vm3, %v1959_v31, %v1960_v48  ;;  %v1963_v3 = vsel %vm775_vm3, %v1960_v48, %v1962_v44  ;;  %v453_v34 = vmul.f32 %v3140_v15, %v3890_v1 }
  0xbb   : > { %v2078_v56 = vadd.f32 %v1961_v50, %v1805_v61  ;;  %v487_v30 = vmul.f32 %v3135_v12, %v3501_v49  ;;  %v488_v62 = vmul.f32 %v3135_v12, %v3519_v0  ;;  %v2125_v46 = vadd.f32 %v3800_v6, %v2077_v35 }
  0xbc   : > { %v2079_v32 = vadd.f32 %v1963_v3, %v1806_v13  ;;  %v3909_v52 = vmul.f32 %v3135_v12, %v3900_v43  ;;  %v706_v14 = vmul.f32 %v3123_v7, %v3501_v49  ;;  %v707_v58 = vmul.f32 %v3123_v7, %v3519_v0 }
  0xbd   : > { %v2126_v36 = vadd.f32 %v3800_v6, %v2078_v56  ;;  %v561_v9 = vrot.slane %v487_v30, 1  ;;  %v562_v26 = vrot.slane %v488_v62, 1  ;;  %v2173_v48 = vmax.f32 %v2125_v46, 0.0 }
  0xbe   : > { %v2127_v31 = vadd.f32 %v3800_v6, %v2079_v32  ;;  %v4786_v44 = vrot.slane %v3909_v52, 1  ;;  %v3922_v61 = vmul.f32 %v3123_v7, %v3917_v59  ;;  %v821_v13 = vrot.slane %v706_v14, 2 }
  0xbf   : > { %v2174_v49 = vmax.f32 %v2126_v36, 0.0  ;;  %v563_v0 = vsel %vm533_vm2, %v561_v9, %v562_v26  ;;  %v657_v3 = vadd.f32 %v561_v9, %v447_v27  ;;  %v2221_v35 = vpack.c.bf16 %v2173_v48, %v2173_v48 }
  0xc0   : > { %v2175_v50 = vmax.f32 %v2127_v31, 0.0  ;;  %v658_v56 = vadd.f32 %v563_v0, %v448_v4  ;;  %v659_v32 = vadd.f32 %v562_v26, %v449_v16  ;;  %v3927_v30 = vadd.f32 %v4786_v44, %v453_v34  ;;  %v4821_v44 = vld [vmem:[#allocation18_spill] sm:$0xff] }
  0xc1   : > { %v2222_v62 = vpack.c.bf16 %v2174_v49, %v2174_v49  ;;  %v822_v54 = vrot.slane %v707_v58, 2  ;;  %v2368_v63 = vshrl.u32 %v2221_v35, 16  ;;  %v931_v5 = vadd.f32 %v821_v13, %v657_v3 }
  0xc2   : > { %v2223_v46 = vpack.c.bf16 %v2175_v50, %v2175_v50  ;;  %v981_v14 = vmul.f32 %v3143_v17, %v3489_v2  ;;  %v982_v27 = vmul.f32 %v3143_v17, %v3551_v11  ;;  %v4818_v26 = vrot.slane %v3512_v55, 2 }
  0xc3   : > { %v2373_v36 = vshrl.u32 %v2222_v62, 16  ;;  %v2376_v4 = vshll.u32 %v2222_v62, 16  ;;  %v2933_v9 = vrot.slane %v2368_v63, 11  ;;  %v823_v34 = vsel %vm775_vm3, %v821_v13, %v822_v54 }
  0xc4   : > { %v2382_v16 = vshrl.u32 %v2223_v46, 16  ;;  %v2385_v31 = vshll.u32 %v2223_v46, 16  ;;  %v825_v58 = vsel %vm775_vm3, %v822_v54, %v4818_v26  ;;  %v3940_v48 = vmul.f32 %v3143_v17, %v3890_v1 }
  0xc5   : > { %v2375_v49 = vrot.slane %v2373_v36, 7  ;;  %v932_v0 = vadd.f32 %v823_v34, %v658_v56  ;;  %v933_v3 = vadd.f32 %v825_v58, %v659_v32  ;;  %v1028_v35 = vadd.f32 %v3533_v45, %v931_v5 }
  0xc6   : > { %v2384_v50 = vrot.slane %v2382_v16, 7  ;;  %v1068_v62 = vmul.f32 %v3145_v18, %v3489_v2  ;;  %v1069_v63 = vmul.f32 %v3145_v18, %v3551_v11  ;;  %v1286_v55 = vmul.f32 %v3149_v20, %v3489_v2 }
  0xc7   : > { %v2378_v54 = vor.u32 %v2376_v4, %v2375_v49  ;;  %v2380_v13 = vrot.slane %v2375_v49, 4  ;;  %v1029_v26 = vadd.f32 %v981_v14, %v932_v0  ;;  %v1030_v37 = vadd.f32 %v982_v27, %v933_v3  ;;  %v3959_v14 = vld [vmem:[#allocation2 + $0x170] sm:$0xff] }
  0xc8   : > { %v2387_v46 = vor.u32 %v2385_v31, %v2384_v50  ;;  %v1141_v36 = vrot.slane %v1068_v62, 1  ;;  %v1142_v16 = vrot.slane %v1069_v63, 1  ;;  %v1287_v56 = vmul.f32 %v3149_v20, %v3551_v11 }
  0xc9   : > { %v2379_v45 = vsel %vm3314_vm6, %v2933_v9, %v2378_v54  ;;  %v3957_v32 = vmul.f32 %v3149_v20, %v3917_v59  ;;  %v1400_v2 = vrot.slane %v1286_v55, 2  ;;  %v1559_v3 = vmul.f32 %v3151_v21, %v3890_v1  ;;  %v4824_v9 = vld [vmem:[#allocation16_spill] sm:$0xff] }
  0xca   : > { %v2388_v5 = vsel %vm3314_vm6, %v2380_v13, %v2387_v46  ;;  %v2619_v4 = vunpack.c.l.b16 %v2379_v45  ;;  %v1143_v27 = vsel %vm533_vm2, %v1141_v36, %v1142_v16  ;;  %v1237_v34 = vadd.f32 %v1141_v36, %v1028_v35 }
  0xcb   : > { %v2620_v31 = vunpack.c.l.b16 %v2388_v5  ;;  %v1238_v58 = vadd.f32 %v1143_v27, %v1029_v26  ;;  %v1239_v11 = vadd.f32 %v1142_v16, %v1030_v37  ;;  %v1401_v49 = vrot.slane %v1287_v56, 2 }
  0xcc   : > { %v1510_v0 = vadd.f32 %v1400_v2, %v1237_v34  ;;  %v1560_v62 = vmul.f32 %v3151_v21, %v3900_v43  ;;  %v4819_v55 = vrot.slane %v3546_v38, 2  ;;  %v1561_v37 = vmul.f32 %v3151_v21, %v3959_v14 }
  0xcd   : > { %v2646_v50 = vpack.c.b16 %v2620_v31, %v2619_v4  ;;  %v1402_v63 = vsel %vm775_vm3, %v1400_v2, %v1401_v49  ;;  %v1647_v35 = vmul.f32 %v3153_v22, %v3900_v43  ;;  %v1648_v26 = vmul.f32 %v3153_v22, %v3959_v14 }
  0xce   : > { %v1404_v54 = vsel %vm775_vm3, %v1401_v49, %v4819_v55  ;;  %v1511_v13 = vadd.f32 %v1402_v63, %v1238_v58  ;;  %v1607_v1 = vadd.f32 %v1559_v3, %v1510_v0  ;;  %v1865_v38 = vmul.f32 %v3155_v23, %v3900_v43 }
  0xcf   : > { %2949 = vmatmul.msk.bf16.gmra.mxu1 %vm226_vm1, %v2646_v50  ;;  %v1512_v46 = vadd.f32 %v1404_v54, %v1239_v11  ;;  %v1720_v36 = vrot.slane %v1647_v35, 1  ;;  %v1866_v16 = vmul.f32 %v3155_v23, %v3959_v14  ;;  %v1867_v56 = vmul.f32 %v3155_v23, %v3917_v59  ;;  %v3993_v54 = vld [vmem:[#allocation2 + $0x1e8] sm:$0xff] }
  0xd0   : > { %v1608_v45 = vadd.f32 %v1560_v62, %v1511_v13  ;;  %v1721_v2 = vrot.slane %v1648_v26, 1  ;;  %v459_v4 = vmul.f32 %v3140_v15, %v3616_v39  ;;  %v1979_v27 = vrot.slane %v1865_v38, 2  ;;  %v407_v39 = vld [vmem:[#allocation2 + $0x1e0] sm:$0xff] }
  0xd1   : > { %v1609_v5 = vadd.f32 %v1561_v37, %v1512_v46  ;;  %v1816_v31 = vadd.f32 %v1720_v36, %v1607_v1  ;;  %v1980_v34 = vrot.slane %v1866_v16, 2  ;;  %v1982_v58 = vrot.slane %v1867_v56, 2  ;;  %v4008_v16 = vld [vmem:[#allocation2 + $0x1f8] sm:$0xff] }
  0xd2   : > { %v1722_v11 = vsel %vm533_vm2, %v1720_v36, %v1721_v2  ;;  %v460_v50 = vmul.f32 %v3140_v15, %v3625_v51  ;;  %v461_v0 = vmul.f32 %v3140_v15, %v3629_v41  ;;  %v465_v37 = vmul.f32 %v3140_v15, %v407_v39 }
  0xd3   : > { %v1818_v49 = vadd.f32 %v1721_v2, %v1609_v5  ;;  %v1817_v59 = vadd.f32 %v1722_v11, %v1608_v45  ;;  %v1981_v3 = vsel %vm775_vm3, %v1979_v27, %v1980_v34  ;;  %v1983_v62 = vsel %vm775_vm3, %v1980_v34, %v1982_v58 }
  0xd4   : > { %v2089_v63 = vadd.f32 %v1979_v27, %v1816_v31  ;;  %v495_v35 = vmul.f32 %v3135_v12, %v3625_v51  ;;  %v496_v13 = vmul.f32 %v3135_v12, %v3629_v41  ;;  %v4003_v26 = vmul.f32 %v3135_v12, %v3993_v54 }
  0xd5   : > { %v2091_v55 = vadd.f32 %v1983_v62, %v1818_v49  ;;  %v2090_v46 = vadd.f32 %v1981_v3, %v1817_v59  ;;  %v718_v36 = vmul.f32 %v3123_v7, %v3625_v51  ;;  %v719_v5 = vmul.f32 %v3123_v7, %v3629_v41 }
  0xd6   : > { %v2137_v1 = vadd.f32 %v3800_v6, %v2089_v63  ;;  %v573_v56 = vrot.slane %v495_v35, 1  ;;  %v574_v45 = vrot.slane %v496_v13, 1  ;;  %v4787_v27 = vrot.slane %v4003_v26, 1 }
  0xd7   : > { %v2139_v38 = vadd.f32 %v3800_v6, %v2091_v55  ;;  %v2138_v2 = vadd.f32 %v3800_v6, %v2090_v46  ;;  %v4016_v34 = vmul.f32 %v3123_v7, %v4008_v16  ;;  %v841_v55 = vrot.slane %v718_v36, 2 }
  0xd8   : > { %v2185_v31 = vmax.f32 %v2137_v1, 0.0  ;;  %v575_v51 = vsel %vm533_vm2, %v573_v56, %v574_v45  ;;  %v669_v11 = vadd.f32 %v573_v56, %v459_v4  ;;  %v671_v49 = vadd.f32 %v574_v45, %v461_v0  ;;  %v4822_v45 = vld [vmem:[#allocation14_spill] sm:$0xff] }
  0xd9   : > { %v2187_v58 = vmax.f32 %v2139_v38, 0.0  ;;  %v2186_v59 = vmax.f32 %v2138_v2, 0.0  ;;  %v670_v62 = vadd.f32 %v575_v51, %v460_v50  ;;  %v4021_v41 = vadd.f32 %v4787_v27, %v465_v37 }
  0xda   : > { %v2233_v3 = vpack.c.bf16 %v2185_v31, %v2185_v31  ;;  %v842_v35 = vrot.slane %v719_v5, 2  ;;  %v993_v38 = vmul.f32 %v3143_v17, %v3590_v47  ;;  %v994_v4 = vmul.f32 %v3143_v17, %v4821_v44 }
  0xdb   : > { %4820 = vst [vmem:[#allocation23_spill] sm:$0xff] %v4021_v41  ;;  %v2235_v63 = vpack.c.bf16 %v2187_v58, %v2187_v58  ;;  %v2234_v46 = vpack.c.bf16 %v2186_v59, %v2186_v59  ;;  %v4823_v37 = vrot.slane %v4822_v45, 2  ;;  %v943_v58 = vadd.f32 %v841_v55, %v669_v11 }
  0xdc   : > { %v2456_v1 = vshrl.u32 %v2233_v3, 16  ;;  %v843_v50 = vsel %vm775_vm3, %v841_v55, %v842_v35  ;;  %v4033_v13 = vmul.f32 %v3143_v17, %v407_v39  ;;  %v1077_v45 = vmul.f32 %v3145_v18, %v4821_v44 }
  0xdd   : > { %v2470_v0 = vshrl.u32 %v2235_v63, 16  ;;  %v2473_v56 = vshll.u32 %v2235_v63, 16  ;;  %v845_v2 = vsel %vm775_vm3, %v842_v35, %v4823_v37  ;;  %v2461_v5 = vshrl.u32 %v2234_v46, 16 }
  0xde   : > { %v2937_v36 = vrot.slane %v2456_v1, 11  ;;  %v2464_v31 = vshll.u32 %v2234_v46, 16  ;;  %v944_v59 = vadd.f32 %v843_v50, %v670_v62  ;;  %v945_v3 = vadd.f32 %v845_v2, %v671_v49 }
  0xdf   : > { %v2472_v51 = vrot.slane %v2470_v0, 7  ;;  %v2463_v27 = vrot.slane %v2461_v5, 7  ;;  %v1040_v41 = vadd.f32 %v4824_v9, %v943_v58  ;;  %v1076_v63 = vmul.f32 %v3145_v18, %v3590_v47 }
  0xe0   : > { %v1041_v1 = vadd.f32 %v993_v38, %v944_v59  ;;  %v1042_v37 = vadd.f32 %v994_v4, %v945_v3  ;;  %v1298_v11 = vmul.f32 %v3149_v20, %v3590_v47  ;;  %v1154_v46 = vrot.slane %v1077_v45, 1  ;;  %v4053_v4 = vld [vmem:[#allocation2 + $0x1f0] sm:$0xff] }
  0xe1   : > { %v2475_v35 = vor.u32 %v2473_v56, %v2472_v51  ;;  %v2466_v62 = vor.u32 %v2464_v31, %v2463_v27  ;;  %v2468_v49 = vrot.slane %v2463_v27, 4  ;;  %v1153_v55 = vrot.slane %v1076_v63, 1 }
  0xe2   : > { %v1299_v0 = vmul.f32 %v3149_v20, %v4821_v44  ;;  %v4046_v9 = vmul.f32 %v3149_v20, %v4008_v16  ;;  %v1420_v50 = vrot.slane %v1298_v11, 2  ;;  %v1571_v2 = vmul.f32 %v3151_v21, %v407_v39 }
  0xe3   : > { %v2467_v38 = vsel %vm3314_vm6, %v2937_v36, %v2466_v62  ;;  %v2476_v47 = vsel %vm3314_vm6, %v2468_v49, %v2475_v35  ;;  %v1155_v27 = vsel %vm533_vm2, %v1153_v55, %v1154_v46  ;;  %v1249_v56 = vadd.f32 %v1153_v55, %v1040_v41 }
  0xe4   : > { %v2627_v5 = vunpack.c.l.b16 %v2467_v38  ;;  %v2628_v44 = vunpack.c.l.b16 %v2476_v47  ;;  %v1250_v31 = vadd.f32 %v1155_v27, %v1041_v1  ;;  %v1251_v58 = vadd.f32 %v1154_v46, %v1042_v37  ;;  %v4825_v1 = vld [vmem:[#allocation17_spill] sm:$0xff] }
  0xe5   : > { %v1421_v51 = vrot.slane %v1299_v0, 2  ;;  %v1428_v59 = vrot.slane %v4046_v9, 2  ;;  %v1522_v3 = vadd.f32 %v1420_v50, %v1249_v56  ;;  %v1572_v39 = vmul.f32 %v3151_v21, %v3993_v54 }
  0xe6   : > { %v2650_v36 = vpack.c.b16 %v2628_v44, %v2627_v5  ;;  %v1573_v63 = vmul.f32 %v3151_v21, %v4053_v4  ;;  %v1655_v45 = vmul.f32 %v3153_v22, %v3993_v54  ;;  %v1656_v41 = vmul.f32 %v3153_v22, %v4053_v4 }
  0xe7   : > { %v1422_v35 = vsel %vm775_vm3, %v1420_v50, %v1421_v51  ;;  %v4826_v37 = vrot.slane %v4825_v1, 2  ;;  %v1619_v62 = vadd.f32 %v1571_v2, %v1522_v3  ;;  %v1877_v49 = vmul.f32 %v3155_v23, %v3993_v54 }
  0xe8   : > { %2953 = vmatmul.msk.bf16.gmra.mxu2 %vm226_vm1, %v2650_v36  ;;  %v1523_v55 = vadd.f32 %v1422_v35, %v1250_v31  ;;  %v1732_v0 = vrot.slane %v1655_v45, 1  ;;  %v1733_v38 = vrot.slane %v1656_v41, 1  ;;  %v1878_v47 = vmul.f32 %v3155_v23, %v4053_v4 }
  0xe9   : > { %v1424_v11 = vsel %vm775_vm3, %v1421_v51, %v4826_v37  ;;  %v1879_v50 = vmul.f32 %v3155_v23, %v4008_v16  ;;  %v1999_v27 = vrot.slane %v1877_v49, 2  ;;  %v427_v56 = vmul.f32 %v3724_v8, %v3140_v15 }
  0xea   : > { %v1524_v46 = vadd.f32 %v1424_v11, %v1251_v58  ;;  %v1620_v2 = vadd.f32 %v1572_v39, %v1523_v55  ;;  %v1734_v44 = vsel %vm533_vm2, %v1732_v0, %v1733_v38  ;;  %v1828_v51 = vadd.f32 %v1732_v0, %v1619_v62 }
  0xeb   : > { %v2000_v3 = vrot.slane %v1878_v47, 2  ;;  %v2002_v31 = vrot.slane %v1879_v50, 2  ;;  %v428_v58 = vmul.f32 %v3728_v28, %v3140_v15  ;;  %v474_v36 = vmul.f32 %v3728_v28, %v3135_v12 }
  0xec   : > { %v1621_v5 = vadd.f32 %v1573_v63, %v1524_v46  ;;  %v1829_v45 = vadd.f32 %v1734_v44, %v1620_v2  ;;  %v2101_v16 = vadd.f32 %v1999_v27, %v1828_v51  ;;  %v685_v35 = vmul.f32 %v3724_v8, %v3123_v7  ;;  %v4827_v46 = vld [vmem:[#allocation3_spill] sm:$0xff]  ;;  %v4829_v51 = vld [vmem:[#allocation4_spill] sm:$0xff] }
  0xed   : > { %v2001_v39 = vsel %vm775_vm3, %v1999_v27, %v2000_v3  ;;  %v2003_v63 = vsel %vm775_vm3, %v2000_v3, %v2002_v31  ;;  %v541_v1 = vrot.slane %v474_v36, 1  ;;  %v686_v37 = vmul.f32 %v3728_v28, %v3123_v7  ;;  %v4831_v36 = vld [vmem:[#allocation5_spill] sm:$0xff] }
  0xee   : > { %v1830_v41 = vadd.f32 %v1733_v38, %v1621_v5  ;;  %v2102_v11 = vadd.f32 %v2001_v39, %v1829_v45  ;;  %v2149_v49 = vadd.f32 %v3800_v6, %v2101_v16  ;;  %v786_v55 = vrot.slane %v685_v35, 2 }
  0xef   : > { %v4828_v0 = vrot.slane %v4827_v46, 1  ;;  %v638_v47 = vadd.f32 %v541_v1, %v428_v58  ;;  %v787_v50 = vrot.slane %v686_v37, 2  ;;  %v960_v8 = vmul.f32 %v3143_v17, %v3693_v60 }
  0xf0   : > { %v2103_v62 = vadd.f32 %v2003_v63, %v1830_v41  ;;  %v2150_v27 = vadd.f32 %v3800_v6, %v2102_v11  ;;  %v2197_v5 = vmax.f32 %v2149_v49, 0.0  ;;  %v4830_v3 = vrot.slane %v4829_v51, 2 }
  0xf1   : > { %v542_v38 = vsel %vm533_vm2, %v4828_v0, %v541_v1  ;;  %v788_v44 = vsel %vm775_vm3, %v786_v55, %v787_v50  ;;  %v910_v45 = vadd.f32 %v786_v55, %v4831_v36  ;;  %v961_v58 = vmul.f32 %v3143_v17, %v3757_v40 }
  0xf2   : > { %v2151_v2 = vadd.f32 %v3800_v6, %v2103_v62  ;;  %v637_v28 = vadd.f32 %v542_v38, %v427_v56  ;;  %v790_v31 = vsel %vm775_vm3, %v787_v50, %v4830_v3  ;;  %v2198_v41 = vmax.f32 %v2150_v27, 0.0 }
  0xf3   : > { %v2245_v35 = vpack.c.bf16 %v2197_v5, %v2197_v5  ;;  %v912_v63 = vadd.f32 %v790_v31, %v638_v47  ;;  %v1007_v1 = vadd.f32 %v3738_v29, %v910_v45  ;;  %v1054_v56 = vmul.f32 %v3145_v18, %v3693_v60 }
  0xf4   : > { %v2199_v16 = vmax.f32 %v2151_v2, 0.0  ;;  %v911_v39 = vadd.f32 %v788_v44, %v637_v28  ;;  %v1055_v37 = vmul.f32 %v3145_v18, %v3757_v40  ;;  %v2246_v11 = vpack.c.bf16 %v2198_v41, %v2198_v41  ;;  %v4118_v41 = vld [vmem:[#allocation2 + $0x88] sm:$0xff] }
  0xf5   : > { %v2544_v49 = vshrl.u32 %v2245_v35, 16  ;;  %v1009_v46 = vadd.f32 %v961_v58, %v912_v63  ;;  %v1120_v0 = vrot.slane %v1054_v56, 1  ;;  %v1265_v50 = vmul.f32 %v3149_v20, %v3693_v60  ;;  %v4114_v58 = vld [vmem:[#allocation2 + $0x80] sm:$0xff]  ;;  %v4122_v35 = vld [vmem:[#allocation2 + $0x90] sm:$0xff] }
  0xf6   : > { %v2247_v62 = vpack.c.bf16 %v2199_v16, %v2199_v16  ;;  %v1008_v55 = vadd.f32 %v960_v8, %v911_v39  ;;  %v1121_v38 = vrot.slane %v1055_v37, 1  ;;  %v2549_v47 = vshrl.u32 %v2246_v11, 16 }
  0xf7   : > { %v2941_v27 = vrot.slane %v2544_v49, 11  ;;  %v2552_v2 = vshll.u32 %v2246_v11, 16  ;;  %v1216_v44 = vadd.f32 %v1120_v0, %v1007_v1  ;;  %v1266_v8 = vmul.f32 %v3149_v20, %v3757_v40 }
  0xf8   : > { %v2558_v29 = vshrl.u32 %v2247_v62, 16  ;;  %v2561_v5 = vshll.u32 %v2247_v62, 16  ;;  %v1122_v28 = vsel %vm533_vm2, %v1120_v0, %v1121_v38  ;;  %v1218_v51 = vadd.f32 %v1121_v38, %v1009_v46 }
  0xf9   : > { %v2551_v3 = vrot.slane %v2549_v47, 7  ;;  %v1217_v36 = vadd.f32 %v1122_v28, %v1008_v55  ;;  %v1365_v45 = vrot.slane %v1265_v50, 2  ;;  %v1538_v60 = vmul.f32 %v4114_v58, %v3151_v21 }
  0xfa   : > { %v2560_v31 = vrot.slane %v2558_v29, 7  ;;  %v1539_v16 = vmul.f32 %v4118_v41, %v3151_v21  ;;  %v1540_v39 = vmul.f32 %v4122_v35, %v3151_v21  ;;  %v1366_v40 = vrot.slane %v1266_v8, 2 }
  0xfb   : > { %v2554_v63 = vor.u32 %v2552_v2, %v2551_v3  ;;  %v2556_v1 = vrot.slane %v2551_v3, 4  ;;  %v1489_v37 = vadd.f32 %v1365_v45, %v1216_v44  ;;  %v1633_v11 = vmul.f32 %v4118_v41, %v3153_v22 }
  0xfc   : > { %v2563_v56 = vor.u32 %v2561_v5, %v2560_v31  ;;  %v1634_v62 = vmul.f32 %v4122_v35, %v3153_v22  ;;  %v1844_v49 = vmul.f32 %v4118_v41, %v3155_v23  ;;  %v1367_v0 = vsel %vm775_vm3, %v1365_v45, %v1366_v40  ;;  %v4142_v45 = vld [vmem:[#allocation2 + $0x98] sm:$0xff] }
  0xfd   : > { %v2555_v55 = vsel %vm3314_vm6, %v2941_v27, %v2554_v63  ;;  %v4832_v38 = vrot.slane %v3751_v19, 2  ;;  %v1490_v29 = vadd.f32 %v1367_v0, %v1217_v36  ;;  %v1586_v28 = vadd.f32 %v1538_v60, %v1489_v37  ;;  %v299_v60 = vld [vmem:[%s3107_s25 + $0xf8] sm:$0xff]  ;;  %v2989_v0 = vld [vmem:[#allocation2 + $0xd0] sm:$0xff] }
  0xfe   : > { %v2564_v46 = vsel %vm3314_vm6, %v2556_v1, %v2563_v56  ;;  %v2635_v47 = vunpack.c.l.b16 %v2555_v55  ;;  %v1699_v44 = vrot.slane %v1633_v11, 1  ;;  %v1700_v3 = vrot.slane %v1634_v62, 1  ;;  %v2988_v55 = vld [vmem:[#allocation2 + $0xc8] sm:$0xff]  ;;  %332 = vst.msk [vmem:[#allocation2 + $0x210] sm:$0xff] %vm226_vm1, %v299_v60 }
  0xff   : > { %v1369_v50 = vsel %vm775_vm3, %v1366_v40, %v4832_v38  ;;  %v2636_v2 = vunpack.c.l.b16 %v2564_v46  ;;  %v1845_v27 = vmul.f32 %v4122_v35, %v3155_v23  ;;  %v1587_v8 = vadd.f32 %v1539_v16, %v1490_v29 }
 0x100   : > { %v1491_v5 = vadd.f32 %v1369_v50, %v1218_v51  ;;  %v1846_v19 = vmul.f32 %v4142_v45, %v3155_v23  ;;  %v1701_v1 = vsel %vm533_vm2, %v1699_v44, %v1700_v3  ;;  %v1795_v56 = vadd.f32 %v1699_v44, %v1586_v28  ;;  %v298_v51 = vld [vmem:[%s3107_s25 + $0xf0] sm:$0xff] }
 0x101   : > { %v2654_v31 = vpack.c.b16 %v2636_v2, %v2635_v47  ;;  %v1944_v36 = vrot.slane %v1844_v49, 2  ;;  %v1945_v40 = vrot.slane %v1845_v27, 2  ;;  %v1796_v37 = vadd.f32 %v1701_v1, %v1587_v8  ;;  %331 = vst.msk [vmem:[#allocation2 + $0x208] sm:$0xff] %vm226_vm1, %v298_v51 }
 0x102   : > { %v1588_v63 = vadd.f32 %v1540_v39, %v1491_v5  ;;  %v1947_v62 = vrot.slane %v1846_v19, 2  ;;  %v439_v16 = vmul.f32 %v2988_v55, %v3140_v15  ;;  %v440_v38 = vmul.f32 %v2989_v0, %v3140_v15 }
 0x103   : > { %2957 = vmatmul.msk.bf16.gmra.mxu3 %vm226_vm1, %v2654_v31  ;;  %v1946_v39 = vsel %vm775_vm3, %v1944_v36, %v1945_v40  ;;  %v2068_v46 = vadd.f32 %v1944_v36, %v1795_v56  ;;  %v482_v49 = vmul.f32 %v2989_v0, %v3135_v12  ;;  %v697_v2 = vmul.f32 %v2988_v55, %v3123_v7  ;;  %v4833_v56 = vld [vmem:[#allocation7_spill] sm:$0xff] }
 0x104   : > { %v1797_v11 = vadd.f32 %v1700_v3, %v1588_v63  ;;  %v1948_v50 = vsel %vm775_vm3, %v1945_v40, %v1947_v62  ;;  %v2069_v47 = vadd.f32 %v1946_v39, %v1796_v37  ;;  %v698_v29 = vmul.f32 %v2989_v0, %v3123_v7  ;;  %v4835_v62 = vld [vmem:[#allocation6_spill] sm:$0xff] }
 0x105   : > { %v2116_v28 = vadd.f32 %v3800_v6, %v2068_v46  ;;  %v553_v44 = vrot.slane %v482_v49, 1  ;;  %v972_v3 = vmul.f32 %v3143_v17, %v3803_v53  ;;  %v806_v31 = vrot.slane %v697_v2, 2  ;;  %v4837_v49 = vld [vmem:[#allocation8_spill] sm:$0xff] }
 0x106   : > { %v2070_v5 = vadd.f32 %v1948_v50, %v1797_v11  ;;  %v2117_v27 = vadd.f32 %v3800_v6, %v2069_v47  ;;  %v807_v8 = vrot.slane %v698_v29, 2  ;;  %v973_v63 = vmul.f32 %v3143_v17, %v3863_v25 }
 0x107   : > { %v2164_v1 = vmax.f32 %v2116_v28, 0.0  ;;  %v4834_v36 = vrot.slane %v4833_v56, 1  ;;  %v650_v51 = vadd.f32 %v553_v44, %v440_v38  ;;  %v4836_v55 = vrot.slane %v4835_v62, 2 }
 0x108   : > { %v2118_v19 = vadd.f32 %v3800_v6, %v2070_v5  ;;  %v2165_v60 = vmax.f32 %v2117_v27, 0.0  ;;  %v808_v11 = vsel %vm775_vm3, %v806_v31, %v807_v8  ;;  %v922_v50 = vadd.f32 %v806_v31, %v4837_v49 }
 0x109   : > { %v554_v40 = vsel %vm533_vm2, %v4834_v36, %v553_v44  ;;  %v810_v39 = vsel %vm775_vm3, %v807_v8, %v4836_v55  ;;  %v2212_v0 = vpack.c.bf16 %v2164_v1, %v2164_v1  ;;  %v1062_v5 = vmul.f32 %v3145_v18, %v3803_v53 }
 0x10a   : > { %v649_v37 = vadd.f32 %v554_v40, %v439_v16  ;;  %v2166_v46 = vmax.f32 %v2118_v19, 0.0  ;;  %v924_v47 = vadd.f32 %v810_v39, %v650_v51  ;;  %v2213_v2 = vpack.c.bf16 %v2165_v60, %v2165_v60  ;;  %v4184_v39 = vld [vmem:[#allocation2 + $0x100] sm:$0xff] }
 0x10b   : > { %v1063_v38 = vmul.f32 %v3145_v18, %v3863_v25  ;;  %v2302_v28 = vshrl.u32 %v2212_v0, 16  ;;  %v1019_v44 = vadd.f32 %v3844_v42, %v922_v50  ;;  %v1132_v1 = vrot.slane %v1062_v5, 1 }
 0x10c   : > { %v923_v29 = vadd.f32 %v808_v11, %v649_v37  ;;  %v2214_v16 = vpack.c.bf16 %v2166_v46, %v2166_v46  ;;  %v1021_v27 = vadd.f32 %v973_v63, %v924_v47  ;;  %v2307_v56 = vshrl.u32 %v2213_v2, 16 }
 0x10d   : > { %v2310_v8 = vshll.u32 %v2213_v2, 16  ;;  %v2930_v36 = vrot.slane %v2302_v28, 11  ;;  %v1133_v51 = vrot.slane %v1063_v38, 1  ;;  %v1228_v37 = vadd.f32 %v1132_v1, %v1019_v44 }
 0x10e   : > { %v1020_v19 = vadd.f32 %v972_v3, %v923_v29  ;;  %v2316_v31 = vshrl.u32 %v2214_v16, 16  ;;  %v2319_v40 = vshll.u32 %v2214_v16, 16  ;;  %v2309_v60 = vrot.slane %v2307_v56, 7  ;;  %v4188_v29 = vld [vmem:[#allocation2 + $0x108] sm:$0xff] }
 0x10f   : > { %v1277_v11 = vmul.f32 %v3149_v20, %v3803_v53  ;;  %v1278_v62 = vmul.f32 %v3149_v20, %v3863_v25  ;;  %v1134_v42 = vsel %vm533_vm2, %v1132_v1, %v1133_v51  ;;  %v1230_v63 = vadd.f32 %v1133_v51, %v1021_v27  ;;  %v4192_v25 = vld [vmem:[#allocation2 + $0x110] sm:$0xff] }
 0x110   : > { %v2318_v55 = vrot.slane %v2316_v31, 7  ;;  %v1550_v3 = vmul.f32 %v4184_v39, %v3151_v21  ;;  %v2312_v46 = vor.u32 %v2310_v8, %v2309_v60  ;;  %v2314_v0 = vrot.slane %v2309_v60, 4 }
 0x111   : > { %v1229_v49 = vadd.f32 %v1134_v42, %v1020_v19  ;;  %v1385_v50 = vrot.slane %v1277_v11, 2  ;;  %v1386_v2 = vrot.slane %v1278_v62, 2  ;;  %v1551_v53 = vmul.f32 %v4188_v29, %v3151_v21 }
 0x112   : > { %v2321_v47 = vor.u32 %v2319_v40, %v2318_v55  ;;  %v1552_v5 = vmul.f32 %v4192_v25, %v3151_v21  ;;  %v2313_v38 = vsel %vm3314_vm6, %v2930_v36, %v2312_v46  ;;  %v1641_v28 = vmul.f32 %v4188_v29, %v3153_v22 }
 0x113   : > { %v1501_v16 = vadd.f32 %v1385_v50, %v1228_v37  ;;  %v1642_v44 = vmul.f32 %v4192_v25, %v3153_v22  ;;  %v2613_v56 = vunpack.c.l.b16 %v2313_v38  ;;  %v1387_v8 = vsel %vm775_vm3, %v1385_v50, %v1386_v2 }
 0x114   : > { %v2322_v27 = vsel %vm3314_vm6, %v2314_v0, %v2321_v47  ;;  %v4838_v19 = vrot.slane %v3857_v57, 2  ;;  %v1502_v40 = vadd.f32 %v1387_v8, %v1229_v49  ;;  %v1711_v60 = vrot.slane %v1641_v28, 1  ;;  %v4212_v0 = vld [vmem:[#allocation2 + $0x118] sm:$0xff] }
 0x115   : > { %v2614_v31 = vunpack.c.l.b16 %v2322_v27  ;;  %v1598_v51 = vadd.f32 %v1550_v3, %v1501_v16  ;;  %v1712_v37 = vrot.slane %v1642_v44, 1  ;;  %v1856_v11 = vmul.f32 %v4188_v29, %v3155_v23  ;;  %v2994_v16 = vld [vmem:[#allocation2 + $0x148] sm:$0xff]  ;;  %v2995_v44 = vld [vmem:[#allocation2 + $0x150] sm:$0xff] }
 0x116   : > { %v1389_v1 = vsel %vm775_vm3, %v1386_v2, %v4838_v19  ;;  %v1857_v62 = vmul.f32 %v4192_v25, %v3155_v23  ;;  %v1599_v42 = vadd.f32 %v1551_v53, %v1502_v40  ;;  %v1858_v57 = vmul.f32 %v4212_v0, %v3155_v23 }
 0x117   : > { %v1503_v36 = vadd.f32 %v1389_v1, %v1230_v63  ;;  %v2643_v55 = vpack.c.b16 %v2614_v31, %v2613_v56  ;;  %v1713_v49 = vsel %vm533_vm2, %v1711_v60, %v1712_v37  ;;  %v1807_v63 = vadd.f32 %v1711_v60, %v1598_v51 }
 0x118   : > { %v1964_v3 = vrot.slane %v1856_v11, 2  ;;  %v1965_v50 = vrot.slane %v1857_v62, 2  ;;  %v1808_v47 = vadd.f32 %v1713_v49, %v1599_v42  ;;  %v1967_v38 = vrot.slane %v1858_v57, 2  ;;  %v4839_v57 = vld [vmem:[#allocation9_spill] sm:$0xff] }
 0x119   : > { %v1600_v46 = vadd.f32 %v1552_v5, %v1503_v36  ;;  %2946 = vmatmul.msk.bf16.gmra.mxu0 %vm226_vm1, %v2643_v55  ;;  %v451_v28 = vmul.f32 %v2994_v16, %v3140_v15  ;;  %v452_v27 = vmul.f32 %v2995_v44, %v3140_v15  ;;  %v490_v56 = vmul.f32 %v2995_v44, %v3135_v12 }
 0x11a   : > { %v1966_v53 = vsel %vm775_vm3, %v1964_v3, %v1965_v50  ;;  %v2080_v5 = vadd.f32 %v1964_v3, %v1807_v63  ;;  %v1968_v8 = vsel %vm775_vm3, %v1965_v50, %v1967_v38  ;;  %v709_v1 = vmul.f32 %v2994_v16, %v3123_v7  ;;  %v4841_v38 = vld [vmem:[#allocation11_spill] sm:$0xff] }
 0x11b   : > { %v1809_v2 = vadd.f32 %v1712_v37, %v1600_v46  ;;  %v2081_v19 = vadd.f32 %v1966_v53, %v1808_v47  ;;  %v710_v31 = vmul.f32 %v2995_v44, %v3123_v7  ;;  %v565_v51 = vrot.slane %v490_v56, 1  ;;  %v4843_v56 = vld [vmem:[#allocation10_spill] sm:$0xff] }
 0x11c   : > { %v2128_v36 = vadd.f32 %v3800_v6, %v2080_v5  ;;  %v984_v60 = vmul.f32 %v3143_v17, %v3900_v43  ;;  %v826_v11 = vrot.slane %v709_v1, 2  ;;  %v985_v55 = vmul.f32 %v3143_v17, %v3959_v14 }
 0x11d   : > { %v2082_v40 = vadd.f32 %v1968_v8, %v1809_v2  ;;  %v2129_v37 = vadd.f32 %v3800_v6, %v2081_v19  ;;  %v827_v62 = vrot.slane %v710_v31, 2  ;;  %v4840_v49 = vrot.slane %v4839_v57, 1 }
 0x11e   : > { %v2176_v46 = vmax.f32 %v2128_v36, 0.0  ;;  %v662_v3 = vadd.f32 %v565_v51, %v452_v27  ;;  %v4842_v16 = vrot.slane %v4841_v38, 2  ;;  %v934_v8 = vadd.f32 %v826_v11, %v4843_v56 }
 0x11f   : > { %v2130_v42 = vadd.f32 %v3800_v6, %v2082_v40  ;;  %v566_v63 = vsel %vm533_vm2, %v4840_v49, %v565_v51  ;;  %v2177_v50 = vmax.f32 %v2129_v37, 0.0  ;;  %v828_v2 = vsel %vm775_vm3, %v826_v11, %v827_v62 }
 0x120   : > { %v661_v47 = vadd.f32 %v566_v63, %v451_v28  ;;  %v830_v53 = vsel %vm775_vm3, %v827_v62, %v4842_v16  ;;  %v2224_v44 = vpack.c.bf16 %v2176_v46, %v2176_v46  ;;  %v1070_v31 = vmul.f32 %v3145_v18, %v3900_v43  ;;  %v4250_v16 = vld [vmem:[#allocation2 + $0x180] sm:$0xff] }
 0x121   : > { %v2178_v5 = vmax.f32 %v2130_v42, 0.0  ;;  %v936_v19 = vadd.f32 %v830_v53, %v662_v3  ;;  %v2225_v6 = vpack.c.bf16 %v2177_v50, %v2177_v50  ;;  %v1071_v27 = vmul.f32 %v3145_v18, %v3959_v14 }
 0x122   : > { %v935_v1 = vadd.f32 %v828_v2, %v661_v47  ;;  %v2390_v40 = vshrl.u32 %v2224_v44, 16  ;;  %v1031_v36 = vadd.f32 %v3940_v48, %v934_v8  ;;  %v1144_v46 = vrot.slane %v1070_v31, 1 }
 0x123   : > { %v2226_v28 = vpack.c.bf16 %v2178_v5, %v2178_v5  ;;  %v1033_v51 = vadd.f32 %v985_v55, %v936_v19  ;;  %v2395_v37 = vshrl.u32 %v2225_v6, 16  ;;  %v2398_v62 = vshll.u32 %v2225_v6, 16  ;;  %v4254_v6 = vld [vmem:[#allocation2 + $0x188] sm:$0xff] }
 0x124   : > { %v1032_v42 = vadd.f32 %v984_v60, %v935_v1  ;;  %v2934_v57 = vrot.slane %v2390_v40, 11  ;;  %v1145_v63 = vrot.slane %v1071_v27, 1  ;;  %v1240_v50 = vadd.f32 %v1144_v46, %v1031_v36 }
 0x125   : > { %v2404_v11 = vshrl.u32 %v2226_v28, 16  ;;  %v2407_v49 = vshll.u32 %v2226_v28, 16  ;;  %v2397_v3 = vrot.slane %v2395_v37, 7  ;;  %v1289_v47 = vmul.f32 %v3149_v20, %v3900_v43 }
 0x126   : > { %v1290_v2 = vmul.f32 %v3149_v20, %v3959_v14  ;;  %v1146_v48 = vsel %vm533_vm2, %v1144_v46, %v1145_v63  ;;  %v1242_v55 = vadd.f32 %v1145_v63, %v1033_v51  ;;  %v1562_v60 = vmul.f32 %v4250_v16, %v3151_v21  ;;  %v4258_v14 = vld [vmem:[#allocation2 + $0x190] sm:$0xff] }
 0x127   : > { %v2406_v38 = vrot.slane %v2404_v11, 7  ;;  %v2400_v53 = vor.u32 %v2398_v62, %v2397_v3  ;;  %v2402_v5 = vrot.slane %v2397_v3, 4  ;;  %v1241_v44 = vadd.f32 %v1146_v48, %v1032_v42 }
 0x128   : > { %v1405_v56 = vrot.slane %v1289_v47, 2  ;;  %v1406_v19 = vrot.slane %v1290_v2, 2  ;;  %v1563_v43 = vmul.f32 %v4254_v6, %v3151_v21  ;;  %v1564_v1 = vmul.f32 %v4258_v14, %v3151_v21 }
 0x129   : > { %v2409_v8 = vor.u32 %v2407_v49, %v2406_v38  ;;  %v2401_v31 = vsel %vm3314_vm6, %v2934_v57, %v2400_v53  ;;  %v1649_v28 = vmul.f32 %v4254_v6, %v3153_v22  ;;  %v1650_v40 = vmul.f32 %v4258_v14, %v3153_v22  ;;  %v4278_v53 = vld [vmem:[#allocation2 + $0x198] sm:$0xff] }
 0x12a   : > { %v1513_v27 = vadd.f32 %v1405_v56, %v1240_v50  ;;  %v2621_v51 = vunpack.c.l.b16 %v2401_v31  ;;  %v1407_v37 = vsel %vm775_vm3, %v1405_v56, %v1406_v19  ;;  %v4844_v62 = vrot.slane %v3957_v32, 2  ;;  %v3000_v31 = vld [vmem:[#allocation2 + $0x1c8] sm:$0xff] }
 0x12b   : > { %v2410_v36 = vsel %vm3314_vm6, %v2402_v5, %v2409_v8  ;;  %v1514_v11 = vadd.f32 %v1407_v37, %v1241_v44  ;;  %v1723_v63 = vrot.slane %v1649_v28, 1  ;;  %v1724_v3 = vrot.slane %v1650_v40, 1  ;;  %v3001_v28 = vld [vmem:[#allocation2 + $0x1d0] sm:$0xff] }
 0x12c   : > { %v1409_v42 = vsel %vm775_vm3, %v1406_v19, %v4844_v62  ;;  %v2622_v46 = vunpack.c.l.b16 %v2410_v36  ;;  %v1610_v49 = vadd.f32 %v1562_v60, %v1513_v27  ;;  %v1868_v50 = vmul.f32 %v4254_v6, %v3155_v23 }
 0x12d   : > { %v1515_v57 = vadd.f32 %v1409_v42, %v1242_v55  ;;  %v1869_v47 = vmul.f32 %v4258_v14, %v3155_v23  ;;  %v1611_v38 = vadd.f32 %v1563_v43, %v1514_v11  ;;  %v1870_v32 = vmul.f32 %v4278_v53, %v3155_v23  ;;  %v4294_v11 = vld [vmem:[%s4763_s3] ss:$0 sm:$0xff] }
 0x12e   : > { %v2647_v2 = vpack.c.b16 %v2622_v46, %v2621_v51  ;;  %v1725_v5 = vsel %vm533_vm2, %v1723_v63, %v1724_v3  ;;  %v1819_v55 = vadd.f32 %v1723_v63, %v1610_v49  ;;  %v1984_v60 = vrot.slane %v1868_v50, 2 }
 0x12f   : > { %v1612_v48 = vadd.f32 %v1564_v1, %v1515_v57  ;;  %v1985_v44 = vrot.slane %v1869_v47, 2  ;;  %v1820_v56 = vadd.f32 %v1725_v5, %v1611_v38  ;;  %v1987_v19 = vrot.slane %v1870_v32, 2  ;;  %v4845_v32 = vld [vmem:[#allocation12_spill] sm:$0xff] }
 0x130   : > { %2950 = vmatmul.msk.bf16.gmra.mxu1 %vm226_vm1, %v2647_v2  ;;  %v463_v27 = vmul.f32 %v3000_v31, %v3140_v15  ;;  %v2092_v1 = vadd.f32 %v1984_v60, %v1819_v55  ;;  %v464_v40 = vmul.f32 %v3001_v28, %v3140_v15  ;;  %v498_v36 = vmul.f32 %v3001_v28, %v3135_v12 }
 0x131   : > { %v1821_v8 = vadd.f32 %v1724_v3, %v1612_v48  ;;  %v1986_v43 = vsel %vm775_vm3, %v1984_v60, %v1985_v44  ;;  %v1988_v51 = vsel %vm775_vm3, %v1985_v44, %v1987_v19  ;;  %v721_v62 = vmul.f32 %v3000_v31, %v3123_v7  ;;  %v4847_v19 = vld [vmem:[#allocation15_spill] sm:$0xff] }
 0x132   : > { %v2093_v37 = vadd.f32 %v1986_v43, %v1820_v56  ;;  %v722_v42 = vmul.f32 %v3001_v28, %v3123_v7  ;;  %v2140_v57 = vadd.f32 %v4294_v11, %v2092_v1  ;;  %v577_v49 = vrot.slane %v498_v36, 1  ;;  %v411_v36 = vld [vmem:[#allocation2 + $0x200] sm:$0xff] }
 0x133   : > { %v2094_v46 = vadd.f32 %v1988_v51, %v1821_v8  ;;  %v996_v63 = vmul.f32 %v3143_v17, %v3993_v54  ;;  %v846_v50 = vrot.slane %v721_v62, 2  ;;  %v997_v2 = vmul.f32 %v3143_v17, %v4053_v4  ;;  %v4849_v51 = vld [vmem:[#allocation13_spill] sm:$0xff] }
 0x134   : > { %v2141_v3 = vadd.f32 %v4294_v11, %v2093_v37  ;;  %v847_v47 = vrot.slane %v722_v42, 2  ;;  %v2188_v48 = vmax.f32 %v2140_v57, 0.0  ;;  %v4846_v5 = vrot.slane %v4845_v32, 1 }
 0x135   : > { %v2142_v38 = vadd.f32 %v4294_v11, %v2094_v46  ;;  %v674_v60 = vadd.f32 %v577_v49, %v464_v40  ;;  %v4848_v31 = vrot.slane %v4847_v19, 2  ;;  %v946_v37 = vadd.f32 %v846_v50, %v4849_v51 }
 0x136   : > { %v578_v55 = vsel %vm533_vm2, %v4846_v5, %v577_v49  ;;  %v2189_v44 = vmax.f32 %v2141_v3, 0.0  ;;  %v848_v8 = vsel %vm775_vm3, %v846_v50, %v847_v47  ;;  %v2236_v28 = vpack.c.bf16 %v2188_v48, %v2188_v48 }
 0x137   : > { %v673_v56 = vadd.f32 %v578_v55, %v463_v27  ;;  %v850_v43 = vsel %vm775_vm3, %v847_v47, %v4848_v31  ;;  %v2190_v1 = vmax.f32 %v2142_v38, 0.0  ;;  %v4312_v57 = vmul.f32 %v3143_v17, %v411_v36 }
 0x138   : > { %v948_v62 = vadd.f32 %v850_v43, %v674_v60  ;;  %v2237_v42 = vpack.c.bf16 %v2189_v44, %v2189_v44  ;;  %v1078_v27 = vmul.f32 %v3145_v18, %v3993_v54  ;;  %v2478_v49 = vshrl.u32 %v2236_v28, 16  ;;  %v4323_v43 = vld [vmem:[#allocation2 + $0x208] sm:$0xff] }
 0x139   : > { %v947_v46 = vadd.f32 %v848_v8, %v673_v56  ;;  %v2238_v40 = vpack.c.bf16 %v2190_v1, %v2190_v1  ;;  %v1043_v3 = vadd.f32 %v4033_v13, %v946_v37  ;;  %v1079_v50 = vmul.f32 %v3145_v18, %v4053_v4  ;;  %v414_v8 = vld [vmem:[#allocation2 + $0x218] sm:$0xff] }
 0x13a   : > { %v1045_v32 = vadd.f32 %v997_v2, %v948_v62  ;;  %v2483_v47 = vshrl.u32 %v2237_v42, 16  ;;  %v2486_v38 = vshll.u32 %v2237_v42, 16  ;;  %v2938_v5 = vrot.slane %v2478_v49, 11 }
 0x13b   : > { %v1044_v48 = vadd.f32 %v996_v63, %v947_v46  ;;  %v2492_v55 = vshrl.u32 %v2238_v40, 16  ;;  %v2495_v60 = vshll.u32 %v2238_v40, 16  ;;  %v1156_v44 = vrot.slane %v1078_v27, 1  ;;  %v4325_v63 = vld [vmem:[#allocation2 + $0x210] sm:$0xff] }
 0x13c   : > { %v2485_v56 = vrot.slane %v2483_v47, 7  ;;  %v1157_v19 = vrot.slane %v1079_v50, 1  ;;  %v1301_v31 = vmul.f32 %v3149_v20, %v3993_v54  ;;  %v1302_v13 = vmul.f32 %v3149_v20, %v4053_v4 }
 0x13d   : > { %v2494_v2 = vrot.slane %v2492_v55, 7  ;;  %v1252_v1 = vadd.f32 %v1156_v44, %v1043_v3  ;;  %v4328_v28 = vmul.f32 %v3149_v20, %v414_v8  ;;  %v1574_v51 = vmul.f32 %v3151_v21, %v411_v36 }
 0x13e   : > { %v2488_v37 = vor.u32 %v2486_v38, %v2485_v56  ;;  %v2490_v62 = vrot.slane %v2485_v56, 4  ;;  %v1158_v42 = vsel %vm533_vm2, %v1156_v44, %v1157_v19  ;;  %v1254_v46 = vadd.f32 %v1157_v19, %v1045_v32 }
 0x13f   : > { %v2497_v54 = vor.u32 %v2495_v60, %v2494_v2  ;;  %v1253_v27 = vadd.f32 %v1158_v42, %v1044_v48  ;;  %v1425_v40 = vrot.slane %v1301_v31, 2  ;;  %v1426_v4 = vrot.slane %v1302_v13, 2 }
 0x140   : > { %v2489_v49 = vsel %vm3314_vm6, %v2938_v5, %v2488_v37  ;;  %v1433_v47 = vrot.slane %v4328_v28, 2  ;;  %v1575_v3 = vmul.f32 %v3151_v21, %v4323_v43  ;;  %v1576_v36 = vmul.f32 %v3151_v21, %v4325_v63 }
 0x141   : > { %v2498_v38 = vsel %vm3314_vm6, %v2490_v62, %v2497_v54  ;;  %v2629_v50 = vunpack.c.l.b16 %v2489_v49  ;;  %v1427_v32 = vsel %vm775_vm3, %v1425_v40, %v1426_v4  ;;  %v1429_v48 = vsel %vm775_vm3, %v1426_v4, %v1428_v59  ;;  %v4359_v4 = vld [vmem:[#allocation2 + $0x70] sm:$0xff] }
 0x142   : > { %v2630_v55 = vunpack.c.l.b16 %v2498_v38  ;;  %v1525_v5 = vadd.f32 %v1425_v40, %v1252_v1  ;;  %v1526_v60 = vadd.f32 %v1427_v32, %v1253_v27  ;;  %v1527_v44 = vadd.f32 %v1429_v48, %v1254_v46  ;;  %v4355_v27 = vld [vmem:[#allocation2 + $0x68] sm:$0xff] }
 0x143   : > { %v1657_v56 = vmul.f32 %v3153_v22, %v4323_v43  ;;  %v1658_v19 = vmul.f32 %v3153_v22, %v4325_v63  ;;  %v1880_v31 = vmul.f32 %v3155_v23, %v4323_v43  ;;  %v1881_v13 = vmul.f32 %v3155_v23, %v4325_v63 }
 0x144   : > { %v2651_v2 = vpack.c.b16 %v2630_v55, %v2629_v50  ;;  %v1622_v9 = vadd.f32 %v1574_v51, %v1525_v5  ;;  %v1623_v37 = vadd.f32 %v1575_v3, %v1526_v60  ;;  %v1624_v59 = vadd.f32 %v1576_v36, %v1527_v44 }
 0x145   : > { %v1735_v62 = vrot.slane %v1657_v56, 1  ;;  %v1736_v1 = vrot.slane %v1658_v19, 1  ;;  %v1882_v42 = vmul.f32 %v3155_v23, %v414_v8  ;;  %v2004_v46 = vrot.slane %v1880_v31, 2 }
 0x146   : > { %2954 = vmatmul.msk.bf16.gmra.mxu2 %vm226_vm1, %v2651_v2  ;;  %v2005_v54 = vrot.slane %v1881_v13, 2  ;;  %v430_v40 = vmul.f32 %v4355_v27, %v3140_v15  ;;  %v431_v51 = vmul.f32 %v4359_v4, %v3140_v15  ;;  %v476_v49 = vmul.f32 %v4359_v4, %v3135_v12 }
 0x147   : > { %v1737_v3 = vsel %vm533_vm2, %v1735_v62, %v1736_v1  ;;  %v1831_v8 = vadd.f32 %v1735_v62, %v1622_v9  ;;  %v1833_v36 = vadd.f32 %v1736_v1, %v1624_v59  ;;  %v2007_v38 = vrot.slane %v1882_v42, 2 }
 0x148   : > { %v1832_v50 = vadd.f32 %v1737_v3, %v1623_v37  ;;  %v2006_v32 = vsel %vm775_vm3, %v2004_v46, %v2005_v54  ;;  %v544_v48 = vrot.slane %v476_v49, 1  ;;  %v688_v55 = vmul.f32 %v4355_v27, %v3123_v7  ;;  %v4851_v3 = vld [vmem:[#allocation19_spill] sm:$0xff] }
 0x149   : > { %v2008_v5 = vsel %vm775_vm3, %v2005_v54, %v2007_v38  ;;  %v2104_v60 = vadd.f32 %v2004_v46, %v1831_v8  ;;  %v689_v44 = vmul.f32 %v4359_v4, %v3123_v7  ;;  %v962_v56 = vmul.f32 %v4114_v58, %v3143_v17 }
 0x14a   : > { %v2105_v19 = vadd.f32 %v2006_v32, %v1832_v50  ;;  %v2106_v31 = vadd.f32 %v2008_v5, %v1833_v36  ;;  %v4850_v13 = vrot.slane %v3699_v10, 1  ;;  %v641_v9 = vadd.f32 %v544_v48, %v431_v51 }
 0x14b   : > { %v2152_v37 = vadd.f32 %v4294_v11, %v2104_v60  ;;  %v791_v62 = vrot.slane %v688_v55, 2  ;;  %v792_v1 = vrot.slane %v689_v44, 2  ;;  %v963_v54 = vmul.f32 %v4118_v41, %v3143_v17 }
 0x14c   : > { %v545_v2 = vsel %vm533_vm2, %v4850_v13, %v544_v48  ;;  %v2153_v42 = vadd.f32 %v4294_v11, %v2105_v19  ;;  %v2154_v46 = vadd.f32 %v4294_v11, %v2106_v31  ;;  %v964_v58 = vmul.f32 %v4122_v35, %v3143_v17 }
 0x14d   : > { %v640_v59 = vadd.f32 %v545_v2, %v430_v40  ;;  %v2200_v49 = vmax.f32 %v2152_v37, 0.0  ;;  %v793_v10 = vsel %vm775_vm3, %v791_v62, %v792_v1  ;;  %v4852_v51 = vrot.slane %v4851_v3, 2  ;;  %v4853_v40 = vld [vmem:[#allocation20_spill] sm:$0xff] }
 0x14e   : > { %v913_v36 = vadd.f32 %v791_v62, %v4853_v40  ;;  %v2201_v38 = vmax.f32 %v2153_v42, 0.0  ;;  %v2202_v50 = vmax.f32 %v2154_v46, 0.0  ;;  %v1056_v60 = vmul.f32 %v4118_v41, %v3145_v18 }
 0x14f   : > { %v795_v8 = vsel %vm775_vm3, %v792_v1, %v4852_v51  ;;  %v914_v32 = vadd.f32 %v793_v10, %v640_v59  ;;  %v2248_v55 = vpack.c.bf16 %v2200_v49, %v2200_v49  ;;  %v1057_v44 = vmul.f32 %v4122_v35, %v3145_v18 }
 0x150   : > { %v915_v48 = vadd.f32 %v795_v8, %v641_v9  ;;  %v1010_v5 = vadd.f32 %v962_v56, %v913_v36  ;;  %v2249_v19 = vpack.c.bf16 %v2201_v38, %v2201_v38  ;;  %v2250_v31 = vpack.c.bf16 %v2202_v50, %v2202_v50 }
 0x151   : > { %v1011_v13 = vadd.f32 %v963_v54, %v914_v32  ;;  %v2566_v37 = vshrl.u32 %v2248_v55, 16  ;;  %v1123_v1 = vrot.slane %v1056_v60, 1  ;;  %v1124_v3 = vrot.slane %v1057_v44, 1  ;;  %v4401_v32 = vld [vmem:[#allocation2 + $0xa8] sm:$0xff] }
 0x152   : > { %v1012_v2 = vadd.f32 %v964_v58, %v915_v48  ;;  %v1268_v62 = vmul.f32 %v4118_v41, %v3149_v20  ;;  %v2571_v59 = vshrl.u32 %v2249_v19, 16  ;;  %v2574_v9 = vshll.u32 %v2249_v19, 16  ;;  %v3005_v41 = vld [vmem:[#allocation2 + $0xa0] sm:$0xff] }
 0x153   : > { %v2580_v42 = vshrl.u32 %v2250_v31, 16  ;;  %v2583_v56 = vshll.u32 %v2250_v31, 16  ;;  %v2942_v46 = vrot.slane %v2566_v37, 11  ;;  %v1125_v49 = vsel %vm533_vm2, %v1123_v1, %v1124_v3 }
 0x154   : > { %v1219_v10 = vadd.f32 %v1123_v1, %v1010_v5  ;;  %v1221_v51 = vadd.f32 %v1124_v3, %v1012_v2  ;;  %v2573_v8 = vrot.slane %v2571_v59, 7  ;;  %v1220_v36 = vadd.f32 %v1125_v49, %v1011_v13  ;;  %v4405_v13 = vld [vmem:[#allocation2 + $0xb0] sm:$0xff] }
 0x155   : > { %v2582_v40 = vrot.slane %v2580_v42, 7  ;;  %v1269_v54 = vmul.f32 %v4122_v35, %v3149_v20  ;;  %v1270_v58 = vmul.f32 %v4142_v45, %v3149_v20  ;;  %v1370_v38 = vrot.slane %v1268_v62, 2 }
 0x156   : > { %v1541_v50 = vmul.f32 %v3005_v41, %v3151_v21  ;;  %v1542_v48 = vmul.f32 %v4401_v32, %v3151_v21  ;;  %v2576_v55 = vor.u32 %v2574_v9, %v2573_v8  ;;  %v2578_v5 = vrot.slane %v2573_v8, 4 }
 0x157   : > { %v2585_v60 = vor.u32 %v2583_v56, %v2582_v40  ;;  %v1371_v44 = vrot.slane %v1269_v54, 2  ;;  %v1373_v19 = vrot.slane %v1270_v58, 2  ;;  %v1492_v31 = vadd.f32 %v1370_v38, %v1219_v10 }
 0x158   : > { %v1543_v35 = vmul.f32 %v4405_v13, %v3151_v21  ;;  %v1635_v45 = vmul.f32 %v4401_v32, %v3153_v22  ;;  %v2577_v2 = vsel %vm3314_vm6, %v2942_v46, %v2576_v55  ;;  %v1636_v3 = vmul.f32 %v4405_v13, %v3153_v22 }
 0x159   : > { %v2586_v37 = vsel %vm3314_vm6, %v2578_v5, %v2585_v60  ;;  %v1372_v1 = vsel %vm775_vm3, %v1370_v38, %v1371_v44  ;;  %v2637_v62 = vunpack.c.l.b16 %v2577_v2  ;;  %v1374_v9 = vsel %vm775_vm3, %v1371_v44, %v1373_v19  ;;  %v3008_v5 = vld [vmem:[#allocation2 + $0xb8] sm:$0xff]  ;;  %v4426_v44 = vld [vmem:[#allocation2 + $0xe8] sm:$0xff] }
 0x15a   : > { %v2638_v59 = vunpack.c.l.b16 %v2586_v37  ;;  %v1493_v42 = vadd.f32 %v1372_v1, %v1220_v36  ;;  %v1494_v56 = vadd.f32 %v1374_v9, %v1221_v51  ;;  %v1589_v49 = vadd.f32 %v1541_v50, %v1492_v31 }
 0x15b   : > { %v1702_v10 = vrot.slane %v1635_v45, 1  ;;  %v1703_v8 = vrot.slane %v1636_v3, 1  ;;  %v1847_v46 = vmul.f32 %v4401_v32, %v3155_v23  ;;  %v1848_v58 = vmul.f32 %v4405_v13, %v3155_v23  ;;  %v4430_v45 = vld [vmem:[#allocation2 + $0xf0] sm:$0xff] }
 0x15c   : > { %v2655_v40 = vpack.c.b16 %v2638_v59, %v2637_v62  ;;  %v1590_v54 = vadd.f32 %v1542_v48, %v1493_v42  ;;  %v1591_v38 = vadd.f32 %v1543_v35, %v1494_v56  ;;  %v1849_v60 = vmul.f32 %v3008_v5, %v3155_v23 }
 0x15d   : > { %v1704_v41 = vsel %vm533_vm2, %v1702_v10, %v1703_v8  ;;  %v1798_v55 = vadd.f32 %v1702_v10, %v1589_v49  ;;  %v1949_v36 = vrot.slane %v1847_v46, 2  ;;  %v1950_v50 = vrot.slane %v1848_v58, 2 }
 0x15e   : > { %2958 = vmatmul.msk.bf16.gmra.mxu3 %vm226_vm1, %v2655_v40  ;;  %v1799_v51 = vadd.f32 %v1704_v41, %v1590_v54  ;;  %v442_v48 = vmul.f32 %v4426_v44, %v3140_v15  ;;  %v1800_v19 = vadd.f32 %v1703_v8, %v1591_v38  ;;  %v1952_v31 = vrot.slane %v1849_v60, 2 }
 0x15f   : > { %v443_v35 = vmul.f32 %v4430_v45, %v3140_v15  ;;  %v484_v2 = vmul.f32 %v4430_v45, %v3135_v12  ;;  %v1951_v37 = vsel %vm775_vm3, %v1949_v36, %v1950_v50  ;;  %v2071_v1 = vadd.f32 %v1949_v36, %v1798_v55  ;;  %v4855_v36 = vld [vmem:[#allocation21_spill] sm:$0xff] }
 0x160   : > { %v700_v3 = vmul.f32 %v4426_v44, %v3123_v7  ;;  %v701_v62 = vmul.f32 %v4430_v45, %v3123_v7  ;;  %v1953_v59 = vsel %vm775_vm3, %v1950_v50, %v1952_v31  ;;  %v2072_v9 = vadd.f32 %v1951_v37, %v1799_v51  ;;  %v4857_v31 = vld [vmem:[#allocation22_spill] sm:$0xff] }
 0x161   : > { %v556_v42 = vrot.slane %v484_v2, 1  ;;  %v974_v56 = vmul.f32 %v4184_v39, %v3143_v17  ;;  %v2073_v49 = vadd.f32 %v1953_v59, %v1800_v19  ;;  %v2119_v10 = vadd.f32 %v4294_v11, %v2071_v1 }
 0x162   : > { %v811_v8 = vrot.slane %v700_v3, 2  ;;  %v812_v40 = vrot.slane %v701_v62, 2  ;;  %v2120_v54 = vadd.f32 %v4294_v11, %v2072_v9  ;;  %v4854_v46 = vrot.slane %v3809_v24, 1 }
 0x163   : > { %v653_v38 = vadd.f32 %v556_v42, %v443_v35  ;;  %v975_v41 = vmul.f32 %v4188_v29, %v3143_v17  ;;  %v2121_v55 = vadd.f32 %v4294_v11, %v2073_v49  ;;  %v2167_v5 = vmax.f32 %v2119_v10, 0.0 }
 0x164   : > { %v557_v58 = vsel %vm533_vm2, %v4854_v46, %v556_v42  ;;  %v813_v39 = vsel %vm775_vm3, %v811_v8, %v812_v40  ;;  %v2168_v51 = vmax.f32 %v2120_v54, 0.0  ;;  %v4856_v50 = vrot.slane %v4855_v36, 2 }
 0x165   : > { %v652_v60 = vadd.f32 %v557_v58, %v442_v48  ;;  %v925_v2 = vadd.f32 %v811_v8, %v4857_v31  ;;  %v976_v24 = vmul.f32 %v4192_v25, %v3143_v17  ;;  %v2169_v35 = vmax.f32 %v2121_v55, 0.0 }
 0x166   : > { %v815_v19 = vsel %vm775_vm3, %v812_v40, %v4856_v50  ;;  %v2215_v37 = vpack.c.bf16 %v2167_v5, %v2167_v5  ;;  %v2216_v62 = vpack.c.bf16 %v2168_v51, %v2168_v51  ;;  %v1064_v48 = vmul.f32 %v4188_v29, %v3145_v18 }
 0x167   : > { %v926_v1 = vadd.f32 %v813_v39, %v652_v60  ;;  %v927_v3 = vadd.f32 %v815_v19, %v653_v38  ;;  %v1022_v59 = vadd.f32 %v974_v56, %v925_v2  ;;  %v1065_v9 = vmul.f32 %v4192_v25, %v3145_v18 }
 0x168   : > { %v2217_v42 = vpack.c.bf16 %v2169_v35, %v2169_v35  ;;  %v2324_v49 = vshrl.u32 %v2215_v37, 16  ;;  %v2329_v8 = vshrl.u32 %v2216_v62, 16  ;;  %v2332_v54 = vshll.u32 %v2216_v62, 16  ;;  %v3011_v37 = vld [vmem:[#allocation2 + $0x120] sm:$0xff] }
 0x169   : > { %v1023_v10 = vadd.f32 %v975_v41, %v926_v1  ;;  %v1024_v40 = vadd.f32 %v976_v24, %v927_v3  ;;  %v1135_v46 = vrot.slane %v1064_v48, 1  ;;  %v1136_v58 = vrot.slane %v1065_v9, 1  ;;  %v4471_v48 = vld [vmem:[#allocation2 + $0x128] sm:$0xff] }
 0x16a   : > { %v2931_v55 = vrot.slane %v2324_v49, 11  ;;  %v2338_v5 = vshrl.u32 %v2217_v42, 16  ;;  %v2341_v60 = vshll.u32 %v2217_v42, 16  ;;  %v1280_v56 = vmul.f32 %v4188_v29, %v3149_v20  ;;  %v4477_v42 = vld [vmem:[#allocation2 + $0x130] sm:$0xff] }
 0x16b   : > { %v2331_v38 = vrot.slane %v2329_v8, 7  ;;  %v1137_v39 = vsel %vm533_vm2, %v1135_v46, %v1136_v58  ;;  %v1231_v51 = vadd.f32 %v1135_v46, %v1022_v59  ;;  %v1233_v36 = vadd.f32 %v1136_v58, %v1024_v40 }
 0x16c   : > { %v2340_v50 = vrot.slane %v2338_v5, 7  ;;  %v1232_v19 = vadd.f32 %v1137_v39, %v1023_v10  ;;  %v1281_v41 = vmul.f32 %v4192_v25, %v3149_v20  ;;  %v1282_v31 = vmul.f32 %v4212_v0, %v3149_v20 }
 0x16d   : > { %v2334_v2 = vor.u32 %v2332_v54, %v2331_v38  ;;  %v2336_v24 = vrot.slane %v2331_v38, 4  ;;  %v1390_v35 = vrot.slane %v1280_v56, 2  ;;  %v1553_v1 = vmul.f32 %v3011_v37, %v3151_v21 }
 0x16e   : > { %v2343_v29 = vor.u32 %v2341_v60, %v2340_v50  ;;  %v1391_v3 = vrot.slane %v1281_v41, 2  ;;  %v1393_v62 = vrot.slane %v1282_v31, 2  ;;  %v1554_v59 = vmul.f32 %v4471_v48, %v3151_v21  ;;  %v3014_v31 = vld [vmem:[#allocation2 + $0x138] sm:$0xff] }
 0x16f   : > { %v2335_v25 = vsel %vm3314_vm6, %v2931_v55, %v2334_v2  ;;  %v1504_v9 = vadd.f32 %v1390_v35, %v1231_v51  ;;  %v1555_v0 = vmul.f32 %v4477_v42, %v3151_v21  ;;  %v1643_v49 = vmul.f32 %v4471_v48, %v3153_v22 }
 0x170   : > { %v2344_v10 = vsel %vm3314_vm6, %v2336_v24, %v2343_v29  ;;  %v2615_v40 = vunpack.c.l.b16 %v2335_v25  ;;  %v1392_v8 = vsel %vm775_vm3, %v1390_v35, %v1391_v3  ;;  %v1394_v54 = vsel %vm775_vm3, %v1391_v3, %v1393_v62  ;;  %v4499_v3 = vld [vmem:[#allocation2 + $0x170] sm:$0xff] }
 0x171   : > { %v2616_v46 = vunpack.c.l.b16 %v2344_v10  ;;  %v1505_v58 = vadd.f32 %v1392_v8, %v1232_v19  ;;  %v1506_v55 = vadd.f32 %v1394_v54, %v1233_v36  ;;  %v1601_v5 = vadd.f32 %v1553_v1, %v1504_v9  ;;  %v4495_v1 = vld [vmem:[#allocation2 + $0x168] sm:$0xff] }
 0x172   : > { %v1644_v60 = vmul.f32 %v4477_v42, %v3153_v22  ;;  %v1714_v56 = vrot.slane %v1643_v49, 1  ;;  %v1859_v38 = vmul.f32 %v4471_v48, %v3155_v23  ;;  %v1860_v39 = vmul.f32 %v4477_v42, %v3155_v23 }
 0x173   : > { %v2644_v51 = vpack.c.b16 %v2616_v46, %v2615_v40  ;;  %v1602_v50 = vadd.f32 %v1554_v59, %v1505_v58  ;;  %v1603_v41 = vadd.f32 %v1555_v0, %v1506_v55  ;;  %v1861_v2 = vmul.f32 %v3014_v31, %v3155_v23 }
 0x174   : > { %v1715_v24 = vrot.slane %v1644_v60, 1  ;;  %v1810_v19 = vadd.f32 %v1714_v56, %v1601_v5  ;;  %v1969_v36 = vrot.slane %v1859_v38, 2  ;;  %v1970_v35 = vrot.slane %v1860_v39, 2 }
 0x175   : > { %2947 = vmatmul.msk.bf16.gmra.mxu0 %vm226_vm1, %v2644_v51  ;;  %v1972_v37 = vrot.slane %v1861_v2, 2  ;;  %v454_v29 = vmul.f32 %v4495_v1, %v3140_v15  ;;  %v455_v62 = vmul.f32 %v4499_v3, %v3140_v15  ;;  %v492_v59 = vmul.f32 %v4499_v3, %v3135_v12 }
 0x176   : > { %v1716_v25 = vsel %vm533_vm2, %v1714_v56, %v1715_v24  ;;  %v1812_v9 = vadd.f32 %v1715_v24, %v1603_v41  ;;  %v1971_v0 = vsel %vm775_vm3, %v1969_v36, %v1970_v35  ;;  %v2083_v49 = vadd.f32 %v1969_v36, %v1810_v19 }
 0x177   : > { %v1811_v10 = vadd.f32 %v1716_v25, %v1602_v50  ;;  %v1973_v40 = vsel %vm775_vm3, %v1970_v35, %v1972_v37  ;;  %v568_v8 = vrot.slane %v492_v59, 1  ;;  %v712_v54 = vmul.f32 %v4495_v1, %v3123_v7 }
 0x178   : > { %v2085_v46 = vadd.f32 %v1973_v40, %v1812_v9  ;;  %v2131_v58 = vadd.f32 %v4294_v11, %v2083_v49  ;;  %v713_v55 = vmul.f32 %v4499_v3, %v3123_v7  ;;  %v986_v5 = vmul.f32 %v4250_v16, %v3143_v17 }
 0x179   : > { %v2084_v60 = vadd.f32 %v1971_v0, %v1811_v10  ;;  %v4858_v56 = vrot.slane %v3909_v52, 1  ;;  %v665_v39 = vadd.f32 %v568_v8, %v455_v62  ;;  %v831_v51 = vrot.slane %v712_v54, 2 }
 0x17a   : > { %v2133_v50 = vadd.f32 %v4294_v11, %v2085_v46  ;;  %v2179_v41 = vmax.f32 %v2131_v58, 0.0  ;;  %v832_v2 = vrot.slane %v713_v55, 2  ;;  %v987_v36 = vmul.f32 %v4254_v6, %v3143_v17 }
 0x17b   : > { %v569_v38 = vsel %vm533_vm2, %v4858_v56, %v568_v8  ;;  %v2132_v24 = vadd.f32 %v4294_v11, %v2084_v60  ;;  %v937_v19 = vadd.f32 %v831_v51, %v3927_v30  ;;  %v988_v16 = vmul.f32 %v4258_v14, %v3143_v17 }
 0x17c   : > { %v664_v31 = vadd.f32 %v569_v38, %v454_v29  ;;  %v2181_v52 = vmax.f32 %v2133_v50, 0.0  ;;  %v2227_v35 = vpack.c.bf16 %v2179_v41, %v2179_v41  ;;  %v833_v37 = vsel %vm775_vm3, %v831_v51, %v832_v2 }
 0x17d   : > { %v4859_v62 = vrot.slane %v3922_v61, 2  ;;  %v2180_v29 = vmax.f32 %v2132_v24, 0.0  ;;  %v1034_v0 = vadd.f32 %v986_v5, %v937_v19  ;;  %v1072_v10 = vmul.f32 %v4254_v6, %v3145_v18 }
 0x17e   : > { %v938_v25 = vadd.f32 %v833_v37, %v664_v31  ;;  %v2229_v49 = vpack.c.bf16 %v2181_v52, %v2181_v52  ;;  %v2412_v30 = vshrl.u32 %v2227_v35, 16  ;;  %v1073_v40 = vmul.f32 %v4258_v14, %v3145_v18 }
 0x17f   : > { %v835_v59 = vsel %vm775_vm3, %v832_v2, %v4859_v62  ;;  %v2228_v8 = vpack.c.bf16 %v2180_v29, %v2180_v29  ;;  %v1292_v61 = vmul.f32 %v4254_v6, %v3149_v20  ;;  %v1147_v56 = vrot.slane %v1072_v10, 1 }
 0x180   : > { %v939_v9 = vadd.f32 %v835_v59, %v665_v39  ;;  %v1035_v54 = vadd.f32 %v987_v36, %v938_v25  ;;  %v2935_v58 = vrot.slane %v2412_v30, 11  ;;  %v2426_v55 = vshrl.u32 %v2229_v49, 16  ;;  %v4547_v30 = vld [vmem:[#allocation2 + $0x1b0] sm:$0xff] }
 0x181   : > { %v2429_v60 = vshll.u32 %v2229_v49, 16  ;;  %v2417_v38 = vshrl.u32 %v2228_v8, 16  ;;  %v2420_v5 = vshll.u32 %v2228_v8, 16  ;;  %v1148_v39 = vrot.slane %v1073_v40, 1 }
 0x182   : > { %v1036_v46 = vadd.f32 %v988_v16, %v939_v9  ;;  %v1293_v51 = vmul.f32 %v4258_v14, %v3149_v20  ;;  %v2428_v50 = vrot.slane %v2426_v55, 7  ;;  %v1243_v41 = vadd.f32 %v1147_v56, %v1034_v0  ;;  %v3017_v14 = vld [vmem:[#allocation2 + $0x1a0] sm:$0xff]  ;;  %v4543_v0 = vld [vmem:[#allocation2 + $0x1a8] sm:$0xff] }
 0x183   : > { %v1294_v31 = vmul.f32 %v4278_v53, %v3149_v20  ;;  %v1410_v2 = vrot.slane %v1292_v61, 2  ;;  %v2419_v24 = vrot.slane %v2417_v38, 7  ;;  %v1149_v19 = vsel %vm533_vm2, %v1147_v56, %v1148_v39 }
 0x184   : > { %v1245_v6 = vadd.f32 %v1148_v39, %v1036_v46  ;;  %v1411_v36 = vrot.slane %v1293_v51, 2  ;;  %v2431_v16 = vor.u32 %v2429_v60, %v2428_v50  ;;  %v1244_v52 = vadd.f32 %v1149_v19, %v1035_v54 }
 0x185   : > { %v1413_v35 = vrot.slane %v1294_v31, 2  ;;  %v1516_v37 = vadd.f32 %v1410_v2, %v1243_v41  ;;  %v2422_v62 = vor.u32 %v2420_v5, %v2419_v24  ;;  %v2424_v59 = vrot.slane %v2419_v24, 4  ;;  %v3020_v41 = vld [vmem:[#allocation2 + $0x1b8] sm:$0xff] }
 0x186   : > { %v1412_v29 = vsel %vm775_vm3, %v1410_v2, %v1411_v36  ;;  %v1565_v25 = vmul.f32 %v3017_v14, %v3151_v21  ;;  %v1566_v49 = vmul.f32 %v4543_v0, %v3151_v21  ;;  %v1567_v10 = vmul.f32 %v4547_v30, %v3151_v21  ;;  %v4564_v2 = vld [vmem:[#allocation2 + $0x1e8] sm:$0xff] }
 0x187   : > { %v1414_v9 = vsel %vm775_vm3, %v1411_v36, %v1413_v35  ;;  %v1517_v53 = vadd.f32 %v1412_v29, %v1244_v52  ;;  %v2423_v40 = vsel %vm3314_vm6, %v2935_v58, %v2422_v62  ;;  %v2432_v8 = vsel %vm3314_vm6, %v2424_v59, %v2431_v16  ;;  %v4568_v16 = vld [vmem:[#allocation2 + $0x1f0] sm:$0xff] }
 0x188   : > { %v1518_v54 = vadd.f32 %v1414_v9, %v1245_v6  ;;  %v1613_v46 = vadd.f32 %v1565_v25, %v1516_v37  ;;  %v2623_v61 = vunpack.c.l.b16 %v2423_v40  ;;  %v2624_v55 = vunpack.c.l.b16 %v2432_v8 }
 0x189   : > { %v1614_v60 = vadd.f32 %v1566_v49, %v1517_v53  ;;  %v1651_v56 = vmul.f32 %v4543_v0, %v3153_v22  ;;  %v1652_v5 = vmul.f32 %v4547_v30, %v3153_v22  ;;  %v1871_v39 = vmul.f32 %v4543_v0, %v3155_v23 }
 0x18a   : > { %v1615_v38 = vadd.f32 %v1567_v10, %v1518_v54  ;;  %v1872_v58 = vmul.f32 %v4547_v30, %v3155_v23  ;;  %v2648_v51 = vpack.c.b16 %v2624_v55, %v2623_v61  ;;  %v1873_v31 = vmul.f32 %v3020_v41, %v3155_v23  ;;  %v4862_v41 = vld [vmem:[#allocation23_spill] sm:$0xff] }
 0x18b   : > { %v1726_v50 = vrot.slane %v1651_v56, 1  ;;  %v466_v24 = vmul.f32 %v4564_v2, %v3140_v15  ;;  %v1727_v19 = vrot.slane %v1652_v5, 1  ;;  %v1989_v6 = vrot.slane %v1871_v39, 2 }
 0x18c   : > { %v1990_v36 = vrot.slane %v1872_v58, 2  ;;  %v467_v52 = vmul.f32 %v4568_v16, %v3140_v15  ;;  %2951 = vmatmul.msk.bf16.gmra.mxu1 %vm226_vm1, %v2648_v51  ;;  %v1992_v37 = vrot.slane %v1873_v31, 2  ;;  %v500_v62 = vmul.f32 %v4568_v16, %v3135_v12 }
 0x18d   : > { %v1822_v35 = vadd.f32 %v1726_v50, %v1613_v46  ;;  %v724_v59 = vmul.f32 %v4564_v2, %v3123_v7  ;;  %v1728_v29 = vsel %vm533_vm2, %v1726_v50, %v1727_v19  ;;  %v1824_v14 = vadd.f32 %v1727_v19, %v1615_v38 }
 0x18e   : > { %v1991_v25 = vsel %vm775_vm3, %v1989_v6, %v1990_v36  ;;  %v725_v9 = vmul.f32 %v4568_v16, %v3123_v7  ;;  %v1823_v53 = vadd.f32 %v1728_v29, %v1614_v60  ;;  %v1993_v15 = vsel %vm775_vm3, %v1990_v36, %v1992_v37 }
 0x18f   : > { %v2095_v49 = vadd.f32 %v1989_v6, %v1822_v35  ;;  %v580_v10 = vrot.slane %v500_v62, 1  ;;  %v2097_v40 = vadd.f32 %v1993_v15, %v1824_v14  ;;  %v851_v8 = vrot.slane %v724_v59, 2 }
 0x190   : > { %v852_v54 = vrot.slane %v725_v9, 2  ;;  %v999_v12 = vmul.f32 %v3143_v17, %v4323_v43  ;;  %v2096_v46 = vadd.f32 %v1991_v25, %v1823_v53  ;;  %v4860_v55 = vrot.slane %v4003_v26, 1 }
 0x191   : > { %v2143_v61 = vadd.f32 %v4294_v11, %v2095_v49  ;;  %v677_v38 = vadd.f32 %v580_v10, %v467_v52  ;;  %v2145_v7 = vadd.f32 %v4294_v11, %v2097_v40  ;;  %v4861_v39 = vrot.slane %v4016_v34, 2  ;;  %v416_v40 = vld [vmem:[#allocation2 + $0x228] sm:$0xff] }
 0x192   : > { %v581_v56 = vsel %vm533_vm2, %v4860_v55, %v580_v10  ;;  %v853_v5 = vsel %vm775_vm3, %v851_v8, %v852_v54  ;;  %v2144_v51 = vadd.f32 %v4294_v11, %v2096_v46  ;;  %v949_v31 = vadd.f32 %v851_v8, %v4862_v41  ;;  %v415_v10 = vld [vmem:[#allocation2 + $0x220] sm:$0xff]  ;;  %v2718_v55 = vpop.f32.mrf.mxu0 }
 0x193   : > { %v676_v60 = vadd.f32 %v581_v56, %v466_v24  ;;  %v855_v58 = vsel %vm775_vm3, %v852_v54, %v4861_v39  ;;  %v2191_v50 = vmax.f32 %v2143_v61, 0.0  ;;  %v2193_v6 = vmax.f32 %v2145_v7, 0.0  ;;  %v2738_v56 = vpop.f32.mrf.mxu1  ;;  %v2778_v39 = vpop.f32.mrf.mxu3 }
 0x194   : > { %v951_v19 = vadd.f32 %v855_v58, %v677_v38  ;;  %v1000_v36 = vmul.f32 %v3143_v17, %v4325_v63  ;;  %v1080_v24 = vmul.f32 %v3145_v18, %v4323_v43  ;;  %v2192_v52 = vmax.f32 %v2144_v51, 0.0 }
 0x195   : > { %v950_v26 = vadd.f32 %v853_v5, %v676_v60  ;;  %v2239_v35 = vpack.c.bf16 %v2191_v50, %v2191_v50  ;;  %v1046_v34 = vadd.f32 %v4312_v57, %v949_v31  ;;  %v1081_v37 = vmul.f32 %v3145_v18, %v4325_v63  ;;  %v2758_v5 = vpop.f32.mrf.mxu2 }
 0x196   : > { %v2241_v62 = vpack.c.bf16 %v2193_v6, %v2193_v6  ;;  %v1048_v29 = vadd.f32 %v1000_v36, %v951_v19  ;;  %v1159_v14 = vrot.slane %v1080_v24, 1  ;;  %v2240_v25 = vpack.c.bf16 %v2192_v52, %v2192_v52  ;;  %v418_v52 = vld [vmem:[#allocation2 + $0x238] sm:$0xff] }
 0x197   : > { %v1047_v59 = vadd.f32 %v999_v12, %v950_v26  ;;  %v2500_v9 = vshrl.u32 %v2239_v35, 16  ;;  %v1160_v53 = vrot.slane %v1081_v37, 1  ;;  %v1304_v17 = vmul.f32 %v3149_v20, %v4323_v43  ;;  %v417_v12 = vld [vmem:[#allocation2 + $0x230] sm:$0xff] }
 0x198   : > { %v2514_v15 = vshrl.u32 %v2241_v62, 16  ;;  %v2517_v49 = vshll.u32 %v2241_v62, 16  ;;  %v1255_v8 = vadd.f32 %v1159_v14, %v1046_v34  ;;  %v1305_v57 = vmul.f32 %v3149_v20, %v4325_v63 }
 0x199   : > { %v2939_v54 = vrot.slane %v2500_v9, 11  ;;  %v2505_v18 = vshrl.u32 %v2240_v25, 16  ;;  %v2508_v46 = vshll.u32 %v2240_v25, 16  ;;  %v1161_v61 = vsel %vm533_vm2, %v1159_v14, %v1160_v53 }
 0x19a   : > { %v2516_v38 = vrot.slane %v2514_v15, 7  ;;  %v1256_v7 = vadd.f32 %v1161_v61, %v1047_v59  ;;  %v1257_v60 = vadd.f32 %v1160_v53, %v1048_v29  ;;  %v1430_v43 = vrot.slane %v1304_v17, 2 }
 0x19b   : > { %v2507_v58 = vrot.slane %v2505_v18, 7  ;;  %v1431_v51 = vrot.slane %v1305_v57, 2  ;;  %v1577_v50 = vmul.f32 %v3151_v21, %v415_v10  ;;  %v1578_v20 = vmul.f32 %v3151_v21, %v416_v40  ;;  %v2720_v10 = vpop.f32.mrf.mxu0  ;;  %v2780_v61 = vpop.f32.mrf.mxu3 }
 0x19c   : > { %v2519_v63 = vor.u32 %v2517_v49, %v2516_v38  ;;  %v1528_v41 = vadd.f32 %v1430_v43, %v1255_v8  ;;  %v1579_v31 = vmul.f32 %v3151_v21, %v417_v12  ;;  %v1659_v19 = vmul.f32 %v3153_v22, %v416_v40  ;;  %v4619_v21 = vld [vmem:[%s4764_s4] ss:$0 sm:$0xff]  ;;  %v2740_v8 = vpop.f32.mrf.mxu1 }
 0x19d   : > { %v2510_v6 = vor.u32 %v2508_v46, %v2507_v58  ;;  %v2512_v26 = vrot.slane %v2507_v58, 4  ;;  %v1432_v36 = vsel %vm775_vm3, %v1430_v43, %v1431_v51  ;;  %v1434_v24 = vsel %vm775_vm3, %v1431_v51, %v1433_v47 }
 0x19e   : > { %v1529_v35 = vadd.f32 %v1432_v36, %v1256_v7  ;;  %v1530_v34 = vadd.f32 %v1434_v24, %v1257_v60  ;;  %v1625_v37 = vadd.f32 %v1577_v50, %v1528_v41  ;;  %v1660_v62 = vmul.f32 %v3153_v22, %v417_v12 }
 0x19f   : > { %v2511_v59 = vsel %vm3314_vm6, %v2939_v54, %v2510_v6  ;;  %v2520_v29 = vsel %vm3314_vm6, %v2512_v26, %v2519_v63  ;;  %v1738_v28 = vrot.slane %v1659_v19, 1  ;;  %v1883_v47 = vmul.f32 %v3155_v23, %v416_v40  ;;  %v2760_v40 = vpop.f32.mrf.mxu2 }
 0x1a0   : > { %v2631_v14 = vunpack.c.l.b16 %v2511_v59  ;;  %v2632_v25 = vunpack.c.l.b16 %v2520_v29  ;;  %v1626_v9 = vadd.f32 %v1578_v20, %v1529_v35  ;;  %v1627_v53 = vadd.f32 %v1579_v31, %v1530_v34 }
 0x1a1   : > { %v1739_v17 = vrot.slane %v1660_v62, 1  ;;  %v1834_v22 = vadd.f32 %v1738_v28, %v1625_v37  ;;  %v1884_v15 = vmul.f32 %v3155_v23, %v417_v12  ;;  %v1885_v49 = vmul.f32 %v3155_v23, %v418_v52 }
 0x1a2   : > { %v2652_v57 = vpack.c.b16 %v2632_v25, %v2631_v14  ;;  %v2009_v54 = vrot.slane %v1883_v47, 2  ;;  %v2719_v18 = vadd.f32 %v4619_v21, %v2718_v55  ;;  %v2739_v46 = vadd.f32 %v4619_v21, %v2738_v56  ;;  %v3023_v55 = vld [vmem:[#allocation2 + $0x28] sm:$0xff] }
 0x1a3   : > { %v1740_v38 = vsel %vm533_vm2, %v1738_v28, %v1739_v17  ;;  %v1836_v7 = vadd.f32 %v1739_v17, %v1627_v53  ;;  %v2010_v60 = vrot.slane %v1884_v15, 2  ;;  %v2012_v43 = vrot.slane %v1885_v49, 2  ;;  %v2723_v62 = vpop.f32.mrf.mxu0  ;;  %v2783_v25 = vpop.f32.mrf.mxu3  ;;  %v3025_v49 = vld [vmem:[#allocation2 + $0x48] sm:$0xff] }
 0x1a4   : > { %2955 = vmatmul.msk.bf16.gmra.mxu2 %vm226_vm1, %v2652_v57  ;;  %v1835_v23 = vadd.f32 %v1740_v38, %v1626_v9  ;;  %v2107_v12 = vadd.f32 %v2009_v54, %v1834_v22  ;;  %v2798_v56 = vadd.f32 %v3023_v55, %v2719_v18  ;;  %v2806_v58 = vadd.f32 %v4401_v32, %v2739_v46  ;;  %v3024_v32 = vld [vmem:[#allocation2 + $0x30] sm:$0xff]  ;;  %v2743_v29 = vpop.f32.mrf.mxu1  ;;  %v3027_v57 = vld [vmem:[#allocation2 + $0x148] sm:$0xff] }
 0x1a5   : > { %v2011_v51 = vsel %vm775_vm3, %v2009_v54, %v2010_v60  ;;  %v2013_v50 = vsel %vm775_vm3, %v2010_v60, %v2012_v43  ;;  %v2721_v20 = vadd.f32 %v4619_v21, %v2720_v10  ;;  %v2759_v63 = vadd.f32 %v4619_v21, %v2758_v5 }
 0x1a6   : > { %v2108_v41 = vadd.f32 %v2011_v51, %v1835_v23  ;;  %v2109_v31 = vadd.f32 %v2013_v50, %v1836_v7  ;;  %v2155_v19 = vadd.f32 %v4294_v11, %v2107_v12  ;;  %2832 = vst.msk [vmem:[%s4636_s17] sm:$0xff] %vm226_vm1, %v2798_v56  ;;  %v2779_v6 = vadd.f32 %v4619_v21, %v2778_v39 }
 0x1a7   : > { %2840 = vst.msk [vmem:[%s4636_s17 + $0x40] sm:$0xff] %vm226_vm1, %v2806_v58  ;;  %v2799_v26 = vadd.f32 %v3024_v32, %v2721_v20  ;;  %v2814_v36 = vadd.f32 %v4471_v48, %v2759_v63  ;;  %v2741_v24 = vadd.f32 %v4619_v21, %v2740_v8  ;;  %v2761_v5 = vadd.f32 %v4619_v21, %v2760_v40  ;;  %v3026_v8 = vld [vmem:[#allocation2 + $0xc8] sm:$0xff] }
 0x1a8   : > { %v2156_v52 = vadd.f32 %v4294_v11, %v2108_v41  ;;  %v2157_v35 = vadd.f32 %v4294_v11, %v2109_v31  ;;  %v2203_v34 = vmax.f32 %v2155_v19, 0.0  ;;  %v2822_v37 = vadd.f32 %v4543_v0, %v2779_v6  ;;  %v2763_v0 = vpop.f32.mrf.mxu2 }
 0x1a9   : > { %2833 = vst.msk [vmem:[%s4636_s17 + $0x8] sm:$0xff] %vm226_vm1, %v2799_v26  ;;  %v2807_v39 = vadd.f32 %v4405_v13, %v2741_v24  ;;  %v2815_v48 = vadd.f32 %v4477_v42, %v2761_v5  ;;  %v2781_v59 = vadd.f32 %v4619_v21, %v2780_v61  ;;  %v2724_v11 = vadd.f32 %v4619_v21, %v2723_v62  ;;  %v3028_v61 = vld [vmem:[#allocation2 + $0x1c8] sm:$0xff]  ;;  %v3029_v26 = vld [vmem:[#allocation2 + $0x50] sm:$0xff] }
 0x1aa   : > { %v2204_v28 = vmax.f32 %v2156_v52, 0.0  ;;  %v2205_v47 = vmax.f32 %v2157_v35, 0.0  ;;  %v2251_v14 = vpack.c.bf16 %v2203_v34, %v2203_v34  ;;  %2848 = vst.msk [vmem:[%s4636_s17 + $0x80] sm:$0xff] %vm226_vm1, %v2814_v36  ;;  %v2744_v42 = vadd.f32 %v4619_v21, %v2743_v29  ;;  %v3030_v52 = vld [vmem:[#allocation2 + $0xd0] sm:$0xff] }
 0x1ab   : > { %2856 = vst.msk [vmem:[%s4636_s17 + $0xc0] sm:$0xff] %vm226_vm1, %v2822_v37  ;;  %v2823_v13 = vadd.f32 %v4547_v30, %v2781_v59  ;;  %v2764_v9 = vadd.f32 %v4619_v21, %v2763_v0  ;;  %v2784_v53 = vadd.f32 %v4619_v21, %v2783_v25  ;;  %v2800_v10 = vadd.f32 %v3025_v49, %v2724_v11  ;;  %v2725_v12 = vpop.f32.mrf.mxu0  ;;  %v2785_v63 = vpop.f32.mrf.mxu3  ;;  %v3031_v34 = vld [vmem:[#allocation2 + $0x150] sm:$0xff] }
 0x1ac   : > { %v2252_v17 = vpack.c.bf16 %v2204_v28, %v2204_v28  ;;  %v2253_v22 = vpack.c.bf16 %v2205_v47, %v2205_v47  ;;  %v2588_v15 = vshrl.u32 %v2251_v14, 16  ;;  %2841 = vst.msk [vmem:[%s4636_s17 + $0x48] sm:$0xff] %vm226_vm1, %v2807_v39  ;;  %v2808_v30 = vadd.f32 %v3026_v8, %v2744_v42  ;;  %v2745_v55 = vpop.f32.mrf.mxu1  ;;  %v3032_v39 = vld [vmem:[#allocation2 + $0x1d0] sm:$0xff] }
 0x1ad   : > { %2849 = vst.msk [vmem:[%s4636_s17 + $0x88] sm:$0xff] %vm226_vm1, %v2815_v48  ;;  %v2816_v54 = vadd.f32 %v3027_v57, %v2764_v9  ;;  %v2824_v38 = vadd.f32 %v3028_v61, %v2784_v53  ;;  %v2726_v50 = vadd.f32 %v4619_v21, %v2725_v12  ;;  %v2746_v41 = vadd.f32 %v4619_v21, %v2745_v55  ;;  %v3033_v57 = vld [vmem:[#allocation2 + $0x88] sm:$0xff] }
 0x1ae   : > { %v2593_v18 = vshrl.u32 %v2252_v17, 16  ;;  %v2596_v46 = vshll.u32 %v2252_v17, 16  ;;  %v2602_v40 = vshrl.u32 %v2253_v22, 16  ;;  %2834 = vst.msk [vmem:[%s4636_s17 + $0x10] sm:$0xff] %vm226_vm1, %v2800_v10  ;;  %v2605_v7 = vshll.u32 %v2253_v22, 16 }
 0x1af   : > { %2857 = vst.msk [vmem:[%s4636_s17 + $0xc8] sm:$0xff] %vm226_vm1, %v2823_v13  ;;  %v2943_v60 = vrot.slane %v2588_v15, 11  ;;  %v2786_v19 = vadd.f32 %v4619_v21, %v2785_v63  ;;  %v2801_v36 = vadd.f32 %v3029_v26, %v2726_v50  ;;  %v2809_v35 = vadd.f32 %v3030_v52, %v2746_v41  ;;  %v3038_v63 = vld [vmem:[#allocation2 + $0x190] sm:$0xff] }
 0x1b0   : > { %v2595_v43 = vrot.slane %v2593_v18, 7  ;;  %v2604_v23 = vrot.slane %v2602_v40, 7  ;;  %2842 = vst.msk [vmem:[%s4636_s17 + $0x50] sm:$0xff] %vm226_vm1, %v2808_v30  ;;  %v2765_v20 = vpop.f32.mrf.mxu2 }
 0x1b1   : > { %2850 = vst.msk [vmem:[%s4636_s17 + $0x90] sm:$0xff] %vm226_vm1, %v2816_v54  ;;  %v2766_v31 = vadd.f32 %v4619_v21, %v2765_v20  ;;  %v2825_v62 = vadd.f32 %v3032_v39, %v2786_v19 }
 0x1b2   : > { %v2598_v56 = vor.u32 %v2596_v46, %v2595_v43  ;;  %v2600_v58 = vrot.slane %v2595_v43, 4  ;;  %v2607_v51 = vor.u32 %v2605_v7, %v2604_v23  ;;  %2858 = vst.msk [vmem:[%s4636_s17 + $0xd0] sm:$0xff] %vm226_vm1, %v2824_v38  ;;  %v3034_v46 = vld [vmem:[#allocation2 + $0x90] sm:$0xff]  ;;  %v3035_v38 = vld [vmem:[#allocation2 + $0x108] sm:$0xff] }
 0x1b3   : > { %v2817_v37 = vadd.f32 %v3031_v34, %v2766_v31  ;;  %2835 = vst.msk [vmem:[%s4636_s17 + $0x18] sm:$0xff] %vm226_vm1, %v2801_v36  ;;  %v2728_v33 = vpop.f32.mrf.mxu0  ;;  %v3036_v23 = vld [vmem:[#allocation2 + $0x110] sm:$0xff] }
 0x1b4   : > { %v2599_v6 = vsel %vm3314_vm6, %v2943_v60, %v2598_v56  ;;  %v2608_v32 = vsel %vm3314_vm6, %v2600_v58, %v2607_v51  ;;  %2843 = vst.msk [vmem:[%s4636_s17 + $0x58] sm:$0xff] %vm226_vm1, %v2809_v35  ;;  %v2748_v59 = vpop.f32.mrf.mxu1  ;;  %v2729_v29 = vadd.f32 %v4619_v21, %v2728_v33  ;;  %v3037_v58 = vld [vmem:[#allocation2 + $0x188] sm:$0xff] }
 0x1b5   : > { %v2639_v24 = vunpack.c.l.b16 %v2599_v6  ;;  %v2640_v5 = vunpack.c.l.b16 %v2608_v32  ;;  %2851 = vst.msk [vmem:[%s4636_s17 + $0x98] sm:$0xff] %vm226_vm1, %v2817_v37  ;;  %v2749_v28 = vadd.f32 %v4619_v21, %v2748_v59  ;;  %v3039_v6 = vld [vmem:[#allocation2 + $0x208] sm:$0xff] }
 0x1b6   : > { %2859 = vst.msk [vmem:[%s4636_s17 + $0xd8] sm:$0xff] %vm226_vm1, %v2825_v62  ;;  %v2802_v47 = vadd.f32 %v4355_v27, %v2729_v29 }
 0x1b7   : > { %v2656_v48 = vpack.c.b16 %v2640_v5, %v2639_v24  ;;  %v2810_v14 = vadd.f32 %v4426_v44, %v2749_v28  ;;  %v3040_v24 = vld [vmem:[#allocation2 + $0x210] sm:$0xff] }
 0x1b8   : > { %2836 = vst.msk [vmem:[%s4636_s17 + $0x20] sm:$0xff] %vm226_vm1, %v2802_v47 }
 0x1b9   : > { %2959 = vmatmul.msk.bf16.gmra.mxu3 %vm226_vm1, %v2656_v48  ;;  %2844 = vst.msk [vmem:[%s4636_s17 + $0x60] sm:$0xff] %vm226_vm1, %v2810_v14 }
 0x1bb   : > { %v2730_v11 = vpop.f32.mrf.mxu0 }
 0x1bc   : > { %v2731_v0 = vadd.f32 %v4619_v21, %v2730_v11  ;;  %v2750_v13 = vpop.f32.mrf.mxu1 }
 0x1bd   : > { %v2751_v42 = vadd.f32 %v4619_v21, %v2750_v13 }
 0x1be   : > { %v2803_v25 = vadd.f32 %v4359_v4, %v2731_v0 }
 0x1bf   : > { %v2811_v27 = vadd.f32 %v4430_v45, %v2751_v42 }
 0x1c0   : > { %2837 = vst.msk [vmem:[%s4636_s17 + $0x28] sm:$0xff] %vm226_vm1, %v2803_v25 }
 0x1c1   : > { %2845 = vst.msk [vmem:[%s4636_s17 + $0x68] sm:$0xff] %vm226_vm1, %v2811_v27 }
 0x1c9   : > { %v2768_v9 = vpop.f32.mrf.mxu2 }
 0x1ca   : > { %v2769_v44 = vadd.f32 %v4619_v21, %v2768_v9 }
 0x1cc   : > { %v2818_v53 = vadd.f32 %v4495_v1, %v2769_v44 }
 0x1ce   : > { %2852 = vst.msk [vmem:[%s4636_s17 + $0xa0] sm:$0xff] %vm226_vm1, %v2818_v53 }
 0x1d1   : > { %v2770_v17 = vpop.f32.mrf.mxu2 }
 0x1d2   : > { %v2771_v4 = vadd.f32 %v4619_v21, %v2770_v17 }
 0x1d4   : > { %v2819_v22 = vadd.f32 %v4499_v3, %v2771_v4 }
 0x1d6   : > { %2853 = vst.msk [vmem:[%s4636_s17 + $0xa8] sm:$0xff] %vm226_vm1, %v2819_v22 }
 0x1e1   : > { %v2788_v15 = vpop.f32.mrf.mxu3 }
 0x1e2   : > { %v2789_v45 = vadd.f32 %v4619_v21, %v2788_v15 }
 0x1e4   : > { %v2826_v49 = vadd.f32 %v4564_v2, %v2789_v45 }
 0x1e6   : > { %2860 = vst.msk [vmem:[%s4636_s17 + $0xe0] sm:$0xff] %vm226_vm1, %v2826_v49 }
 0x1e9   : > { %v2790_v10 = vpop.f32.mrf.mxu3 }
 0x1ea   : > { %v2791_v1 = vadd.f32 %v4619_v21, %v2790_v10 }
 0x1ec   : > { %v2827_v8 = vadd.f32 %v4568_v16, %v2791_v1 }
 0x1ee   : > { %2861 = vst.msk [vmem:[%s4636_s17 + $0xe8] sm:$0xff] %vm226_vm1, %v2827_v8 }
 0x1f2   : > { %v2733_v30 = vpop.f32.mrf.mxu0 }
 0x1f3   : > { %v2734_v3 = vadd.f32 %v4619_v21, %v2733_v30 }
 0x1f5   : > { %v2804_v54 = vadd.f32 %v3033_v57, %v2734_v3 }
 0x1f7   : > { %2838 = vst.msk [vmem:[%s4636_s17 + $0x30] sm:$0xff] %vm226_vm1, %v2804_v54 }
 0x1fa   : > { %v2735_v18 = vpop.f32.mrf.mxu0 }
 0x1fb   : > { %v2736_v2 = vadd.f32 %v4619_v21, %v2735_v18 }
 0x1fd   : > { %v2805_v40 = vadd.f32 %v3034_v46, %v2736_v2 }
 0x1ff   : > { %2839 = vst.msk [vmem:[%s4636_s17 + $0x38] sm:$0xff] %vm226_vm1, %v2805_v40 }
 0x209   : > { %v2753_v16 = vpop.f32.mrf.mxu1 }
 0x20a   : > { %v2754_v61 = vadd.f32 %v4619_v21, %v2753_v16 }
 0x20c   : > { %v2812_v7 = vadd.f32 %v3035_v38, %v2754_v61 }
 0x20e   : > { %2846 = vst.msk [vmem:[%s4636_s17 + $0x70] sm:$0xff] %vm226_vm1, %v2812_v7 }
 0x211   : > { %v2755_v60 = vpop.f32.mrf.mxu1 }
 0x212   : > { %v2756_v43 = vadd.f32 %v4619_v21, %v2755_v60 }
 0x214   : > { %v2813_v12 = vadd.f32 %v3036_v23, %v2756_v43 }
 0x216   : > { %2847 = vst.msk [vmem:[%s4636_s17 + $0x78] sm:$0xff] %vm226_vm1, %v2813_v12 }
 0x227   : > { %v2773_v55 = vpop.f32.mrf.mxu2 }
 0x228   : > { %v2774_v56 = vadd.f32 %v4619_v21, %v2773_v55 }
 0x22a   : > { %v2820_v51 = vadd.f32 %v3037_v58, %v2774_v56 }
 0x22c   : > { %2854 = vst.msk [vmem:[%s4636_s17 + $0xb0] sm:$0xff] %vm226_vm1, %v2820_v51 }
 0x22f   : > { %v2775_v50 = vpop.f32.mrf.mxu2 }
 0x230   : > { %v2776_v20 = vadd.f32 %v4619_v21, %v2775_v50 }
 0x232   : > { %v2821_v41 = vadd.f32 %v3038_v63, %v2776_v20 }
 0x234   : > { %2855 = vst.msk [vmem:[%s4636_s17 + $0xb8] sm:$0xff] %vm226_vm1, %v2821_v41 }
 0x23c   : > { %v2793_v31 = vpop.f32.mrf.mxu3 }
 0x23d   : > { %v2794_v19 = vadd.f32 %v4619_v21, %v2793_v31 }
 0x23f   : > { %v2828_v32 = vadd.f32 %v3039_v6, %v2794_v19 }
 0x241   : > { %2862 = vst.msk [vmem:[%s4636_s17 + $0xf0] sm:$0xff] %vm226_vm1, %v2828_v32 }
 0x244   : > { %v2795_v26 = vpop.f32.mrf.mxu3 }
 0x245   : > { %v2796_v36 = vadd.f32 %v4619_v21, %v2795_v26 }
 0x247   : > { %v2829_v5 = vadd.f32 %v3040_v24, %v2796_v36 }
 0x249   : > { %2863 = vst.msk [vmem:[%s4636_s17 + $0xf8] sm:$0xff] %vm226_vm1, %v2829_v5 }
 0x24a PF: > { %s15_s18 = sadd.s32 1, %s3047_s18  }
 0x24b   : > { %p12_p4 = scmp.ge.s32.totalorder %s15_s18, 4  }
 0x24d   :  { %14 = sbr.rel (!%p12_p4) target bundleno = 1 (0x1), region = 74 }

</bundles_post_ra>
